<compile_context>
chip_gen: v5e
topology: v5e:2x2
jax: 0.10.0
libtpu: 0.0.40
codegen_flags: <defaults>
</compile_context>

<pallas_src>
import jax
import jax.numpy as jnp
from jax.experimental import pallas as pl
from jax.experimental.pallas import tpu as pltpu


def _largest_divisor_at_most(n, target):
    t = max(1, min(int(target), n))
    while n % t:
        t -= 1
    return t


# ----------------------------------------------------------------------------
# Pallas kernel: fused conv (+bias+ReLU) on a phase-split (space-to-depth)
# activation.  Patches are built in VMEM via contiguous window shifts of the
# flattened per-batch spatial axis; one MXU matmul per shift, f32 accumulate.
# ----------------------------------------------------------------------------
def conv_phase_gemm(x, w, b, *, shifts, s_out):
    """x: (B, Kin, S_in) bf16 phase-split activation (flattened spatial + halo),
    w: (n_shift, C_out, Kin) bf16, b: (C_out, 1) f32.
    Returns (B, C_out, s_out) bf16 = relu(conv + b), channel-major."""
    B, kin, s_in = x.shape
    n_shift, c_out, kin_w = w.shape
    assert kin_w == kin and n_shift == len(shifts)
    assert s_in >= s_out + max(shifts)

    # Batch tile: divides B (no pad/slice) and grid >= 2 whenever B >= 2 so both
    # v7x TensorCores run; <= 8 batches/step keeps VMEM ~0.5 MB/step everywhere.
    tb = _largest_divisor_at_most(B, min(8, max(1, B // 2)))
    grid = (B // tb,)

    def kernel(x_ref, w_ref, b_ref, o_ref):
        bias = b_ref[...]                                       # (C_out, 1) f32
        for bb in range(tb):                                    # unrolled, tb <= 8
            xb = x_ref[bb]                                      # (Kin, S_in) bf16
            acc = jnp.dot(w_ref[0], xb[:, shifts[0]:shifts[0] + s_out],
                          preferred_element_type=jnp.float32)
            for s in range(1, n_shift):
                acc += jnp.dot(w_ref[s], xb[:, shifts[s]:shifts[s] + s_out],
                               preferred_element_type=jnp.float32)
            o_ref[bb] = jnp.maximum(acc + bias, 0.0).astype(o_ref.dtype)

    flops = 2 * B * s_out * c_out * n_shift * kin
    bytes_accessed = ((B * kin * s_in + n_shift * c_out * kin + B * c_out * s_out) * 2
                      + c_out * 4)
    return pl.pallas_call(
        kernel,
        out_shape=jax.ShapeDtypeStruct((B, c_out, s_out), jnp.bfloat16),
        grid=grid,
        in_specs=[
            pl.BlockSpec((tb, kin, s_in), lambda i: (i, 0, 0)),
            pl.BlockSpec((n_shift, c_out, kin), lambda i: (0, 0, 0)),
            pl.BlockSpec((c_out, 1), lambda i: (0, 0)),
        ],
        out_specs=pl.BlockSpec((tb, c_out, s_out), lambda i: (i, 0, 0)),
        compiler_params=pltpu.CompilerParams(dimension_semantics=("parallel",)),
        cost_estimate=pl.CostEstimate(flops=flops, transcendentals=0,
                                      bytes_accessed=bytes_accessed),
    )(x, w, b)


# ----------------------------------------------------------------------------
# Pallas kernel: fused fc head, TRANSPOSED:  q^T = W2 @ relu(W1 @ x^T + b1) + b2
# (batch on lanes -> lane-dense output store; weights in native (out,in) layout)
# ----------------------------------------------------------------------------
def fc_head_transposed(x_t, w1, b1, w2, b2):
    """x_t: (D, B) bf16, w1: (H, D) bf16, b1: (H,1) f32, w2: (A, H) bf16,
    b2: (A,1) f32.  Returns (A, B) f32."""
    D, B = x_t.shape
    H, Dw = w1.shape
    A, Hw = w2.shape
    assert D == Dw and H == Hw

    # Lane tile over batch only when it divides B (no pad/slice); prefer >= 2
    # grid steps (v7x megacore) once B is large enough.  Fits v5e 16 MiB scoped
    # VMEM at tbl <= 512.
    tbl = B
    for cand in (512, 256, 128):
        if B % cand == 0 and B // cand >= 2:
            tbl = cand
            break
    grid = (B // tbl,)

    def kernel(x_ref, w1_ref, b1_ref, w2_ref, b2_ref, o_ref):
        h = jnp.dot(w1_ref[...], x_ref[...], preferred_element_type=jnp.float32)
        h = jnp.maximum(h + b1_ref[...], 0.0)                  # bias+ReLU in f32
        out = jnp.dot(w2_ref[...], h.astype(w2_ref.dtype),
                      preferred_element_type=jnp.float32)
        o_ref[...] = (out + b2_ref[...]).astype(o_ref.dtype)

    flops = 2 * B * (D * H + H * A)
    bytes_accessed = (D * B + H * D + A * H) * 2 + (H + A) * 4 + A * B * 4
    return pl.pallas_call(
        kernel,
        out_shape=jax.ShapeDtypeStruct((A, B), jnp.float32),
        grid=grid,
        in_specs=[
            pl.BlockSpec((D, tbl), lambda i: (0, i)),
            pl.BlockSpec((H, D), lambda i: (0, 0)),
            pl.BlockSpec((H, 1), lambda i: (0, 0)),
            pl.BlockSpec((A, H), lambda i: (0, 0)),
            pl.BlockSpec((A, 1), lambda i: (0, 0)),
        ],
        out_specs=pl.BlockSpec((A, tbl), lambda i: (0, i)),
        compiler_params=pltpu.CompilerParams(dimension_semantics=("parallel",)),
        cost_estimate=pl.CostEstimate(flops=flops, transcendentals=0,
                                      bytes_accessed=bytes_accessed),
    )(x_t, w1, b1, w2, b2)


# ----------------------------------------------------------------------------
# Params: PyTorch-style init, then a ONE-TIME conversion to kernel layout
# (shift-major conv weights, fc weights in native (out,in) layout, bf16 MXU
# operands).  Called once outside jit.
# ----------------------------------------------------------------------------
def init_params(key, n_actions):
    def uniform(key, shape, fan_in):
        bound = 1.0 / jnp.sqrt(float(fan_in))
        return jax.random.uniform(key, shape, jnp.float32, -bound, bound)

    keys = jax.random.split(key, 8)
    return {
        "w1": uniform(keys[0], (16, 3, 8, 8), 3 * 8 * 8),        # conv1 OIHW
        "b1": uniform(keys[1], (16,), 3 * 8 * 8),
        "w2": uniform(keys[2], (32, 16, 4, 4), 16 * 4 * 4),      # conv2 OIHW
        "b2": uniform(keys[3], (32,), 16 * 4 * 4),
        "wf1": uniform(keys[4], (256, 9 * 9 * 32), 9 * 9 * 32),  # fc1 (out, in)
        "bf1": uniform(keys[5], (256,), 9 * 9 * 32),
        "wf2": uniform(keys[6], (n_actions, 256), 256),          # fc2 (out, in)
        "bf2": uniform(keys[7], (n_actions,), 256),
    }


def prepare_params(p):
    # conv OIHW -> (shift=(qh,qw), C_out, (rh, rw, C_in)) with kh = qh*stride + rh.
    w1s = (p["w1"].reshape(16, 3, 2, 4, 2, 4)      # (co, c, qh, rh, qw, rw)
                  .transpose(2, 4, 0, 3, 5, 1)     # (qh, qw, co, rh, rw, c)
                  .reshape(4, 16, 48))
    w2s = (p["w2"].reshape(32, 16, 2, 2, 2, 2)
                  .transpose(2, 4, 0, 3, 5, 1)
                  .reshape(4, 32, 64))
    return {
        "w1s": w1s.astype(jnp.bfloat16),
        "b1": p["b1"].reshape(16, 1).astype(jnp.float32),
        "w2s": w2s.astype(jnp.bfloat16),
        "b2": p["b2"].reshape(32, 1).astype(jnp.float32),
        "wf1": p["wf1"].astype(jnp.bfloat16),                    # (256, 2592) as-is
        "bf1": p["bf1"].reshape(256, 1).astype(jnp.float32),
        "wf2": p["wf2"].astype(jnp.bfloat16),                    # (A, 256) as-is
        "bf2": p["bf2"].reshape(-1, 1).astype(jnp.float32),
    }


# ----------------------------------------------------------------------------
# Forward pass (== DQN.forward)
# ----------------------------------------------------------------------------
# Conv geometry (fixed by the module: fc expects 9*9*32 => 84x84 inputs).
#   conv1: k=8 s=4 : 84x84 -> 20x20, phase grid 21x21 (pitch 21), halo pad 22
#   conv2: k=4 s=2 : 20x20 ->  9x9,  phase grid 10x10 (pitch 10), halo pad 11
_C1_SHIFTS = (0, 1, 21, 22)      # shift for (qh, qw) = qh*21 + qw
_C1_SOUT = 21 * 21               # 441 (valid 20x20 lives at rows/cols < 20)
_C1_PAD = 22
_C2_SHIFTS = (0, 1, 10, 11)
_C2_SOUT = 10 * 10               # 100 (valid 9x9 lives at rows/cols < 9)
_C2_PAD = 11


def dqn_forward(kp, x):
    B = x.shape[0]
    xb = x.astype(jnp.bfloat16)

    # conv1: stride-4 space-to-depth (input-sized; replaces NCHW permute + im2col)
    x1 = (xb.reshape(B, 3, 21, 4, 21, 4)          # (b, c, i, rh, j, rw)
            .transpose(0, 3, 5, 1, 2, 4)          # (b, rh, rw, c, i, j)
            .reshape(B, 48, _C1_SOUT))
    x1 = jnp.pad(x1, ((0, 0), (0, 0), (0, _C1_PAD)))            # halo for in-kernel shifts
    y1 = conv_phase_gemm(x1, kp["w1s"], kp["b1"],
                         shifts=_C1_SHIFTS, s_out=_C1_SOUT)     # (B, 16, 441) bf16

    # conv2: stride-2 phase split of the valid 20x20 region of y1 (y1-sized)
    x2 = (y1.reshape(B, 16, 21, 21)[:, :, :20, :20]
            .reshape(B, 16, 10, 2, 10, 2)         # (b, c, i2, rh, j2, rw)
            .transpose(0, 3, 5, 1, 2, 4)          # (b, rh, rw, c, i2, j2)
            .reshape(B, 64, _C2_SOUT))
    x2 = jnp.pad(x2, ((0, 0), (0, 0), (0, _C2_PAD)))
    y2 = conv_phase_gemm(x2, kp["w2s"], kp["b2"],
                         shifts=_C2_SHIFTS, s_out=_C2_SOUT)     # (B, 32, 100) bf16

    # fc head (transposed): rows = (c, h, w) == torch x.view(B, -1) order, cols = batch
    flat_t = (y2.reshape(B, 32, 10, 10)[:, :, :9, :9]
                .transpose(1, 2, 3, 0)            # (c, h, w, b)
                .reshape(32 * 9 * 9, B))
    q_t = fc_head_transposed(flat_t, kp["wf1"], kp["bf1"], kp["wf2"], kp["bf2"])  # (A, B)
    return q_t.T                                  # (B, A) f32


# Pure-XLA f32 reference (same bf16-rounded weights/input) for a sanity check.
def _reference_forward(p, x):
    f32 = jnp.float32
    xb = x.astype(jnp.bfloat16).astype(f32)
    w1 = p["w1"].astype(jnp.bfloat16).astype(f32)
    w2 = p["w2"].astype(jnp.bfloat16).astype(f32)
    wf1 = p["wf1"].astype(jnp.bfloat16).astype(f32)
    wf2 = p["wf2"].astype(jnp.bfloat16).astype(f32)
    dn = ("NCHW", "OIHW", "NCHW")
    y = jax.lax.conv_general_dilated(xb, w1, (4, 4), "VALID", dimension_numbers=dn)
    y = jax.nn.relu(y + p["b1"].reshape(1, -1, 1, 1))
    y = jax.lax.conv_general_dilated(y, w2, (2, 2), "VALID", dimension_numbers=dn)
    y = jax.nn.relu(y + p["b2"].reshape(1, -1, 1, 1))
    flat = y.reshape(y.shape[0], -1)
    h = jax.nn.relu(flat @ wf1.T + p["bf1"])
    return h @ wf2.T + p["bf2"]


if __name__ == "__main__":
    n_actions = 4
    batch = 2

    key = jax.random.PRNGKey(0)
    k_param, k_input = jax.random.split(key)

    params = init_params(k_param, n_actions)
    kparams = prepare_params(params)          # one-time kernel-layout / bf16 conversion
    # Input spatial size is forced to 84x84 by the fc layer (9*9*32 = 2592).
    x = jax.random.normal(k_input, (batch, 3, 84, 84), dtype=jnp.float32)

    fwd = jax.jit(dqn_forward)
    out = jax.block_until_ready(fwd(kparams, x))

    assert out.shape == (batch, n_actions), out.shape
    assert out.dtype == jnp.float32
    assert bool(jnp.all(jnp.isfinite(out)))

    ref = _reference_forward(params, x)       # bf16-path tolerance (~1e-3 expected)
    assert bool(jnp.allclose(out, ref, rtol=5e-2, atol=1e-2)), \
        float(jnp.max(jnp.abs(out - ref)))
    print("KERNEL_OK")
</pallas_src>

<mosaic_0001>
module attributes {stable_mosaic.version = 11 : i64} {
  func.func @kernel(%arg0: i32, %arg1: memref<1x48x463xbf16, #tpu.memory_space<vmem>>, %arg2: memref<4x16x48xbf16, #tpu.memory_space<vmem>>, %arg3: memref<16x1xf32, #tpu.memory_space<vmem>>, %arg4: memref<1x16x441xbf16, #tpu.memory_space<vmem>>) attributes {dimension_semantics = [#tpu.dimension_semantics<parallel>], iteration_bounds = array<i64: 2>, scalar_prefetch = 0 : i64, scratch_operands = 0 : i64, tpu.core_type = #tpu.core_type<tc>, window_params = [{transform_indices = @transform_0, window_bounds = array<i64: 1, 48, 463>}, {pipeline_mode = #tpu.pipeline_mode<synchronous>, transform_indices = @transform_1, window_bounds = array<i64: 4, 16, 48>}, {pipeline_mode = #tpu.pipeline_mode<synchronous>, transform_indices = @transform_2, window_bounds = array<i64: 16, 1>}, {transform_indices = @transform_3, window_bounds = array<i64: 1, 16, 441>}]} {
    %c0 = arith.constant 0 : index
    %c0_0 = arith.constant 0 : index
    %0 = vector.load %arg3[%c0, %c0_0] : memref<16x1xf32, #tpu.memory_space<vmem>>, vector<16x1xf32>
    %c0_1 = arith.constant 0 : index
    %c0_2 = arith.constant 0 : index
    %c0_3 = arith.constant 0 : index
    %1 = vector.load %arg1[%c0_1, %c0_2, %c0_3] : memref<1x48x463xbf16, #tpu.memory_space<vmem>>, vector<1x48x463xbf16>
    %2 = vector.shape_cast %1 : vector<1x48x463xbf16> to vector<48x463xbf16>
    %c0_4 = arith.constant 0 : index
    %c0_5 = arith.constant 0 : index
    %c0_6 = arith.constant 0 : index
    %3 = vector.load %arg2[%c0_4, %c0_5, %c0_6] : memref<4x16x48xbf16, #tpu.memory_space<vmem>>, vector<1x16x48xbf16>
    %4 = vector.shape_cast %3 : vector<1x16x48xbf16> to vector<16x48xbf16>
    %5 = vector.extract_strided_slice %2 {offsets = [0, 0], sizes = [48, 441], strides = [1, 1]} : vector<48x463xbf16> to vector<48x441xbf16>
    %cst = arith.constant dense<0.000000e+00> : vector<16x441xf32>
    %6 = tpu.matmul %4, %5, %cst {dimension_numbers = #tpu.dot_dimension_numbers<[1], [0], [0], [1], [0, 0, 1, 1], [], []>} : vector<16x48xbf16>, vector<48x441xbf16>, vector<16x441xf32> -> vector<16x441xf32>
    %c1 = arith.constant 1 : index
    %c0_7 = arith.constant 0 : index
    %c0_8 = arith.constant 0 : index
    %7 = vector.load %arg2[%c1, %c0_7, %c0_8] : memref<4x16x48xbf16, #tpu.memory_space<vmem>>, vector<1x16x48xbf16>
    %8 = vector.shape_cast %7 : vector<1x16x48xbf16> to vector<16x48xbf16>
    %9 = vector.extract_strided_slice %2 {offsets = [0, 1], sizes = [48, 441], strides = [1, 1]} : vector<48x463xbf16> to vector<48x441xbf16>
    %cst_9 = arith.constant dense<0.000000e+00> : vector<16x441xf32>
    %10 = tpu.matmul %8, %9, %cst_9 {dimension_numbers = #tpu.dot_dimension_numbers<[1], [0], [0], [1], [0, 0, 1, 1], [], []>} : vector<16x48xbf16>, vector<48x441xbf16>, vector<16x441xf32> -> vector<16x441xf32>
    %11 = arith.addf %6, %10 : vector<16x441xf32>
    %c2 = arith.constant 2 : index
    %c0_10 = arith.constant 0 : index
    %c0_11 = arith.constant 0 : index
    %12 = vector.load %arg2[%c2, %c0_10, %c0_11] : memref<4x16x48xbf16, #tpu.memory_space<vmem>>, vector<1x16x48xbf16>
    %13 = vector.shape_cast %12 : vector<1x16x48xbf16> to vector<16x48xbf16>
    %14 = vector.extract_strided_slice %2 {offsets = [0, 21], sizes = [48, 441], strides = [1, 1]} : vector<48x463xbf16> to vector<48x441xbf16>
    %cst_12 = arith.constant dense<0.000000e+00> : vector<16x441xf32>
    %15 = tpu.matmul %13, %14, %cst_12 {dimension_numbers = #tpu.dot_dimension_numbers<[1], [0], [0], [1], [0, 0, 1, 1], [], []>} : vector<16x48xbf16>, vector<48x441xbf16>, vector<16x441xf32> -> vector<16x441xf32>
    %16 = arith.addf %11, %15 : vector<16x441xf32>
    %c3 = arith.constant 3 : index
    %c0_13 = arith.constant 0 : index
    %c0_14 = arith.constant 0 : index
    %17 = vector.load %arg2[%c3, %c0_13, %c0_14] : memref<4x16x48xbf16, #tpu.memory_space<vmem>>, vector<1x16x48xbf16>
    %18 = vector.shape_cast %17 : vector<1x16x48xbf16> to vector<16x48xbf16>
    %19 = vector.extract_strided_slice %2 {offsets = [0, 22], sizes = [48, 441], strides = [1, 1]} : vector<48x463xbf16> to vector<48x441xbf16>
    %cst_15 = arith.constant dense<0.000000e+00> : vector<16x441xf32>
    %20 = tpu.matmul %18, %19, %cst_15 {dimension_numbers = #tpu.dot_dimension_numbers<[1], [0], [0], [1], [0, 0, 1, 1], [], []>} : vector<16x48xbf16>, vector<48x441xbf16>, vector<16x441xf32> -> vector<16x441xf32>
    %21 = arith.addf %16, %20 : vector<16x441xf32>
    %22 = vector.broadcast %0 : vector<16x1xf32> to vector<16x441xf32>
    %23 = arith.addf %21, %22 : vector<16x441xf32>
    %cst_16 = arith.constant 0.000000e+00 : f32
    %24 = vector.broadcast %cst_16 : f32 to vector<16x441xf32>
    %25 = arith.maximumf %23, %24 : vector<16x441xf32>
    %26 = arith.truncf %25 : vector<16x441xf32> to vector<16x441xbf16>
    %c0_17 = arith.constant 0 : index
    %c0_18 = arith.constant 0 : index
    %c0_19 = arith.constant 0 : index
    %27 = vector.load %arg4[%c0_17, %c0_18, %c0_19] : memref<1x16x441xbf16, #tpu.memory_space<vmem>>, vector<1x16x441xbf16>
    %28 = vector.shape_cast %27 : vector<1x16x441xbf16> to vector<16x441xbf16>
    %29 = vector.shape_cast %26 : vector<16x441xbf16> to vector<1x16x441xbf16>
    tpu.vector_store %arg4[%c0_17, %c0_18, %c0_19], %29 {strides = array<i32>} : memref<1x16x441xbf16, #tpu.memory_space<vmem>>, vector<1x16x441xbf16>,
    return
  }
  func.func @transform_0(%arg0: i32) -> (i32, i32, i32) {
    %c0_i32 = arith.constant 0 : i32
    %c0_i32_0 = arith.constant 0 : i32
    %c0_i32_1 = arith.constant 0 : i32
    return %arg0, %c0_i32, %c0_i32_0 : i32, i32, i32
  }
  func.func @transform_1(%arg0: i32) -> (i32, i32, i32) {
    %c0_i32 = arith.constant 0 : i32
    %c0_i32_0 = arith.constant 0 : i32
    %c0_i32_1 = arith.constant 0 : i32
    %c0_i32_2 = arith.constant 0 : i32
    return %c0_i32, %c0_i32_0, %c0_i32_1 : i32, i32, i32
  }
  func.func @transform_2(%arg0: i32) -> (i32, i32) {
    %c0_i32 = arith.constant 0 : i32
    %c0_i32_0 = arith.constant 0 : i32
    %c0_i32_1 = arith.constant 0 : i32
    return %c0_i32, %c0_i32_0 : i32, i32
  }
  func.func @transform_3(%arg0: i32) -> (i32, i32, i32) {
    %c0_i32 = arith.constant 0 : i32
    %c0_i32_0 = arith.constant 0 : i32
    %c0_i32_1 = arith.constant 0 : i32
    return %arg0, %c0_i32, %c0_i32_0 : i32, i32, i32
  }
}

module attributes {stable_mosaic.version = 11 : i64} {
  func.func @kernel(%arg0: i32, %arg1: memref<1x64x111xbf16, #tpu.memory_space<vmem>>, %arg2: memref<4x32x64xbf16, #tpu.memory_space<vmem>>, %arg3: memref<32x1xf32, #tpu.memory_space<vmem>>, %arg4: memref<1x32x100xbf16, #tpu.memory_space<vmem>>) attributes {dimension_semantics = [#tpu.dimension_semantics<parallel>], iteration_bounds = array<i64: 2>, scalar_prefetch = 0 : i64, scratch_operands = 0 : i64, tpu.core_type = #tpu.core_type<tc>, window_params = [{transform_indices = @transform_0, window_bounds = array<i64: 1, 64, 111>}, {pipeline_mode = #tpu.pipeline_mode<synchronous>, transform_indices = @transform_1, window_bounds = array<i64: 4, 32, 64>}, {pipeline_mode = #tpu.pipeline_mode<synchronous>, transform_indices = @transform_2, window_bounds = array<i64: 32, 1>}, {transform_indices = @transform_3, window_bounds = array<i64: 1, 32, 100>}]} {
    %c0 = arith.constant 0 : index
    %c0_0 = arith.constant 0 : index
    %0 = vector.load %arg3[%c0, %c0_0] : memref<32x1xf32, #tpu.memory_space<vmem>>, vector<32x1xf32>
    %c0_1 = arith.constant 0 : index
    %c0_2 = arith.constant 0 : index
    %c0_3 = arith.constant 0 : index
    %1 = vector.load %arg1[%c0_1, %c0_2, %c0_3] : memref<1x64x111xbf16, #tpu.memory_space<vmem>>, vector<1x64x111xbf16>
    %2 = vector.shape_cast %1 : vector<1x64x111xbf16> to vector<64x111xbf16>
    %c0_4 = arith.constant 0 : index
    %c0_5 = arith.constant 0 : index
    %c0_6 = arith.constant 0 : index
    %3 = vector.load %arg2[%c0_4, %c0_5, %c0_6] : memref<4x32x64xbf16, #tpu.memory_space<vmem>>, vector<1x32x64xbf16>
    %4 = vector.shape_cast %3 : vector<1x32x64xbf16> to vector<32x64xbf16>
    %5 = vector.extract_strided_slice %2 {offsets = [0, 0], sizes = [64, 100], strides = [1, 1]} : vector<64x111xbf16> to vector<64x100xbf16>
    %cst = arith.constant dense<0.000000e+00> : vector<32x100xf32>
    %6 = tpu.matmul %4, %5, %cst {dimension_numbers = #tpu.dot_dimension_numbers<[1], [0], [0], [1], [0, 0, 1, 1], [], []>} : vector<32x64xbf16>, vector<64x100xbf16>, vector<32x100xf32> -> vector<32x100xf32>
    %c1 = arith.constant 1 : index
    %c0_7 = arith.constant 0 : index
    %c0_8 = arith.constant 0 : index
    %7 = vector.load %arg2[%c1, %c0_7, %c0_8] : memref<4x32x64xbf16, #tpu.memory_space<vmem>>, vector<1x32x64xbf16>
    %8 = vector.shape_cast %7 : vector<1x32x64xbf16> to vector<32x64xbf16>
    %9 = vector.extract_strided_slice %2 {offsets = [0, 1], sizes = [64, 100], strides = [1, 1]} : vector<64x111xbf16> to vector<64x100xbf16>
    %cst_9 = arith.constant dense<0.000000e+00> : vector<32x100xf32>
    %10 = tpu.matmul %8, %9, %cst_9 {dimension_numbers = #tpu.dot_dimension_numbers<[1], [0], [0], [1], [0, 0, 1, 1], [], []>} : vector<32x64xbf16>, vector<64x100xbf16>, vector<32x100xf32> -> vector<32x100xf32>
    %11 = arith.addf %6, %10 : vector<32x100xf32>
    %c2 = arith.constant 2 : index
    %c0_10 = arith.constant 0 : index
    %c0_11 = arith.constant 0 : index
    %12 = vector.load %arg2[%c2, %c0_10, %c0_11] : memref<4x32x64xbf16, #tpu.memory_space<vmem>>, vector<1x32x64xbf16>
    %13 = vector.shape_cast %12 : vector<1x32x64xbf16> to vector<32x64xbf16>
    %14 = vector.extract_strided_slice %2 {offsets = [0, 10], sizes = [64, 100], strides = [1, 1]} : vector<64x111xbf16> to vector<64x100xbf16>
    %cst_12 = arith.constant dense<0.000000e+00> : vector<32x100xf32>
    %15 = tpu.matmul %13, %14, %cst_12 {dimension_numbers = #tpu.dot_dimension_numbers<[1], [0], [0], [1], [0, 0, 1, 1], [], []>} : vector<32x64xbf16>, vector<64x100xbf16>, vector<32x100xf32> -> vector<32x100xf32>
    %16 = arith.addf %11, %15 : vector<32x100xf32>
    %c3 = arith.constant 3 : index
    %c0_13 = arith.constant 0 : index
    %c0_14 = arith.constant 0 : index
    %17 = vector.load %arg2[%c3, %c0_13, %c0_14] : memref<4x32x64xbf16, #tpu.memory_space<vmem>>, vector<1x32x64xbf16>
    %18 = vector.shape_cast %17 : vector<1x32x64xbf16> to vector<32x64xbf16>
    %19 = vector.extract_strided_slice %2 {offsets = [0, 11], sizes = [64, 100], strides = [1, 1]} : vector<64x111xbf16> to vector<64x100xbf16>
    %cst_15 = arith.constant dense<0.000000e+00> : vector<32x100xf32>
    %20 = tpu.matmul %18, %19, %cst_15 {dimension_numbers = #tpu.dot_dimension_numbers<[1], [0], [0], [1], [0, 0, 1, 1], [], []>} : vector<32x64xbf16>, vector<64x100xbf16>, vector<32x100xf32> -> vector<32x100xf32>
    %21 = arith.addf %16, %20 : vector<32x100xf32>
    %22 = vector.broadcast %0 : vector<32x1xf32> to vector<32x100xf32>
    %23 = arith.addf %21, %22 : vector<32x100xf32>
    %cst_16 = arith.constant 0.000000e+00 : f32
    %24 = vector.broadcast %cst_16 : f32 to vector<32x100xf32>
    %25 = arith.maximumf %23, %24 : vector<32x100xf32>
    %26 = arith.truncf %25 : vector<32x100xf32> to vector<32x100xbf16>
    %c0_17 = arith.constant 0 : index
    %c0_18 = arith.constant 0 : index
    %c0_19 = arith.constant 0 : index
    %27 = vector.load %arg4[%c0_17, %c0_18, %c0_19] : memref<1x32x100xbf16, #tpu.memory_space<vmem>>, vector<1x32x100xbf16>
    %28 = vector.shape_cast %27 : vector<1x32x100xbf16> to vector<32x100xbf16>
    %29 = vector.shape_cast %26 : vector<32x100xbf16> to vector<1x32x100xbf16>
    tpu.vector_store %arg4[%c0_17, %c0_18, %c0_19], %29 {strides = array<i32>} : memref<1x32x100xbf16, #tpu.memory_space<vmem>>, vector<1x32x100xbf16>,
    return
  }
  func.func @transform_0(%arg0: i32) -> (i32, i32, i32) {
    %c0_i32 = arith.constant 0 : i32
    %c0_i32_0 = arith.constant 0 : i32
    %c0_i32_1 = arith.constant 0 : i32
    return %arg0, %c0_i32, %c0_i32_0 : i32, i32, i32
  }
  func.func @transform_1(%arg0: i32) -> (i32, i32, i32) {
    %c0_i32 = arith.constant 0 : i32
    %c0_i32_0 = arith.constant 0 : i32
    %c0_i32_1 = arith.constant 0 : i32
    %c0_i32_2 = arith.constant 0 : i32
    return %c0_i32, %c0_i32_0, %c0_i32_1 : i32, i32, i32
  }
  func.func @transform_2(%arg0: i32) -> (i32, i32) {
    %c0_i32 = arith.constant 0 : i32
    %c0_i32_0 = arith.constant 0 : i32
    %c0_i32_1 = arith.constant 0 : i32
    return %c0_i32, %c0_i32_0 : i32, i32
  }
  func.func @transform_3(%arg0: i32) -> (i32, i32, i32) {
    %c0_i32 = arith.constant 0 : i32
    %c0_i32_0 = arith.constant 0 : i32
    %c0_i32_1 = arith.constant 0 : i32
    return %arg0, %c0_i32, %c0_i32_0 : i32, i32, i32
  }
}

module attributes {stable_mosaic.version = 11 : i64} {
  func.func @kernel(%arg0: i32, %arg1: memref<2592x2xbf16, #tpu.memory_space<vmem>>, %arg2: memref<256x2592xbf16, #tpu.memory_space<vmem>>, %arg3: memref<256x1xf32, #tpu.memory_space<vmem>>, %arg4: memref<4x256xbf16, #tpu.memory_space<vmem>>, %arg5: memref<4x1xf32, #tpu.memory_space<vmem>>, %arg6: memref<4x2xf32, #tpu.memory_space<vmem>>) attributes {dimension_semantics = [#tpu.dimension_semantics<parallel>], iteration_bounds = array<i64: 1>, scalar_prefetch = 0 : i64, scratch_operands = 0 : i64, tpu.core_type = #tpu.core_type<tc>, window_params = [{transform_indices = @transform_0, window_bounds = array<i64: 2592, 2>}, {pipeline_mode = #tpu.pipeline_mode<synchronous>, transform_indices = @transform_1, window_bounds = array<i64: 256, 2592>}, {pipeline_mode = #tpu.pipeline_mode<synchronous>, transform_indices = @transform_2, window_bounds = array<i64: 256, 1>}, {pipeline_mode = #tpu.pipeline_mode<synchronous>, transform_indices = @transform_3, window_bounds = array<i64: 4, 256>}, {pipeline_mode = #tpu.pipeline_mode<synchronous>, transform_indices = @transform_4, window_bounds = array<i64: 4, 1>}, {transform_indices = @transform_5, window_bounds = array<i64: 4, 2>}]} {
    %c0 = arith.constant 0 : index
    %c0_0 = arith.constant 0 : index
    %0 = vector.load %arg2[%c0, %c0_0] : memref<256x2592xbf16, #tpu.memory_space<vmem>>, vector<256x2592xbf16>
    %c0_1 = arith.constant 0 : index
    %c0_2 = arith.constant 0 : index
    %1 = vector.load %arg1[%c0_1, %c0_2] : memref<2592x2xbf16, #tpu.memory_space<vmem>>, vector<2592x2xbf16>
    %cst = arith.constant dense<0.000000e+00> : vector<256x2xf32>
    %2 = tpu.matmul %0, %1, %cst {dimension_numbers = #tpu.dot_dimension_numbers<[1], [0], [0], [1], [0, 0, 1, 1], [], []>} : vector<256x2592xbf16>, vector<2592x2xbf16>, vector<256x2xf32> -> vector<256x2xf32>
    %c0_3 = arith.constant 0 : index
    %c0_4 = arith.constant 0 : index
    %3 = vector.load %arg3[%c0_3, %c0_4] : memref<256x1xf32, #tpu.memory_space<vmem>>, vector<256x1xf32>
    %4 = vector.broadcast %3 : vector<256x1xf32> to vector<256x2xf32>
    %5 = arith.addf %2, %4 : vector<256x2xf32>
    %cst_5 = arith.constant 0.000000e+00 : f32
    %6 = vector.broadcast %cst_5 : f32 to vector<256x2xf32>
    %7 = arith.maximumf %5, %6 : vector<256x2xf32>
    %c0_6 = arith.constant 0 : index
    %c0_7 = arith.constant 0 : index
    %8 = vector.load %arg4[%c0_6, %c0_7] : memref<4x256xbf16, #tpu.memory_space<vmem>>, vector<4x256xbf16>
    %9 = arith.truncf %7 : vector<256x2xf32> to vector<256x2xbf16>
    %cst_8 = arith.constant dense<0.000000e+00> : vector<4x2xf32>
    %10 = tpu.matmul %8, %9, %cst_8 {dimension_numbers = #tpu.dot_dimension_numbers<[1], [0], [0], [1], [0, 0, 1, 1], [], []>} : vector<4x256xbf16>, vector<256x2xbf16>, vector<4x2xf32> -> vector<4x2xf32>
    %c0_9 = arith.constant 0 : index
    %c0_10 = arith.constant 0 : index
    %11 = vector.load %arg5[%c0_9, %c0_10] : memref<4x1xf32, #tpu.memory_space<vmem>>, vector<4x1xf32>
    %12 = vector.broadcast %11 : vector<4x1xf32> to vector<4x2xf32>
    %13 = arith.addf %10, %12 : vector<4x2xf32>
    %c0_11 = arith.constant 0 : index
    %c0_12 = arith.constant 0 : index
    %14 = vector.load %arg6[%c0_11, %c0_12] : memref<4x2xf32, #tpu.memory_space<vmem>>, vector<4x2xf32>
    tpu.vector_store %arg6[%c0_11, %c0_12], %13 {strides = array<i32>} : memref<4x2xf32, #tpu.memory_space<vmem>>, vector<4x2xf32>,
    return
  }
  func.func @transform_0(%arg0: i32) -> (i32, i32) {
    %c0_i32 = arith.constant 0 : i32
    %c0_i32_0 = arith.constant 0 : i32
    return %c0_i32, %arg0 : i32, i32
  }
  func.func @transform_1(%arg0: i32) -> (i32, i32) {
    %c0_i32 = arith.constant 0 : i32
    %c0_i32_0 = arith.constant 0 : i32
    %c0_i32_1 = arith.constant 0 : i32
    return %c0_i32, %c0_i32_0 : i32, i32
  }
  func.func @transform_2(%arg0: i32) -> (i32, i32) {
    %c0_i32 = arith.constant 0 : i32
    %c0_i32_0 = arith.constant 0 : i32
    %c0_i32_1 = arith.constant 0 : i32
    return %c0_i32, %c0_i32_0 : i32, i32
  }
  func.func @transform_3(%arg0: i32) -> (i32, i32) {
    %c0_i32 = arith.constant 0 : i32
    %c0_i32_0 = arith.constant 0 : i32
    %c0_i32_1 = arith.constant 0 : i32
    return %c0_i32, %c0_i32_0 : i32, i32
  }
  func.func @transform_4(%arg0: i32) -> (i32, i32) {
    %c0_i32 = arith.constant 0 : i32
    %c0_i32_0 = arith.constant 0 : i32
    %c0_i32_1 = arith.constant 0 : i32
    return %c0_i32, %c0_i32_0 : i32, i32
  }
  func.func @transform_5(%arg0: i32) -> (i32, i32) {
    %c0_i32 = arith.constant 0 : i32
    %c0_i32_0 = arith.constant 0 : i32
    return %c0_i32, %arg0 : i32, i32
  }
}

</mosaic_0001>

<bundles_post_ra>
// kernel: dqn_forward.3
= control target key start
LH: loop header
LB: loop body
LE: loop exit
PB: predicated region body
PF: predicated region fallthrough
CT: control target
= control target key end

     0   :  { %s920_s12 = smov 0   ;;  %s1130_s0 = inlined_call_operand.vmem [shape: bf16[2,48,463], index: 0, kind: input, shape index: {}]   ;;  %s1131_s1 = inlined_call_operand.vmem [shape: bf16[4,16,48], index: 1, kind: input, shape index: {}]   ;;  %s1132_s2 = inlined_call_operand.vmem [shape: f32[16,1], index: 2, kind: input, shape index: {}]   ;;  %s1133_s3 = inlined_call_operand.vmem [shape: bf16[2,16,441], index: 3, kind: output, shape index: {}]  }
   0x1 LB: > { %s760_s13 = sadd.s32 4294967295, %s894_s12   ;;  %p764_p0 = scmp.ge.s32.totalorder %s894_s12, 1  ;;  %s894_s12 = sphi %s920_s12, %s13_s12  }
   0x2   : > { %p137_p1 = scmp.lt.s32.totalorder %s894_s12, 3 }
   0x4   : > { %p138_p2 = pnand %p764_p0, %p137_p1 }
   0x5   : > { %p161_p3 = scmp.lt.s32.totalorder (!%p138_p2), %s760_s13, 1  ;;  %s896_s18 = smov (!%p138_p2), 127  }
   0x6   : > { %141 = sbr.rel (%p138_p2) target bundleno = 372 (0x174), region = 32  ;;  %s897_s19 = smov (!%p138_p2), 107  }
   0x7   : > { %s898_s20 = smov (!%p138_p2), 106  }
   0xb   : > { %s1137_s13 = smov (!%p161_p3, %s760_s13), 1  ;;  %vm268_vm0 = vcmask 1039360   ;;  %v870_v51 = vld [vmem:[%s1131_s1 + $0x8] sm:$0xff]  ;;  %vm290_vm1 = vcmask 392192   ;;  %vm458_vm2 = vcmask 875520   ;;  %v869_v63 = vld [vmem:[%s1131_s1] sm:$0xff] }
   0xc   : > { %s873_s14 = smul.u32 96, %s1137_s13  ;;  %vm579_vm3 = vcmask 867328   ;;  %s856_s6 = sshll.u32 %s1137_s13, 5  ;;  %vm699_vm4 = vcmask 1043456   ;;  %vm700_vm5 = vcmask 465924  }
   0xd   : > { %s1113_s9 = scalar_lea.vmem %s1133_s3, %s856_s6  ;;  %vm1115_vm6 = vmor %vm700_vm5, %vm699_vm4 }
   0xe   : > { %s934_s17 = scalar_lea.vmem %s1130_s0, %s873_s14 }
   0xf   : > { %v816_v0 = vld [vmem:[%s934_s17 + $0x48] sm:$0xf]  ;;  %v868_v1 = vld [vmem:[%s934_s17 + $0x54] sm:$0xf0]  ;;  %v808_v6 = vld [vmem:[%s934_s17 + $0x40] sm:$0xf] }
  0x10   : > { %v800_v2 = vld [vmem:[%s934_s17 + $0x28] sm:$0xf]  ;;  %v939_v3 = vor.u32 %v868_v1, %v816_v0  ;;  %v864_v4 = vld [vmem:[%s934_s17 + $0x34] sm:$0xf0]  ;;  %v867_v7 = vld [vmem:[%s934_s17 + $0x4c] sm:$0xf0] }
  0x11   : > { %v942_v5 = vor.u32 %v864_v4, %v800_v2  ;;  %v866_v8 = vld [vmem:[%s934_s17 + $0x4c] sm:$0xf]  ;;  %v818_v9 = vld [vmem:[%s934_s17 + $0x58] sm:$0xf0]  ;;  %v952_v10 = vor.u32 %v867_v7, %v808_v6  ;;  %v865_v14 = vld [vmem:[%s934_s17 + $0x44] sm:$0xf] }
  0x12   : > { %264 = vrot.lane.b32.xlu0 %v939_v3, %s896_s18  ;;  %v862_v11 = vld [vmem:[%s934_s17 + $0x2c] sm:$0xf]  ;;  %v802_v12 = vld [vmem:[%s934_s17 + $0x38] sm:$0xf0]  ;;  %v958_v13 = vor.u32 %v866_v8, %v818_v9  ;;  %v810_v15 = vld [vmem:[%s934_s17 + $0x50] sm:$0xf0] }
  0x13   : > { %256 = vrot.lane.b32.xlu1 %v942_v5, %s896_s18  ;;  %260 = vrot.lane.b32.xlu2 %v952_v10, %s896_s18  ;;  %v962_v16 = vor.u32 %v862_v11, %v802_v12  ;;  %v964_v17 = vor.u32 %v865_v14, %v810_v15  ;;  %v784_v18 = vld [vmem:[%s934_s17 + $0x8] sm:$0xf]  ;;  %v860_v19 = vld [vmem:[%s934_s17 + $0x14] sm:$0xf0] }
  0x14   : > { %v858_v20 = vld [vmem:[%s934_s17 + $0xc] sm:$0xf]  ;;  %v786_v21 = vld [vmem:[%s934_s17 + $0x18] sm:$0xf0]  ;;  %v976_v22 = vor.u32 %v860_v19, %v784_v18  ;;  %v792_v23 = vld [vmem:[%s934_s17 + $0x20] sm:$0xf] }
  0x15   : > { %v863_v24 = vld [vmem:[%s934_s17 + $0x2c] sm:$0xf0]  ;;  %v980_v25 = vor.u32 %v858_v20, %v786_v21  ;;  %v861_v27 = vld [vmem:[%s934_s17 + $0x24] sm:$0xf]  ;;  %v794_v28 = vld [vmem:[%s934_s17 + $0x30] sm:$0xf0] }
  0x16   : > { %v982_v26 = vor.u32 %v863_v24, %v792_v23  ;;  %v776_v29 = vld [vmem:[%s934_s17] sm:$0xf]  ;;  %v859_v30 = vld [vmem:[%s934_s17 + $0xc] sm:$0xf0]  ;;  %v994_v31 = vor.u32 %v861_v27, %v794_v28  ;;  %v857_v32 = vld [vmem:[%s934_s17 + $0x4] sm:$0xf] }
  0x17   : > { %v778_v33 = vld [vmem:[%s934_s17 + $0x10] sm:$0xf0]  ;;  %v998_v34 = vor.u32 %v859_v30, %v776_v29  ;;  %v173_v24 = vld [vmem:[%s1132_s2 + $0x8] sm:$0xff] }
  0x18   : > { %v1000_v35 = vor.u32 %v857_v32, %v778_v33  ;;  %v871_v9 = vld [vmem:[%s1131_s1 + $0x10] sm:$0xff]  ;;  %v872_v33 = vld [vmem:[%s1131_s1 + $0x18] sm:$0xff] }
  0x1a   : > { %266 = vrot.lane.b32.xlu0 %v958_v13, %s896_s18 }
  0x1b   : > { %258 = vrot.lane.b32.xlu1 %v962_v16, %s896_s18  ;;  %262 = vrot.lane.b32.xlu2 %v964_v17, %s896_s18 }
  0x22   : > { %248 = vrot.lane.b32.xlu0 %v976_v22, %s896_s18 }
  0x23   : > { %250 = vrot.lane.b32.xlu1 %v980_v25, %s896_s18  ;;  %252 = vrot.lane.b32.xlu2 %v982_v26, %s896_s18 }
  0x2a   : > { %254 = vrot.lane.b32.xlu0 %v994_v31, %s896_s18 }
  0x2b   : > { %244 = vrot.lane.b32.xlu1 %v998_v34, %s896_s18  ;;  %246 = vrot.lane.b32.xlu2 %v1000_v35, %s896_s18 }
  0x32   : > { %454 = vrot.lane.b32.xlu0 %v939_v3, %s897_s19 }
  0x33   : > { %456 = vrot.lane.b32.xlu1 %v958_v13, %s897_s19  ;;  %446 = vrot.lane.b32.xlu2 %v942_v5, %s897_s19 }
  0x3a   : > { %448 = vrot.lane.b32.xlu0 %v962_v16, %s897_s19 }
  0x3b   : > { %450 = vrot.lane.b32.xlu1 %v952_v10, %s897_s19  ;;  %452 = vrot.lane.b32.xlu2 %v964_v17, %s897_s19 }
  0x42   : > { %438 = vrot.lane.b32.xlu0 %v976_v22, %s897_s19 }
  0x43   : > { %440 = vrot.lane.b32.xlu1 %v980_v25, %s897_s19  ;;  %442 = vrot.lane.b32.xlu2 %v982_v26, %s897_s19 }
  0x4a   : > { %444 = vrot.lane.b32.xlu0 %v994_v31, %s897_s19 }
  0x4b   : > { %434 = vrot.lane.b32.xlu1 %v998_v34, %s897_s19  ;;  %436 = vrot.lane.b32.xlu2 %v1000_v35, %s897_s19 }
  0x52   : > { %575 = vrot.lane.b32.xlu0 %v939_v3, %s898_s20 }
  0x53   : > { %577 = vrot.lane.b32.xlu1 %v958_v13, %s898_s20  ;;  %567 = vrot.lane.b32.xlu2 %v942_v5, %s898_s20 }
  0x5a   : > { %569 = vrot.lane.b32.xlu0 %v962_v16, %s898_s20 }
  0x5b   : > { %571 = vrot.lane.b32.xlu1 %v952_v10, %s898_s20  ;;  %573 = vrot.lane.b32.xlu2 %v964_v17, %s898_s20 }
  0x62   : > { %559 = vrot.lane.b32.xlu0 %v976_v22, %s898_s20 }
  0x63   : > { %561 = vrot.lane.b32.xlu1 %v980_v25, %s898_s20  ;;  %563 = vrot.lane.b32.xlu2 %v982_v26, %s898_s20 }
  0x6a   : > { %565 = vrot.lane.b32.xlu0 %v994_v31, %s898_s20 }
  0x6b   : > { %555 = vrot.lane.b32.xlu1 %v998_v34, %s898_s20  ;;  %557 = vrot.lane.b32.xlu2 %v1000_v35, %s898_s20 }
  0x6d   : > { %v261_v36 = vpop.permute.xlu2 %260 }
  0x75   : > { %v263_v37 = vpop.permute.xlu2 %262 }
  0x76   : > { %v275_v38 = vsel %vm268_vm0, %v261_v36, %v263_v37 }
  0x77   : > { %299 = vmatpush.bf16.msra.mxu0 %v275_v38 }
  0x7d   : > { %v253_v39 = vpop.permute.xlu2 %252 }
  0x84   : > { %v265_v40 = vpop.permute.xlu0 %264 }
  0x85   : > { %v257_v41 = vpop.permute.xlu1 %256  ;;  %v276_v42 = vsel %vm268_vm0, %v263_v37, %v265_v40  ;;  %v247_v43 = vpop.permute.xlu2 %246 }
  0x86   : > { %313 = vmatpush.bf16.msra.mxu1 %v276_v42 }
  0x8c   : > { %v267_v44 = vpop.permute.xlu0 %266 }
  0x8d   : > { %v259_v45 = vpop.permute.xlu1 %258  ;;  %341 = vmatpush.bf16.msra.mxu3 %v267_v44  ;;  %v277_v46 = vsel %vm268_vm0, %v265_v40, %v267_v44  ;;  %v1035_v47 = vpop.permute.xlu2 %446 }
  0x8e   : > { %327 = vmatpush.bf16.msra.mxu2 %v277_v46  ;;  %v274_v48 = vsel %vm268_vm0, %v257_v41, %v259_v45 }
  0x91   : > { %342 = vmatpush.bf16.msra.mxu3 %v259_v45 }
  0x92   : > { %328 = vmatpush.bf16.msra.mxu2 %v274_v48 }
  0x94   : > { %v249_v49 = vpop.permute.xlu0 %248 }
  0x95   : > { %v251_v50 = vpop.permute.xlu1 %250  ;;  %v453_v53 = vpop.permute.xlu2 %452  ;;  %v270_v59 = vsel %vm268_vm0, %v247_v43, %v249_v49 }
  0x96   : > { %343 = vmatpush.bf16.msra.mxu3 %v251_v50  ;;  %v271_v52 = vsel %vm268_vm0, %v249_v49, %v251_v50 }
  0x97   : > { %329 = vmatpush.bf16.msra.mxu2 %v271_v52 }
  0x99   : > { %825 = vmatmul.msk.bf16.vlgmr.msra.gmra.mxu3 %vm290_vm1, %v870_v51 }
  0x9a   : > { %417 = vmatpush.bf16.msrb.mxu3 %v958_v13  ;;  %824 = vmatmul.msk.bf16.vlgmr.msra.gmra.mxu2 %vm290_vm1, %v870_v51 }
  0x9b   : > { %403 = vmatpush.bf16.msrb.mxu2 %v939_v3 }
  0x9c   : > { %v255_v54 = vpop.permute.xlu0 %254 }
  0x9d   : > { %v245_v55 = vpop.permute.xlu1 %244  ;;  %v272_v56 = vsel %vm268_vm0, %v253_v39, %v255_v54  ;;  %v273_v57 = vsel %vm268_vm0, %v255_v54, %v257_v41  ;;  %v443_v61 = vpop.permute.xlu2 %442 }
  0x9e   : > { %418 = vmatpush.bf16.msrb.mxu3 %v962_v16  ;;  %300 = vmatpush.bf16.msra.mxu0 %v272_v56  ;;  %v269_v58 = vsel %vm268_vm0, %v245_v55, %v247_v43 }
  0x9f   : > { %404 = vmatpush.bf16.msrb.mxu2 %v942_v5  ;;  %314 = vmatpush.bf16.msra.mxu1 %v273_v57 }
  0xa2   : > { %419 = vmatpush.bf16.msrb.mxu3 %v980_v25  ;;  %301 = vmatpush.bf16.msra.mxu0 %v269_v58  ;;  %v899_v25 = vmov 0  }
  0xa3   : > { %405 = vmatpush.bf16.msrb.mxu2 %v976_v22  ;;  %315 = vmatpush.bf16.msra.mxu1 %v270_v59  ;;  %v172_v22 = vld [vmem:[%s1132_s2] sm:$0xff] }
  0xa4   : > { %v455_v60 = vpop.permute.xlu0 %454  ;;  %886 = vset.pattern.permute.xlu0 %v899_v25  ;;  %887 = vset.pattern.permute.xlu1 %v899_v25 }
  0xa5   : > { %v457_v62 = vpop.permute.xlu1 %456  ;;  %822 = vmatmul.msk.bf16.vlgmr.msra.gmra.mxu0 %vm290_vm1, %v870_v51  ;;  %v466_v1 = vsel %vm458_vm2, %v453_v53, %v455_v60  ;;  %v437_v6 = vpop.permute.xlu2 %436  ;;  %670 = vperm.xlu0 %886, %v172_v22  }
  0xa6   : > { %375 = vmatpush.bf16.msrb.mxu0 %v952_v10  ;;  %823 = vmatmul.msk.bf16.vlgmr.msra.gmra.mxu1 %vm290_vm1, %v870_v51  ;;  %v467_v0 = vsel %vm458_vm2, %v455_v60, %v457_v62 }
  0xa7   : > { %389 = vmatpush.bf16.msrb.mxu1 %v964_v17  ;;  %530 = vmatpush.bf16.msra.mxu3 %v457_v62 }
  0xa8   : > { %516 = vmatpush.bf16.msra.mxu2 %v467_v0  ;;  %675 = vperm.xlu1 %887, %v173_v24  }
  0xa9   : > { %833 = vmatmul.msk.bf16.vlgmr.msrb.gmra.mxu3 %vm290_vm1, %v869_v63 }
  0xaa   : > { %376 = vmatpush.bf16.msrb.mxu0 %v982_v26  ;;  %832 = vmatmul.msk.bf16.vlgmr.msrb.gmra.mxu2 %vm290_vm1, %v869_v63 }
  0xab   : > { %390 = vmatpush.bf16.msrb.mxu1 %v994_v31 }
  0xac   : > { %v449_v2 = vpop.permute.xlu0 %448 }
  0xad   : > { %v451_v3 = vpop.permute.xlu1 %450  ;;  %531 = vmatpush.bf16.msra.mxu3 %v449_v2  ;;  %v464_v4 = vsel %vm458_vm2, %v1035_v47, %v449_v2  ;;  %v568_v11 = vpop.permute.xlu2 %567 }
  0xae   : > { %377 = vmatpush.bf16.msrb.mxu0 %v998_v34  ;;  %v465_v5 = vsel %vm458_vm2, %v451_v3, %v453_v53  ;;  %517 = vmatpush.bf16.msra.mxu2 %v464_v4 }
  0xaf   : > { %391 = vmatpush.bf16.msrb.mxu1 %v1000_v35 }
  0xb2   : > { %488 = vmatpush.bf16.msra.mxu0 %v465_v5 }
  0xb3   : > { %502 = vmatpush.bf16.msra.mxu1 %v466_v1 }
  0xb4   : > { %v439_v7 = vpop.permute.xlu0 %438 }
  0xb5   : > { %v441_v8 = vpop.permute.xlu1 %440  ;;  %830 = vmatmul.msk.bf16.vlgmr.msrb.gmra.mxu0 %vm290_vm1, %v869_v63  ;;  %v460_v17 = vsel %vm458_vm2, %v437_v6, %v439_v7  ;;  %v574_v18 = vpop.permute.xlu2 %573 }
  0xb6   : > { %831 = vmatmul.msk.bf16.vlgmr.msrb.gmra.mxu1 %vm290_vm1, %v869_v63  ;;  %532 = vmatpush.bf16.msra.mxu3 %v441_v8  ;;  %v461_v10 = vsel %vm458_vm2, %v439_v7, %v441_v8 }
  0xb7   : > { %518 = vmatpush.bf16.msra.mxu2 %v461_v10 }
  0xb9   : > { %843 = vmatmul.msk.bf16.vlgmr.msra.gmra.mxu3 %vm290_vm1, %v871_v9 }
  0xba   : > { %842 = vmatmul.msk.bf16.vlgmr.msra.gmra.mxu2 %vm290_vm1, %v871_v9 }
  0xbc   : > { %v445_v12 = vpop.permute.xlu0 %444 }
  0xbd   : > { %v435_v13 = vpop.permute.xlu1 %434  ;;  %v462_v14 = vsel %vm458_vm2, %v443_v61, %v445_v12  ;;  %v463_v15 = vsel %vm458_vm2, %v445_v12, %v1035_v47  ;;  %v564_v30 = vpop.permute.xlu2 %563 }
  0xbe   : > { %489 = vmatpush.bf16.msra.mxu0 %v462_v14  ;;  %503 = vmatpush.bf16.msra.mxu1 %v463_v15  ;;  %v459_v16 = vsel %vm458_vm2, %v435_v13, %v437_v6 }
  0xc2   : > { %490 = vmatpush.bf16.msra.mxu0 %v459_v16  ;;  %504 = vmatpush.bf16.msra.mxu1 %v460_v17 }
  0xc4   : > { %v576_v19 = vpop.permute.xlu0 %575 }
  0xc5   : > { %v578_v20 = vpop.permute.xlu1 %577  ;;  %v587_v21 = vsel %vm579_vm3, %v574_v18, %v576_v19  ;;  %840 = vmatmul.msk.bf16.vlgmr.msra.gmra.mxu0 %vm290_vm1, %v871_v9  ;;  %v558_v39 = vpop.permute.xlu2 %557 }
  0xc6   : > { %841 = vmatmul.msk.bf16.vlgmr.msra.gmra.mxu1 %vm290_vm1, %v871_v9  ;;  %v588_v23 = vsel %vm579_vm3, %v576_v19, %v578_v20  ;;  %651 = vmatpush.bf16.msrb.mxu3 %v578_v20 }
  0xc7   : > { %623 = vmatpush.bf16.msrb.mxu1 %v587_v21  ;;  %637 = vmatpush.bf16.msrb.mxu2 %v588_v23 }
  0xcc   : > { %v570_v26 = vpop.permute.xlu0 %569 }
  0xcd   : > { %v572_v27 = vpop.permute.xlu1 %571  ;;  %652 = vmatpush.bf16.msrb.mxu3 %v570_v26  ;;  %v585_v28 = vsel %vm579_vm3, %v568_v11, %v570_v26 }
  0xce   : > { %v586_v29 = vsel %vm579_vm3, %v572_v27, %v574_v18  ;;  %638 = vmatpush.bf16.msrb.mxu2 %v585_v28 }
  0xcf   : > { %609 = vmatpush.bf16.msrb.mxu0 %v586_v29 }
  0xd4   : > { %v560_v31 = vpop.permute.xlu0 %559 }
  0xd5   : > { %v562_v32 = vpop.permute.xlu1 %561  ;;  %v581_v41 = vsel %vm579_vm3, %v558_v39, %v560_v31 }
  0xd6   : > { %653 = vmatpush.bf16.msrb.mxu3 %v562_v32  ;;  %v582_v34 = vsel %vm579_vm3, %v560_v31, %v562_v32 }
  0xd7   : > { %639 = vmatpush.bf16.msrb.mxu2 %v582_v34 }
  0xd9   : > { %853 = vmatmul.msk.bf16.vlgmr.msrb.gmra.mxu3 %vm290_vm1, %v872_v33 }
  0xda   : > { %852 = vmatmul.msk.bf16.vlgmr.msrb.gmra.mxu2 %vm290_vm1, %v872_v33 }
  0xdc   : > { %v566_v35 = vpop.permute.xlu0 %565 }
  0xdd   : > { %v583_v36 = vsel %vm579_vm3, %v564_v30, %v566_v35  ;;  %v584_v37 = vsel %vm579_vm3, %v566_v35, %v568_v11  ;;  %v556_v38 = vpop.permute.xlu1 %555 }
  0xde   : > { %610 = vmatpush.bf16.msrb.mxu0 %v583_v36  ;;  %624 = vmatpush.bf16.msrb.mxu1 %v584_v37  ;;  %v580_v40 = vsel %vm579_vm3, %v556_v38, %v558_v39 }
  0xe2   : > { %611 = vmatpush.bf16.msrb.mxu0 %v580_v40  ;;  %625 = vmatpush.bf16.msrb.mxu1 %v581_v41 }
  0xe5   : > { %850 = vmatmul.msk.bf16.vlgmr.msrb.gmra.mxu0 %vm290_vm1, %v872_v33  ;;  %851 = vmatmul.msk.bf16.vlgmr.msrb.gmra.mxu1 %vm290_vm1, %v872_v33 }
 0x117   : > { %v671_v7 = vpop.permute.xlu0 %670 }
 0x11a   : > { %v676_v30 = vpop.permute.xlu1 %675 }
 0x11c   : > { %v345_v42 = vpop.f32.mrf.mxu3 }
 0x11d   : > { %v331_v43 = vpop.f32.mrf.mxu2 }
 0x122   : > { %v303_v44 = vpop.f32.mrf.mxu0 }
 0x123   : > { %v317_v45 = vpop.f32.mrf.mxu1 }
 0x124   : > { %v347_v46 = vpop.f32.mrf.mxu3 }
 0x125   : > { %v333_v47 = vpop.f32.mrf.mxu2 }
 0x12a   : > { %v305_v48 = vpop.f32.mrf.mxu0 }
 0x12b   : > { %v319_v49 = vpop.f32.mrf.mxu1 }
 0x12c   : > { %v421_v50 = vpop.f32.mrf.mxu3 }
 0x12d   : > { %v407_v51 = vpop.f32.mrf.mxu2  ;;  %v422_v0 = vadd.f32 %v421_v50, %v345_v42 }
 0x12e   : > { %v408_v1 = vadd.f32 %v407_v51, %v331_v43 }
 0x132   : > { %v379_v52 = vpop.f32.mrf.mxu0 }
 0x133   : > { %v393_v53 = vpop.f32.mrf.mxu1  ;;  %v380_v11 = vadd.f32 %v379_v52, %v303_v44 }
 0x134   : > { %v423_v54 = vpop.f32.mrf.mxu3  ;;  %v394_v12 = vadd.f32 %v393_v53, %v317_v45 }
 0x135   : > { %v409_v55 = vpop.f32.mrf.mxu2  ;;  %v424_v15 = vadd.f32 %v423_v54, %v347_v46 }
 0x136   : > { %v410_v19 = vadd.f32 %v409_v55, %v333_v47 }
 0x13a   : > { %v381_v56 = vpop.f32.mrf.mxu0 }
 0x13b   : > { %v395_v57 = vpop.f32.mrf.mxu1  ;;  %v382_v35 = vadd.f32 %v381_v56, %v305_v48 }
 0x13c   : > { %v534_v58 = vpop.f32.mrf.mxu3  ;;  %v396_v37 = vadd.f32 %v395_v57, %v319_v49 }
 0x13d   : > { %v520_v59 = vpop.f32.mrf.mxu2  ;;  %v542_v4 = vadd.f32 %v534_v58, %v422_v0 }
 0x13e   : > { %v541_v5 = vadd.f32 %v520_v59, %v408_v1 }
 0x142   : > { %v492_v60 = vpop.f32.mrf.mxu0 }
 0x143   : > { %v506_v61 = vpop.f32.mrf.mxu1  ;;  %v539_v16 = vadd.f32 %v492_v60, %v380_v11 }
 0x144   : > { %v536_v62 = vpop.f32.mrf.mxu3  ;;  %v540_v17 = vadd.f32 %v506_v61, %v394_v12 }
 0x145   : > { %v522_v63 = vpop.f32.mrf.mxu2  ;;  %v546_v23 = vadd.f32 %v536_v62, %v424_v15 }
 0x146   : > { %v545_v27 = vadd.f32 %v522_v63, %v410_v19 }
 0x14a   : > { %v494_v2 = vpop.f32.mrf.mxu0 }
 0x14b   : > { %v508_v3 = vpop.f32.mrf.mxu1  ;;  %v543_v42 = vadd.f32 %v494_v2, %v382_v35 }
 0x14c   : > { %v544_v43 = vadd.f32 %v508_v3, %v396_v37 }
 0x15c   : > { %v655_v6 = vpop.f32.mrf.mxu3 }
 0x15d   : > { %v663_v8 = vadd.f32 %v655_v6, %v542_v4  ;;  %v641_v9 = vpop.f32.mrf.mxu2 }
 0x15e   : > { %v662_v10 = vadd.f32 %v641_v9, %v541_v5 }
 0x15f   : > { %v681_v13 = vadd.f32 %v671_v7, %v663_v8 }
 0x160   : > { %v680_v14 = vadd.f32 %v671_v7, %v662_v10 }
 0x161   : > { %v689_v18 = vmax.f32 %v681_v13, 0.0 }
 0x162   : > { %v688_v20 = vmax.f32 %v680_v14, 0.0  ;;  %v613_v21 = vpop.f32.mrf.mxu0  ;;  %v627_v22 = vpop.f32.mrf.mxu1 }
 0x163   : > { %v660_v25 = vadd.f32 %v613_v21, %v539_v16  ;;  %v661_v26 = vadd.f32 %v627_v22, %v540_v17 }
 0x164   : > { %v695_v28 = vpack.c.bf16 %v689_v18, %v688_v20  ;;  %v657_v29 = vpop.f32.mrf.mxu3 }
 0x165   : > { %v678_v31 = vadd.f32 %v671_v7, %v660_v25  ;;  %v679_v32 = vadd.f32 %v671_v7, %v661_v26  ;;  %v667_v33 = vadd.f32 %v657_v29, %v546_v23  ;;  %v643_v34 = vpop.f32.mrf.mxu2 }
 0x166   : > { %702 = vst.msk [vmem:[%s1113_s9 + $0x8] sm:$0xff] %vm1115_vm6, %v695_v28  ;;  %v666_v36 = vadd.f32 %v643_v34, %v545_v27 }
 0x167   : > { %v686_v38 = vmax.f32 %v678_v31, 0.0  ;;  %v687_v39 = vmax.f32 %v679_v32, 0.0  ;;  %v685_v40 = vadd.f32 %v676_v30, %v667_v33 }
 0x168   : > { %v684_v41 = vadd.f32 %v676_v30, %v666_v36 }
 0x169   : > { %v694_v44 = vpack.c.bf16 %v687_v39, %v686_v38  ;;  %v693_v45 = vmax.f32 %v685_v40, 0.0 }
 0x16a   : > { %v692_v46 = vmax.f32 %v684_v41, 0.0  ;;  %v615_v47 = vpop.f32.mrf.mxu0  ;;  %v629_v50 = vpop.f32.mrf.mxu1 }
 0x16b   : > { %698 = vst [vmem:[%s1113_s9] sm:$0xff] %v694_v44  ;;  %v664_v48 = vadd.f32 %v615_v47, %v543_v42  ;;  %v665_v51 = vadd.f32 %v629_v50, %v544_v43 }
 0x16c   : > { %v697_v52 = vpack.c.bf16 %v693_v45, %v692_v46 }
 0x16d   : > { %v682_v53 = vadd.f32 %v676_v30, %v664_v48  ;;  %v683_v54 = vadd.f32 %v676_v30, %v665_v51 }
 0x16e   : > { %704 = vst.msk [vmem:[%s1113_s9 + $0x18] sm:$0xff] %vm1115_vm6, %v697_v52 }
 0x16f   : > { %v690_v49 = vmax.f32 %v682_v53, 0.0  ;;  %v691_v55 = vmax.f32 %v683_v54, 0.0 }
 0x171   : > { %v696_v56 = vpack.c.bf16 %v691_v55, %v690_v49 }
 0x173   : > { %703 = vst [vmem:[%s1113_s9 + $0x10] sm:$0xff] %v696_v56 }
 0x174 PF: > { %s13_s12 = sadd.s32 1, %s894_s12  }
 0x175   : > { %p10_p4 = scmp.ge.s32.totalorder %s13_s12, 4  }
 0x177   :  { %12 = sbr.rel (!%p10_p4) target bundleno = 1 (0x1), region = 65 }

// kernel: dqn_forward.4
= control target key start
LH: loop header
LB: loop body
LE: loop exit
PB: predicated region body
PF: predicated region fallthrough
CT: control target
= control target key end

     0   :  { %s644_s12 = smov 0   ;;  %s719_s0 = inlined_call_operand.vmem [shape: bf16[2,64,111], index: 0, kind: input, shape index: {}]   ;;  %s720_s1 = inlined_call_operand.vmem [shape: bf16[4,32,64], index: 1, kind: input, shape index: {}]   ;;  %s721_s2 = inlined_call_operand.vmem [shape: f32[32,1], index: 2, kind: input, shape index: {}]   ;;  %s722_s3 = inlined_call_operand.vmem [shape: bf16[2,32,100], index: 3, kind: output, shape index: {}]  }
   0x1 LB: > { %s504_s13 = sadd.s32 4294967295, %s618_s12   ;;  %p508_p0 = scmp.ge.s32.totalorder %s618_s12, 1  ;;  %s618_s12 = sphi %s644_s12, %s13_s12  }
   0x2   : > { %p137_p1 = scmp.lt.s32.totalorder %s618_s12, 3 }
   0x4   : > { %p138_p2 = pnand %p508_p0, %p137_p1 }
   0x5   : > { %p161_p3 = scmp.lt.s32.totalorder (!%p138_p2), %s504_s13, 1  ;;  %s620_s18 = smov (!%p138_p2), 127  }
   0x6   : > { %141 = sbr.rel (%p138_p2) target bundleno = 324 (0x144), region = 32  ;;  %s621_s19 = smov (!%p138_p2), 118  }
   0x7   : > { %s622_s20 = smov (!%p138_p2), 117  }
   0xb   : > { %s724_s13 = smov (!%p161_p3, %s504_s13), 1  ;;  %vm235_vm0 = vcmask 523264   ;;  %v589_v5 = vld [vmem:[%s720_s1] sm:$0xff]  ;;  %v590_v10 = vld [vmem:[%s720_s1 + $0x8] sm:$0xff]  ;;  %v623_v15 = vmov 0   ;;  %v174_v17 = vld [vmem:[%s721_s2 + $0x10] sm:$0xff] }
   0xc   : > { %s583_s14 = sshll.u32 %s724_s13, 5  ;;  %v172_v14 = vld [vmem:[%s721_s2] sm:$0xff]  ;;  %609 = vset.pattern.permute.xlu0 %v623_v15  ;;  %v173_v16 = vld [vmem:[%s721_s2 + $0x8] sm:$0xff]  ;;  %v591_v18 = vld [vmem:[%s720_s1 + $0x10] sm:$0xff]  ;;  %610 = vset.pattern.permute.xlu1 %v623_v15  ;;  %vm444_vm1 = vcmask 814080  }
   0xd   : > { %s165_s17 = scalar_lea.vmem %s719_s0, %s583_s14  ;;  %611 = vset.pattern.permute.xlu2 %v623_v15  ;;  %v175_v21 = vld [vmem:[%s721_s2 + $0x18] sm:$0xff]  ;;  %v593_v24 = vld [vmem:[%s720_s1 + $0x20] sm:$0xff]  ;;  %v595_v25 = vld [vmem:[%s720_s1 + $0x30] sm:$0xff] }
   0xe   : > { %v588_v0 = vld [vmem:[%s165_s17 + $0x18] sm:$0xff]  ;;  %v587_v1 = vld [vmem:[%s165_s17 + $0x10] sm:$0xff]  ;;  %v586_v2 = vld [vmem:[%s165_s17 + $0x8] sm:$0xff] }
   0xf   : > { %229 = vrot.lane.b32.xlu1 %v588_v0, %s620_s18  ;;  %321 = vrot.lane.b32.xlu0 %v588_v0, %s621_s19  ;;  %v585_v3 = vld [vmem:[%s165_s17] sm:$0xff]  ;;  %v592_v26 = vld [vmem:[%s720_s1 + $0x18] sm:$0xff] }
  0x10   : > { %375 = vrot.lane.b32.xlu2 %v587_v1, %s622_s20  ;;  %285 = vmatpush.bf16.msra.mxu1 %v588_v0  ;;  %v594_v27 = vld [vmem:[%s720_s1 + $0x28] sm:$0xff]  ;;  %v596_v28 = vld [vmem:[%s720_s1 + $0x38] sm:$0xff] }
  0x14   : > { %286 = vmatpush.bf16.msra.mxu1 %v587_v1 }
  0x17   : > { %377 = vrot.lane.b32.xlu0 %v588_v0, %s622_s20  ;;  %319 = vrot.lane.b32.xlu1 %v587_v1, %s621_s19 }
  0x18   : > { %227 = vrot.lane.b32.xlu2 %v587_v1, %s620_s18  ;;  %287 = vmatpush.bf16.msra.mxu1 %v586_v2 }
  0x1c   : > { %288 = vmatpush.bf16.msra.mxu1 %v585_v3 }
  0x1f   : > { %373 = vrot.lane.b32.xlu1 %v586_v2, %s622_s20  ;;  %317 = vrot.lane.b32.xlu0 %v586_v2, %s621_s19 }
  0x20   : > { %225 = vrot.lane.b32.xlu2 %v586_v2, %s620_s18  ;;  %551 = vmatmul.msk.bf16.vlgmr.msra.gmra.mxu1 %vm235_vm0, %v589_v5 }
  0x27   : > { %371 = vrot.lane.b32.xlu1 %v585_v3, %s622_s20  ;;  %315 = vrot.lane.b32.xlu0 %v585_v3, %s621_s19  ;;  %s584_s20 = sshll.u32 %s724_s13, 4 }
  0x28   : > { %223 = vrot.lane.b32.xlu2 %v585_v3, %s620_s18  ;;  %s706_s23 = scalar_lea.vmem %s722_s3, %s584_s20 }
  0x2f   : > { %414 = vperm.xlu0 %609, %v172_v14   ;;  %419 = vperm.xlu1 %610, %v173_v16  }
  0x30   : > { %552 = vmatmul.msk.bf16.gmra.mxu1 %vm235_vm0, %v590_v10  ;;  %424 = vperm.xlu2 %611, %v174_v17  }
  0x37   : > { %429 = vperm.xlu1 %610, %v175_v21  }
  0x6a   : > { %v376_v4 = vpop.permute.xlu2 %375 }
  0x72   : > { %v228_v6 = vpop.permute.xlu2 %227 }
  0x7a   : > { %v226_v9 = vpop.permute.xlu2 %225 }
  0x81   : > { %v230_v7 = vpop.permute.xlu1 %229  ;;  %v322_v8 = vpop.permute.xlu0 %321 }
  0x82   : > { %337 = vmatpush.bf16.msra.mxu2 %v322_v8  ;;  %246 = vmatpush.bf16.msra.mxu0 %v230_v7  ;;  %v224_v13 = vpop.permute.xlu2 %223 }
  0x86   : > { %247 = vmatpush.bf16.msra.mxu0 %v228_v6 }
  0x89   : > { %v378_v11 = vpop.permute.xlu0 %377  ;;  %v320_v12 = vpop.permute.xlu1 %319 }
  0x8a   : > { %393 = vmatpush.bf16.msra.mxu3 %v378_v11  ;;  %338 = vmatpush.bf16.msra.mxu2 %v320_v12  ;;  %v425_v57 = vpop.permute.xlu2 %424 }
  0x8b   : > { %248 = vmatpush.bf16.msra.mxu0 %v226_v9 }
  0x8e   : > { %394 = vmatpush.bf16.msra.mxu3 %v376_v4 }
  0x8f   : > { %249 = vmatpush.bf16.msra.mxu0 %v224_v13 }
  0x91   : > { %v374_v19 = vpop.permute.xlu1 %373  ;;  %v318_v20 = vpop.permute.xlu0 %317 }
  0x92   : > { %339 = vmatpush.bf16.msra.mxu2 %v318_v20  ;;  %395 = vmatpush.bf16.msra.mxu3 %v374_v19 }
  0x93   : > { %541 = vmatmul.msk.bf16.vlgmr.msra.gmra.mxu0 %vm235_vm0, %v591_v18 }
  0x99   : > { %v372_v22 = vpop.permute.xlu1 %371  ;;  %v316_v23 = vpop.permute.xlu0 %315 }
  0x9a   : > { %340 = vmatpush.bf16.msra.mxu2 %v316_v23  ;;  %396 = vmatpush.bf16.msra.mxu3 %v372_v22 }
  0x9d   : > { %565 = vmatmul.msk.bf16.vlgmr.msra.gmra.mxu2 %vm235_vm0, %v593_v24  ;;  %579 = vmatmul.msk.bf16.vlgmr.msra.gmra.mxu3 %vm235_vm0, %v595_v25  ;;  %v290_v30 = vpop.f32.mrf.mxu1 }
  0xa1   : > { %v415_v37 = vpop.permute.xlu0 %414  ;;  %v420_v48 = vpop.permute.xlu1 %419 }
  0xa3   : > { %542 = vmatmul.msk.bf16.gmra.mxu0 %vm235_vm0, %v592_v26 }
  0xa5   : > { %v292_v33 = vpop.f32.mrf.mxu1 }
  0xa9   : > { %v430_v5 = vpop.permute.xlu1 %429 }
  0xad   : > { %566 = vmatmul.msk.bf16.gmra.mxu2 %vm235_vm0, %v594_v27  ;;  %580 = vmatmul.msk.bf16.gmra.mxu3 %vm235_vm0, %v596_v28  ;;  %v295_v45 = vpop.f32.mrf.mxu1 }
  0xb5   : > { %v297_v60 = vpop.f32.mrf.mxu1 }
 0x110   : > { %v251_v29 = vpop.f32.mrf.mxu0 }
 0x111   : > { %v291_v31 = vadd.f32 %v290_v30, %v251_v29 }
 0x118   : > { %v253_v32 = vpop.f32.mrf.mxu0 }
 0x119   : > { %v293_v40 = vadd.f32 %v292_v33, %v253_v32 }
 0x120   : > { %v342_v34 = vpop.f32.mrf.mxu2  ;;  %v398_v35 = vpop.f32.mrf.mxu3 }
 0x121   : > { %v352_v36 = vadd.f32 %v342_v34, %v291_v31  ;;  %v256_v47 = vpop.f32.mrf.mxu0 }
 0x122   : > { %v296_v50 = vadd.f32 %v295_v45, %v256_v47 }
 0x123   : > { %v408_v38 = vadd.f32 %v398_v35, %v352_v36 }
 0x125   : > { %v432_v39 = vadd.f32 %v415_v37, %v408_v38 }
 0x127   : > { %v436_v41 = vmax.f32 %v432_v39, 0.0 }
 0x128   : > { %v344_v42 = vpop.f32.mrf.mxu2  ;;  %v400_v43 = vpop.f32.mrf.mxu3 }
 0x129   : > { %v440_v44 = vpack.c.bf16 %v436_v41, %v436_v41  ;;  %v353_v46 = vadd.f32 %v344_v42, %v293_v40  ;;  %v258_v59 = vpop.f32.mrf.mxu0 }
 0x12a   : > { %v298_v62 = vadd.f32 %v297_v60, %v258_v59 }
 0x12b   : > { %445 = vst.msk [vmem:[%s706_s23] sm:$0xf] %vm444_vm1, %v440_v44  ;;  %v409_v49 = vadd.f32 %v400_v43, %v353_v46 }
 0x12d   : > { %v433_v51 = vadd.f32 %v420_v48, %v409_v49 }
 0x12f   : > { %v437_v52 = vmax.f32 %v433_v51, 0.0 }
 0x130   : > { %v347_v53 = vpop.f32.mrf.mxu2  ;;  %v403_v54 = vpop.f32.mrf.mxu3 }
 0x131   : > { %v441_v55 = vpack.c.bf16 %v437_v52, %v437_v52  ;;  %v354_v56 = vadd.f32 %v347_v53, %v296_v50 }
 0x133   : > { %446 = vst.msk [vmem:[%s706_s23 + $0x4] sm:$0xf] %vm444_vm1, %v441_v55  ;;  %v410_v58 = vadd.f32 %v403_v54, %v354_v56 }
 0x135   : > { %v434_v61 = vadd.f32 %v425_v57, %v410_v58 }
 0x137   : > { %v438_v63 = vmax.f32 %v434_v61, 0.0 }
 0x138   : > { %v349_v0 = vpop.f32.mrf.mxu2  ;;  %v405_v3 = vpop.f32.mrf.mxu3 }
 0x139   : > { %v442_v1 = vpack.c.bf16 %v438_v63, %v438_v63  ;;  %v355_v2 = vadd.f32 %v349_v0, %v298_v62 }
 0x13b   : > { %447 = vst.msk [vmem:[%s706_s23 + $0x8] sm:$0xf] %vm444_vm1, %v442_v1  ;;  %v411_v4 = vadd.f32 %v405_v3, %v355_v2 }
 0x13d   : > { %v435_v6 = vadd.f32 %v430_v5, %v411_v4 }
 0x13f   : > { %v439_v7 = vmax.f32 %v435_v6, 0.0 }
 0x141   : > { %v443_v8 = vpack.c.bf16 %v439_v7, %v439_v7 }
 0x143   : > { %448 = vst.msk [vmem:[%s706_s23 + $0xc] sm:$0xf] %vm444_vm1, %v443_v8 }
 0x144 PF: > { %s13_s12 = sadd.s32 1, %s618_s12  }
 0x145   : > { %p10_p4 = scmp.ge.s32.totalorder %s13_s12, 4  }
 0x147   :  { %12 = sbr.rel (!%p10_p4) target bundleno = 1 (0x1), region = 65 }

// kernel: dqn_forward.5
= control target key start
LH: loop header
LB: loop body
LE: loop exit
PB: predicated region body
PF: predicated region fallthrough
CT: control target
= control target key end

     0   :  { %v8086_v0 = vmov 0   ;;  %vm3541_vm0 = vcmask 261120   ;;  %vm5546_vm1 = vcmask 11264   ;;  %s11733_s2 = inlined_call_operand.vmem [shape: f32[256,1], index: 2, kind: input, shape index: {}]   ;;  %s11734_s0 = inlined_call_operand.vmem [shape: bf16[2592,2], index: 0, kind: input, shape index: {}]   ;;  %s11735_s1 = inlined_call_operand.vmem [shape: bf16[256,2592], index: 1, kind: input, shape index: {}]   ;;  %s11736_s4 = inlined_call_operand.vmem [shape: f32[4,1], index: 4, kind: input, shape index: {}]   ;;  %s11737_s3 = inlined_call_operand.vmem [shape: bf16[4,256], index: 3, kind: input, shape index: {}]   ;;  %s11738_s5 = inlined_call_operand.vmem [shape: f32[4,2], index: 5, kind: output, shape index: {}]  }
   0x1   :  { %8084 = vset.pattern.permute.xlu1 %v8086_v0  ;;  %8083 = vset.pattern.permute.xlu0 %v8086_v0  ;;  %v727_v1 = vld [vmem:[%s11733_s2 + $0xf0] sm:$0xff]  ;;  %v725_v2 = vld [vmem:[%s11733_s2 + $0xe0] sm:$0xff]  ;;  %v7903_v3 = vld [vmem:[%s11734_s0 + $0x38] sm:$0xff] }
   0x2   :  { %881 = vperm.xlu0 %8083, %v727_v1   ;;  %871 = vperm.xlu1 %8084, %v725_v2   ;;  %v7902_v4 = vld [vmem:[%s11734_s0 + $0x30] sm:$0xff]  ;;  %v728_v6 = vld [vmem:[%s11733_s2 + $0xf8] sm:$0xff]  ;;  %v726_v7 = vld [vmem:[%s11733_s2 + $0xe8] sm:$0xff] }
   0x3   :  { %3590 = vmatpush.bf16.msra.mxu0 %v7903_v3  ;;  %8058 = vmatpush.bf16.msra.mxu1 %v7903_v3  ;;  %v711_v5 = vld [vmem:[%s11733_s2 + $0x70] sm:$0xff]  ;;  %v7901_v8 = vld [vmem:[%s11734_s0 + $0x28] sm:$0xff]  ;;  %v7900_v9 = vld [vmem:[%s11734_s0 + $0x20] sm:$0xff] }
   0x4   :  { %8059 = vmatpush.bf16.msra.mxu2 %v7903_v3  ;;  %8060 = vmatpush.bf16.msra.mxu3 %v7903_v3  ;;  %v712_v10 = vld [vmem:[%s11733_s2 + $0x78] sm:$0xff]  ;;  %v723_v12 = vld [vmem:[%s11733_s2 + $0xd0] sm:$0xff]  ;;  %v709_v15 = vld [vmem:[%s11733_s2 + $0x60] sm:$0xff] }
   0x5   :  { %8085 = vset.pattern.permute.xlu2 %v8086_v0  ;;  %v724_v11 = vld [vmem:[%s11733_s2 + $0xd8] sm:$0xff]  ;;  %v7898_v14 = vld [vmem:[%s11734_s0 + $0x10] sm:$0xff]  ;;  %v721_v16 = vld [vmem:[%s11733_s2 + $0xc0] sm:$0xff] }
   0x6   :  { %801 = vperm.xlu2 %8085, %v711_v5   ;;  %v7899_v13 = vld [vmem:[%s11734_s0 + $0x18] sm:$0xff]  ;;  %v710_v17 = vld [vmem:[%s11733_s2 + $0x68] sm:$0xff]  ;;  %v7896_v19 = vld [vmem:[%s11734_s0] sm:$0xff] }
   0x7   :  { %3591 = vmatpush.bf16.msra.mxu0 %v7902_v4  ;;  %8061 = vmatpush.bf16.msra.mxu1 %v7902_v4  ;;  %v7897_v18 = vld [vmem:[%s11734_s0 + $0x8] sm:$0xff]  ;;  %v5554_v20 = vld [vmem:[%s11735_s1] sm:$0xf]  ;;  %v7570_v21 = vld [vmem:[%s11735_s1 + $0x50] sm:$0xf0] }
   0x8   :  { %8062 = vmatpush.bf16.msra.mxu2 %v7902_v4  ;;  %8063 = vmatpush.bf16.msra.mxu3 %v7902_v4  ;;  %v5974_v22 = vld [vmem:[%s11735_s1 + $0x348] sm:$0xf]  ;;  %v7675_v24 = vld [vmem:[%s11735_s1 + $0x398] sm:$0xf0]  ;;  %v6142_v25 = vld [vmem:[%s11735_s1 + $0x498] sm:$0xf]  ;;  %v5555_v32 = vor.u32 %v7570_v21, %v5554_v20 }
   0x9   :  { %v722_v23 = vld [vmem:[%s11733_s2 + $0xc8] sm:$0xff]  ;;  %v6478_v27 = vld [vmem:[%s11735_s1 + $0x738] sm:$0xf]  ;;  %v707_v31 = vld [vmem:[%s11733_s2 + $0x50] sm:$0xff]  ;;  %v5975_v33 = vor.u32 %v7675_v24, %v5974_v22 }
   0xa   :  { %886 = vperm.xlu0 %8083, %v728_v6   ;;  %876 = vperm.xlu1 %8084, %v726_v7   ;;  %v7717_v26 = vld [vmem:[%s11735_s1 + $0x4e8] sm:$0xf0]  ;;  %v7911_v29 = vld [vmem:[%s11734_s0 + $0x78] sm:$0xff]  ;;  %v7910_v36 = vld [vmem:[%s11734_s0 + $0x70] sm:$0xff] }
   0xb   :  { %3592 = vmatpush.bf16.msra.mxu0 %v7901_v8  ;;  %8064 = vmatpush.bf16.msra.mxu1 %v7901_v8  ;;  %v7801_v28 = vld [vmem:[%s11735_s1 + $0x788] sm:$0xf0]  ;;  %v708_v30 = vld [vmem:[%s11733_s2 + $0x58] sm:$0xff]  ;;  %v6143_v34 = vor.u32 %v7717_v26, %v6142_v25  ;;  %v719_v37 = vld [vmem:[%s11733_s2 + $0xb0] sm:$0xff] }
   0xc   :  { %8065 = vmatpush.bf16.msra.mxu2 %v7901_v8  ;;  %8066 = vmatpush.bf16.msra.mxu3 %v7901_v8  ;;  %v6479_v35 = vor.u32 %v7801_v28, %v6478_v27  ;;  %v7919_v38 = vld [vmem:[%s11734_s0 + $0xb8] sm:$0xff]  ;;  %v7909_v39 = vld [vmem:[%s11734_s0 + $0x68] sm:$0xff]  ;;  %v705_v41 = vld [vmem:[%s11733_s2 + $0x40] sm:$0xff] }
   0xd   :  { %v720_v40 = vld [vmem:[%s11733_s2 + $0xb8] sm:$0xff]  ;;  %v7918_v42 = vld [vmem:[%s11734_s0 + $0xb0] sm:$0xff]  ;;  %v7908_v43 = vld [vmem:[%s11734_s0 + $0x60] sm:$0xff] }
   0xe   :  { %806 = vperm.xlu2 %8085, %v712_v10   ;;  %v5638_v44 = vld [vmem:[%s11735_s1 + $0xa8] sm:$0xf]  ;;  %v7591_v45 = vld [vmem:[%s11735_s1 + $0xf8] sm:$0xf0]  ;;  %v6058_v46 = vld [vmem:[%s11735_s1 + $0x3f0] sm:$0xf] }
   0xf   :  { %3593 = vmatpush.bf16.msra.mxu0 %v7900_v9  ;;  %8067 = vmatpush.bf16.msra.mxu1 %v7900_v9  ;;  %v706_v47 = vld [vmem:[%s11733_s2 + $0x48] sm:$0xff]  ;;  %v7696_v49 = vld [vmem:[%s11735_s1 + $0x440] sm:$0xf0]  ;;  %v6226_v50 = vld [vmem:[%s11735_s1 + $0x540] sm:$0xf]  ;;  %v5639_v57 = vor.u32 %v7591_v45, %v5638_v44 }
  0x10   :  { %8068 = vmatpush.bf16.msra.mxu2 %v7900_v9  ;;  %8069 = vmatpush.bf16.msra.mxu3 %v7900_v9  ;;  %v7917_v48 = vld [vmem:[%s11734_s0 + $0xa8] sm:$0xff]  ;;  %v7738_v51 = vld [vmem:[%s11735_s1 + $0x590] sm:$0xf0]  ;;  %v6562_v52 = vld [vmem:[%s11735_s1 + $0x7e0] sm:$0xf]  ;;  %v6059_v58 = vor.u32 %v7696_v49, %v6058_v46 }
  0x11   :  { %v7822_v53 = vld [vmem:[%s11735_s1 + $0x830] sm:$0xf0]  ;;  %v7907_v54 = vld [vmem:[%s11734_s0 + $0x58] sm:$0xff]  ;;  %v717_v55 = vld [vmem:[%s11733_s2 + $0xa0] sm:$0xff]  ;;  %v6227_v59 = vor.u32 %v7738_v51, %v6226_v50 }
  0x12   :  { %866 = vperm.xlu1 %8084, %v724_v11   ;;  %861 = vperm.xlu0 %8083, %v723_v12   ;;  %v718_v56 = vld [vmem:[%s11733_s2 + $0xa8] sm:$0xff]  ;;  %v6563_v60 = vor.u32 %v7822_v53, %v6562_v52  ;;  %v7906_v61 = vld [vmem:[%s11734_s0 + $0x50] sm:$0xff]  ;;  %v7916_v62 = vld [vmem:[%s11734_s0 + $0xa0] sm:$0xff] }
  0x13   :  { %3594 = vmatpush.bf16.msra.mxu0 %v7899_v13  ;;  %8070 = vmatpush.bf16.msra.mxu1 %v7899_v13  ;;  %v703_v63 = vld [vmem:[%s11733_s2 + $0x30] sm:$0xff]  ;;  %v7927_v0 = vld [vmem:[%s11734_s0 + $0xf8] sm:$0xff]  ;;  %v7905_v2 = vld [vmem:[%s11734_s0 + $0x48] sm:$0xff] }
  0x14   :  { %8071 = vmatpush.bf16.msra.mxu2 %v7899_v13  ;;  %8072 = vmatpush.bf16.msra.mxu3 %v7899_v13  ;;  %v7935_v1 = vld [vmem:[%s11734_s0 + $0x138] sm:$0xff]  ;;  %v715_v4 = vld [vmem:[%s11733_s2 + $0x90] sm:$0xff]  ;;  %v7904_v8 = vld [vmem:[%s11734_s0 + $0x40] sm:$0xff] }
  0x15   :  { %v7915_v3 = vld [vmem:[%s11734_s0 + $0x98] sm:$0xff]  ;;  %v7926_v6 = vld [vmem:[%s11734_s0 + $0xf0] sm:$0xff]  ;;  %v7612_v11 = vld [vmem:[%s11735_s1 + $0x1a0] sm:$0xf0] }
  0x16   :  { %791 = vperm.xlu2 %8085, %v709_v15   ;;  %v704_v5 = vld [vmem:[%s11733_s2 + $0x38] sm:$0xff]  ;;  %v7934_v7 = vld [vmem:[%s11734_s0 + $0x130] sm:$0xff]  ;;  %v6310_v12 = vld [vmem:[%s11735_s1 + $0x5e8] sm:$0xf] }
  0x17   :  { %3595 = vmatpush.bf16.msra.mxu0 %v7898_v14  ;;  %8073 = vmatpush.bf16.msra.mxu1 %v7898_v14  ;;  %v7914_v9 = vld [vmem:[%s11734_s0 + $0x90] sm:$0xff]  ;;  %v716_v13 = vld [vmem:[%s11733_s2 + $0x98] sm:$0xff]  ;;  %v7933_v15 = vld [vmem:[%s11734_s0 + $0x128] sm:$0xff] }
  0x18   :  { %8074 = vmatpush.bf16.msra.mxu2 %v7898_v14  ;;  %8075 = vmatpush.bf16.msra.mxu3 %v7898_v14  ;;  %v5722_v10 = vld [vmem:[%s11735_s1 + $0x150] sm:$0xf]  ;;  %v7925_v14 = vld [vmem:[%s11734_s0 + $0xe8] sm:$0xff]  ;;  %v7843_v20 = vld [vmem:[%s11735_s1 + $0x8d8] sm:$0xf0] }
  0x19   :  { %v7913_v21 = vld [vmem:[%s11734_s0 + $0x88] sm:$0xff]  ;;  %v5723_v24 = vor.u32 %v7612_v11, %v5722_v10  ;;  %v7912_v28 = vld [vmem:[%s11734_s0 + $0x80] sm:$0xff]  ;;  %v6730_v45 = vld [vmem:[%s11735_s1 + $0x930] sm:$0xf] }
  0x1a   :  { %851 = vperm.xlu1 %8084, %v721_v16   ;;  %796 = vperm.xlu0 %8083, %v710_v17   ;;  %v7759_v16 = vld [vmem:[%s11735_s1 + $0x638] sm:$0xf0]  ;;  %v7560_v17 = vld [vmem:[%s11735_s1 + $0x4] sm:$0xf]  ;;  %v702_v22 = vld [vmem:[%s11733_s2 + $0x28] sm:$0xff] }
  0x1b   :  { %3596 = vmatpush.bf16.msra.mxu0 %v7897_v18  ;;  %8076 = vmatpush.bf16.msra.mxu1 %v7897_v18  ;;  %v6311_v26 = vor.u32 %v7759_v16, %v6310_v12  ;;  %v5640_v44 = vld [vmem:[%s11735_s1 + $0xfc] sm:$0xf0]  ;;  %v7864_v46 = vld [vmem:[%s11735_s1 + $0x980] sm:$0xf0]  ;;  %v7561_v12 = vld [vmem:[%s11735_s1 + $0xc] sm:$0xf] }
  0x1c   :  { %8077 = vmatpush.bf16.msra.mxu2 %v7897_v18  ;;  %8078 = vmatpush.bf16.msra.mxu3 %v7897_v18  ;;  %v5556_v18 = vld [vmem:[%s11735_s1 + $0x54] sm:$0xf0]  ;;  %v697_v49 = vld [vmem:[%s11733_s2] sm:$0xff]  ;;  %v6731_v53 = vor.u32 %v7864_v46, %v6730_v45  ;;  %v7614_v45 = vld [vmem:[%s11735_s1 + $0x1b0] sm:$0xf0] }
  0x1d   :  { %v5559_v25 = vor.u32 %v7560_v17, %v5556_v18  ;;  %v7572_v10 = vld [vmem:[%s11735_s1 + $0x60] sm:$0xf0] }
  0x1e   :  { %856 = vperm.xlu2 %8085, %v722_v23   ;;  %v701_v23 = vld [vmem:[%s11733_s2 + $0x20] sm:$0xff] }
  0x1f   :  { %3597 = vmatpush.bf16.msra.mxu0 %v7896_v19  ;;  %8079 = vmatpush.bf16.msra.mxu1 %v7896_v19  ;;  %v7592_v11 = vld [vmem:[%s11735_s1 + $0x100] sm:$0xf0] }
  0x20   :  { %8080 = vmatpush.bf16.msra.mxu2 %v7896_v19  ;;  %8081 = vmatpush.bf16.msra.mxu3 %v7896_v19  ;;  %v6646_v19 = vld [vmem:[%s11735_s1 + $0x888] sm:$0xf] }
  0x21   :  { %v6647_v27 = vor.u32 %v7843_v20, %v6646_v19 }
  0x22   :  { %786 = vperm.xlu1 %8084, %v708_v30   ;;  %781 = vperm.xlu0 %8083, %v707_v31   ;;  %v7932_v30 = vld [vmem:[%s11734_s0 + $0x120] sm:$0xff] }
  0x23   :  { %3679 = vmatpush.bf16.msrb.mxu1 %v7911_v29  ;;  %3598 = vmatmul.bf16.vlgmr.msra.gmra.mxu0 %v5555_v32  ;;  %v7924_v29 = vld [vmem:[%s11734_s0 + $0xe0] sm:$0xff]  ;;  %v7923_v32 = vld [vmem:[%s11734_s0 + $0xd8] sm:$0xff] }
  0x24   :  { %3623 = vmatmul.bf16.vlgmr.msra.gmra.mxu1 %v5975_v33  ;;  %3633 = vmatmul.bf16.vlgmr.msra.gmra.mxu2 %v6143_v34  ;;  %v713_v31 = vld [vmem:[%s11733_s2 + $0x80] sm:$0xff]  ;;  %v714_v33 = vld [vmem:[%s11733_s2 + $0x88] sm:$0xff]  ;;  %v699_v34 = vld [vmem:[%s11733_s2 + $0x10] sm:$0xff] }
  0x25   :  { %3653 = vmatmul.bf16.vlgmr.msra.gmra.mxu3 %v6479_v35  ;;  %3768 = vmatpush.bf16.msrb.mxu2 %v7919_v38  ;;  %v7931_v35 = vld [vmem:[%s11734_s0 + $0x118] sm:$0xff]  ;;  %v7633_v38 = vld [vmem:[%s11735_s1 + $0x248] sm:$0xf0] }
  0x26   :  { %841 = vperm.xlu2 %8085, %v719_v37   ;;  %3857 = vmatpush.bf16.msrb.mxu3 %v7927_v0  ;;  %v5806_v37 = vld [vmem:[%s11735_s1 + $0x1f8] sm:$0xf]  ;;  %v7571_v0 = vld [vmem:[%s11735_s1 + $0x58] sm:$0xf0] }
  0x27   :  { %3680 = vmatpush.bf16.msrb.mxu1 %v7910_v36  ;;  %3946 = vmatpush.bf16.msrb.mxu0 %v7935_v1  ;;  %v7922_v36 = vld [vmem:[%s11734_s0 + $0xd0] sm:$0xff]  ;;  %v5807_v50 = vor.u32 %v7633_v38, %v5806_v37 }
  0x29   :  { %3769 = vmatpush.bf16.msrb.mxu2 %v7918_v42  ;;  %v7780_v42 = vld [vmem:[%s11735_s1 + $0x6e0] sm:$0xf0] }
  0x2a   :  { %846 = vperm.xlu0 %8083, %v720_v40   ;;  %771 = vperm.xlu1 %8084, %v705_v41   ;;  %v700_v40 = vld [vmem:[%s11733_s2 + $0x18] sm:$0xff]  ;;  %v7930_v41 = vld [vmem:[%s11734_s0 + $0x110] sm:$0xff] }
  0x2b   :  { %3681 = vmatpush.bf16.msrb.mxu1 %v7909_v39  ;;  %3858 = vmatpush.bf16.msrb.mxu3 %v7926_v6  ;;  %v6394_v39 = vld [vmem:[%s11735_s1 + $0x690] sm:$0xf]  ;;  %v7623_v6 = vld [vmem:[%s11735_s1 + $0x1fc] sm:$0xf] }
  0x2c   :  { %3947 = vmatpush.bf16.msrb.mxu0 %v7934_v7  ;;  %v6395_v52 = vor.u32 %v7780_v42, %v6394_v39  ;;  %v5808_v7 = vld [vmem:[%s11735_s1 + $0x24c] sm:$0xf0]  ;;  %v7665_v39 = vld [vmem:[%s11735_s1 + $0x34c] sm:$0xf] }
  0x2d   :  { %3770 = vmatpush.bf16.msrb.mxu2 %v7917_v48  ;;  %v698_v48 = vld [vmem:[%s11733_s2 + $0x8] sm:$0xff] }
  0x2e   :  { %776 = vperm.xlu2 %8085, %v706_v47   ;;  %v7921_v47 = vld [vmem:[%s11734_s0 + $0xc8] sm:$0xff] }
  0x2f   :  { %3682 = vmatpush.bf16.msrb.mxu1 %v7908_v43  ;;  %3859 = vmatpush.bf16.msrb.mxu3 %v7925_v14  ;;  %v7581_v43 = vld [vmem:[%s11735_s1 + $0xac] sm:$0xf]  ;;  %v5811_v14 = vor.u32 %v7623_v6, %v5808_v7 }
  0x30   :  { %3948 = vmatpush.bf16.msrb.mxu0 %v7933_v15  ;;  %v5643_v51 = vor.u32 %v7581_v43, %v5640_v44  ;;  %v5814_v43 = vld [vmem:[%s11735_s1 + $0x200] sm:$0xf] }
  0x31   :  { %3771 = vmatpush.bf16.msrb.mxu2 %v7916_v62  ;;  %v7885_v62 = vld [vmem:[%s11735_s1 + $0xa28] sm:$0xf0]  ;;  %v5738_v44 = vld [vmem:[%s11735_s1 + $0x160] sm:$0xf] }
  0x32   :  { %831 = vperm.xlu0 %8083, %v717_v55   ;;  %836 = vperm.xlu1 %8084, %v718_v56   ;;  %v7920_v55 = vld [vmem:[%s11734_s0 + $0xc0] sm:$0xff] }
  0x33   :  { %3683 = vmatpush.bf16.msrb.mxu1 %v7907_v54  ;;  %3603 = vmatmul.bf16.gmra.mxu0 %v5639_v57  ;;  %v7929_v54 = vld [vmem:[%s11734_s0 + $0x108] sm:$0xff]  ;;  %v7928_v56 = vld [vmem:[%s11734_s0 + $0x100] sm:$0xff] }
  0x34   :  { %3628 = vmatmul.bf16.gmra.mxu1 %v6059_v58  ;;  %3638 = vmatmul.bf16.gmra.mxu2 %v6227_v59  ;;  %v5890_v57 = vld [vmem:[%s11735_s1 + $0x2a0] sm:$0xf]  ;;  %v7654_v58 = vld [vmem:[%s11735_s1 + $0x2f0] sm:$0xf0]  ;;  %v6814_v59 = vld [vmem:[%s11735_s1 + $0x9d8] sm:$0xf] }
  0x35   :  { %3658 = vmatmul.bf16.gmra.mxu3 %v6563_v60  ;;  %3772 = vmatpush.bf16.msrb.mxu2 %v7915_v3  ;;  %v7602_v60 = vld [vmem:[%s11735_s1 + $0x154] sm:$0xf]  ;;  %v5891_v1 = vor.u32 %v7654_v58, %v5890_v57  ;;  %v6815_v3 = vor.u32 %v7885_v62, %v6814_v59  ;;  %v6060_v58 = vld [vmem:[%s11735_s1 + $0x444] sm:$0xf0] }
  0x36   :  { %761 = vperm.xlu2 %8085, %v703_v63   ;;  %3860 = vmatpush.bf16.msrb.mxu3 %v7924_v29  ;;  %v5562_v63 = vld [vmem:[%s11735_s1 + $0x8] sm:$0xf]  ;;  %v7613_v29 = vld [vmem:[%s11735_s1 + $0x1a8] sm:$0xf0]  ;;  %v7686_v57 = vld [vmem:[%s11735_s1 + $0x3f4] sm:$0xf] }
  0x37   :  { %3684 = vmatpush.bf16.msrb.mxu1 %v7906_v61  ;;  %3949 = vmatpush.bf16.msrb.mxu0 %v7932_v30  ;;  %v5724_v61 = vld [vmem:[%s11735_s1 + $0x1a4] sm:$0xf0]  ;;  %v7582_v30 = vld [vmem:[%s11735_s1 + $0xb4] sm:$0xf] }
  0x38   :  { %v5822_v62 = vld [vmem:[%s11735_s1 + $0x208] sm:$0xf] }
  0x39   :  { %3773 = vmatpush.bf16.msrb.mxu2 %v7914_v9  ;;  %v5570_v9 = vld [vmem:[%s11735_s1 + $0x10] sm:$0xf] }
  0x3a   :  { %821 = vperm.xlu1 %8084, %v715_v4   ;;  %766 = vperm.xlu0 %8083, %v704_v5   ;;  %v5563_v4 = vor.u32 %v7571_v0, %v5562_v63  ;;  %v5571_v15 = vor.u32 %v7572_v10, %v5570_v9  ;;  %v7635_v63 = vld [vmem:[%s11735_s1 + $0x258] sm:$0xf0] }
  0x3b   :  { %3685 = vmatpush.bf16.msrb.mxu1 %v7905_v2  ;;  %3861 = vmatpush.bf16.msrb.mxu3 %v7923_v32  ;;  %v5727_v2 = vor.u32 %v7602_v60, %v5724_v61  ;;  %v5898_v61 = vld [vmem:[%s11735_s1 + $0x2a8] sm:$0xf]  ;;  %v7655_v0 = vld [vmem:[%s11735_s1 + $0x2f8] sm:$0xf0] }
  0x3c   :  { %3950 = vmatpush.bf16.msrb.mxu0 %v7931_v35 }
  0x3d   :  { %3774 = vmatpush.bf16.msrb.mxu2 %v7913_v21 }
  0x3e   :  { %826 = vperm.xlu2 %8085, %v716_v13   ;;  %v5564_v13 = vld [vmem:[%s11735_s1 + $0x5c] sm:$0xf0] }
  0x3f   :  { %3686 = vmatpush.bf16.msrb.mxu1 %v7904_v8  ;;  %3862 = vmatpush.bf16.msrb.mxu3 %v7922_v36  ;;  %v5646_v8 = vld [vmem:[%s11735_s1 + $0xb0] sm:$0xf]  ;;  %v5567_v18 = vor.u32 %v7561_v12, %v5564_v13 }
  0x40   :  { %3951 = vmatpush.bf16.msrb.mxu0 %v7930_v41  ;;  %v5647_v17 = vor.u32 %v7592_v11, %v5646_v8  ;;  %v5899_v8 = vor.u32 %v7655_v0, %v5898_v61 }
  0x41   :  { %3775 = vmatpush.bf16.msrb.mxu2 %v7912_v28  ;;  %v7593_v28 = vld [vmem:[%s11735_s1 + $0x108] sm:$0xf0] }
  0x42   :  { %756 = vperm.xlu1 %8084, %v702_v22   ;;  %751 = vperm.xlu0 %8083, %v701_v23   ;;  %v7644_v22 = vld [vmem:[%s11735_s1 + $0x2a4] sm:$0xf]  ;;  %v5892_v23 = vld [vmem:[%s11735_s1 + $0x2f4] sm:$0xf0] }
  0x43   :  { %3608 = vmatmul.bf16.gmra.mxu0 %v5723_v24  ;;  %3863 = vmatpush.bf16.msrb.mxu3 %v7921_v47  ;;  %v5895_v32 = vor.u32 %v7644_v22, %v5892_v23  ;;  %v7634_v47 = vld [vmem:[%s11735_s1 + $0x250] sm:$0xf0]  ;;  %v7707_v23 = vld [vmem:[%s11735_s1 + $0x49c] sm:$0xf] }
  0x44   :  { %3687 = vmatmul.bf16.vlgmr.msrb.gmra.mxu1 %v5559_v25  ;;  %3643 = vmatmul.bf16.gmra.mxu2 %v6311_v26  ;;  %v5730_v26 = vld [vmem:[%s11735_s1 + $0x158] sm:$0xf] }
  0x45   :  { %3663 = vmatmul.bf16.gmra.mxu3 %v6647_v27  ;;  %3952 = vmatpush.bf16.msrb.mxu0 %v7929_v54  ;;  %v5654_v27 = vld [vmem:[%s11735_s1 + $0xb8] sm:$0xf] }
  0x46   :  { %811 = vperm.xlu2 %8085, %v713_v31   ;;  %v5648_v31 = vld [vmem:[%s11735_s1 + $0x104] sm:$0xf0] }
  0x47   :  { %3864 = vmatpush.bf16.msrb.mxu3 %v7920_v55  ;;  %v5651_v35 = vor.u32 %v7582_v30, %v5648_v31  ;;  %v5906_v30 = vld [vmem:[%s11735_s1 + $0x2b0] sm:$0xf]  ;;  %v7656_v31 = vld [vmem:[%s11735_s1 + $0x300] sm:$0xf0] }
  0x49   :  { %3953 = vmatpush.bf16.msrb.mxu0 %v7928_v56 }
  0x4a   :  { %816 = vperm.xlu0 %8083, %v714_v33   ;;  %741 = vperm.xlu1 %8084, %v699_v34   ;;  %v5655_v33 = vor.u32 %v7593_v28, %v5654_v27  ;;  %v5731_v34 = vor.u32 %v7613_v29, %v5730_v26  ;;  %v6144_v26 = vld [vmem:[%s11735_s1 + $0x4ec] sm:$0xf0] }
  0x4b   :  { %v5982_v29 = vld [vmem:[%s11735_s1 + $0x350] sm:$0xf] }
  0x4e   :  { %746 = vperm.xlu2 %8085, %v700_v40   ;;  %v5976_v40 = vld [vmem:[%s11735_s1 + $0x39c] sm:$0xf0] }
  0x52   :  { %736 = vperm.xlu1 %8084, %v698_v48   ;;  %731 = vperm.xlu0 %8083, %v697_v49   ;;  %v7603_v48 = vld [vmem:[%s11735_s1 + $0x15c] sm:$0xf]  ;;  %v5732_v49 = vld [vmem:[%s11735_s1 + $0x1ac] sm:$0xf0] }
  0x53   :  { %3613 = vmatmul.bf16.gmra.mxu0 %v5807_v50  ;;  %v5979_v50 = vor.u32 %v7665_v39, %v5976_v40  ;;  %v6147_v40 = vor.u32 %v7707_v23, %v6144_v26 }
  0x54   :  { %3692 = vmatmul.bf16.gmra.mxu1 %v5643_v51  ;;  %3648 = vmatmul.bf16.gmra.mxu2 %v6395_v52  ;;  %v5739_v51 = vor.u32 %v7614_v45, %v5738_v44  ;;  %v5815_v52 = vor.u32 %v7634_v47, %v5814_v43  ;;  %v5907_v43 = vor.u32 %v7656_v31, %v5906_v30 }
  0x55   :  { %3668 = vmatmul.bf16.gmra.mxu3 %v6731_v53  ;;  %v5735_v53 = vor.u32 %v7603_v48, %v5732_v49 }
  0x60   :  { %v8453_v5 = vpop.permute.xlu2 %801 }
  0x63   :  { %3618 = vmatmul.bf16.gmra.mxu0 %v5891_v1  ;;  %v7624_v1 = vld [vmem:[%s11735_s1 + $0x204] sm:$0xf] }
  0x64   :  { %3697 = vmatmul.bf16.gmra.mxu1 %v5727_v2  ;;  %3776 = vmatmul.bf16.vlgmr.msrb.gmra.mxu2 %v5563_v4  ;;  %v5816_v2 = vld [vmem:[%s11735_s1 + $0x254] sm:$0xf0]  ;;  %v5823_v4 = vor.u32 %v7635_v63, %v5822_v62  ;;  %v7728_v62 = vld [vmem:[%s11735_s1 + $0x544] sm:$0xf] }
  0x65   :  { %3673 = vmatmul.bf16.gmra.mxu3 %v6815_v3  ;;  %v6063_v3 = vor.u32 %v7686_v57, %v6060_v58  ;;  %v5819_v9 = vor.u32 %v7624_v1, %v5816_v2  ;;  %v6228_v63 = vld [vmem:[%s11735_s1 + $0x594] sm:$0xf0] }
  0x66   :  { %v6066_v2 = vld [vmem:[%s11735_s1 + $0x3f8] sm:$0xf]  ;;  %v6231_v26 = vor.u32 %v7728_v62, %v6228_v63 }
  0x68   :  { %v8479_v16 = vpop.permute.xlu2 %806 }
  0x70   :  { %v8485_v21 = vpop.permute.xlu2 %791 }
  0x73   :  { %3954 = vmatmul.bf16.vlgmr.msrb.gmra.mxu0 %v5571_v15 }
  0x74   :  { %3702 = vmatmul.bf16.gmra.mxu1 %v5811_v14  ;;  %3781 = vmatmul.bf16.gmra.mxu2 %v5647_v17  ;;  %v8481_v19 = vpop.permute.xlu0 %881  ;;  %v8483_v20 = vpop.permute.xlu1 %871 }
  0x75   :  { %3865 = vmatmul.bf16.vlgmr.msrb.gmra.mxu3 %v5567_v18 }
  0x78   :  { %v8515_v36 = vpop.permute.xlu2 %856 }
  0x7c   :  { %v8493_v24 = vpop.permute.xlu0 %886  ;;  %v8495_v25 = vpop.permute.xlu1 %876 }
  0x7d   :  { %11739 = vst [vmem:[#allocation2_spill] sm:$0xff] %v8493_v24 }
  0x80   :  { %v842_v46 = vpop.permute.xlu2 %841 }
  0x83   :  { %3959 = vmatmul.bf16.gmra.mxu0 %v5655_v33  ;;  %v7645_v33 = vld [vmem:[%s11735_s1 + $0x2ac] sm:$0xf] }
  0x84   :  { %3707 = vmatmul.bf16.gmra.mxu1 %v5895_v32  ;;  %3786 = vmatmul.bf16.gmra.mxu2 %v5731_v34  ;;  %v8517_v37 = vpop.permute.xlu1 %866  ;;  %v8519_v38 = vpop.permute.xlu0 %861  ;;  %v7676_v32 = vld [vmem:[%s11735_s1 + $0x3a0] sm:$0xf0]  ;;  %v5900_v34 = vld [vmem:[%s11735_s1 + $0x2fc] sm:$0xf0] }
  0x85   :  { %3870 = vmatmul.bf16.gmra.mxu3 %v5651_v35  ;;  %v5983_v47 = vor.u32 %v7676_v32, %v5982_v29  ;;  %v5903_v48 = vor.u32 %v7645_v33, %v5900_v34 }
  0x88   :  { %v8553_v56 = vpop.permute.xlu2 %776 }
  0x8c   :  { %v8527_v41 = vpop.permute.xlu1 %851  ;;  %v8529_v42 = vpop.permute.xlu0 %796 }
  0x90   :  { %v8585_v10 = vpop.permute.xlu2 %761 }
  0x93   :  { %3964 = vmatmul.bf16.gmra.mxu0 %v5739_v51 }
  0x94   :  { %3712 = vmatmul.bf16.gmra.mxu1 %v5979_v50  ;;  %3791 = vmatmul.bf16.gmra.mxu2 %v5815_v52  ;;  %v8549_v54 = vpop.permute.xlu1 %786  ;;  %v8551_v55 = vpop.permute.xlu0 %781 }
  0x95   :  { %3875 = vmatmul.bf16.gmra.mxu3 %v5735_v53 }
  0x98   :  { %v8597_v22 = vpop.permute.xlu2 %826 }
  0x9c   :  { %v847_v59 = vpop.permute.xlu0 %846  ;;  %v8561_v60 = vpop.permute.xlu1 %771 }
  0xa0   :  { %v8581_v6 = vpop.f32.mrf.mxu0  ;;  %v812_v51 = vpop.permute.xlu2 %811 }
  0xa1   :  { %v8583_v7 = vpop.f32.mrf.mxu1 }
  0xa3   :  { %3969 = vmatmul.bf16.gmra.mxu0 %v5823_v4  ;;  %v7697_v4 = vld [vmem:[%s11735_s1 + $0x448] sm:$0xf0] }
  0xa4   :  { %3717 = vmatmul.bf16.gmra.mxu1 %v6063_v3  ;;  %3796 = vmatmul.bf16.gmra.mxu2 %v5899_v8  ;;  %v8587_v11 = vpop.permute.xlu0 %831  ;;  %v8589_v12 = vpop.permute.xlu1 %836  ;;  %v7677_v3 = vld [vmem:[%s11735_s1 + $0x3a8] sm:$0xf0]  ;;  %v7666_v8 = vld [vmem:[%s11735_s1 + $0x354] sm:$0xf]  ;;  %v6067_v34 = vor.u32 %v7697_v4, %v6066_v2  ;;  %v7687_v4 = vld [vmem:[%s11735_s1 + $0x3fc] sm:$0xf] }
  0xa5   :  { %3880 = vmatmul.bf16.gmra.mxu3 %v5819_v9  ;;  %v5984_v9 = vld [vmem:[%s11735_s1 + $0x3a4] sm:$0xf0] }
  0xa7   :  { %v8591_v13 = vpop.f32.mrf.mxu2 }
  0xa8   :  { %v3654_v14 = vpop.f32.mrf.mxu3  ;;  %v3601_v17 = vpop.f32.mrf.mxu0 }
  0xa9   :  { %v8593_v15 = vadd.f32 %v3654_v14, %v842_v46  ;;  %v8595_v18 = vpop.f32.mrf.mxu1 }
  0xac   :  { %v822_v27 = vpop.permute.xlu1 %821  ;;  %v8605_v28 = vpop.permute.xlu0 %766 }
  0xaf   :  { %v8625_v35 = vpop.f32.mrf.mxu2 }
  0xb0   :  { %v3656_v39 = vpop.f32.mrf.mxu3  ;;  %v3604_v45 = vpop.f32.mrf.mxu0 }
  0xb1   :  { %v8627_v44 = vadd.f32 %v3656_v39, %v847_v59  ;;  %v8629_v46 = vpop.f32.mrf.mxu1  ;;  %v5987_v39 = vor.u32 %v7666_v8, %v5984_v9  ;;  %v6068_v8 = vld [vmem:[%s11735_s1 + $0x44c] sm:$0xf0] }
  0xb3   :  { %3974 = vmatmul.bf16.gmra.mxu0 %v5907_v43 }
  0xb4   :  { %3722 = vmatmul.bf16.gmra.mxu1 %v6147_v40  ;;  %3801 = vmatmul.bf16.gmra.mxu2 %v5983_v47  ;;  %v8631_v49 = vpop.permute.xlu1 %756  ;;  %v8633_v50 = vpop.permute.xlu0 %751 }
  0xb5   :  { %3885 = vmatmul.bf16.gmra.mxu3 %v5903_v48 }
  0xb7   :  { %v3639_v52 = vpop.f32.mrf.mxu2 }
  0xb8   :  { %v3659_v53 = vpop.f32.mrf.mxu3  ;;  %v8635_v57 = vadd.f32 %v3639_v52, %v812_v51  ;;  %v3606_v59 = vpop.f32.mrf.mxu0 }
  0xb9   :  { %v8638_v58 = vadd.f32 %v3659_v53, %v8527_v41  ;;  %v8640_v61 = vpop.f32.mrf.mxu1  ;;  %v5990_v41 = vld [vmem:[%s11735_s1 + $0x358] sm:$0xf] }
  0xba   :  { %v5991_v29 = vor.u32 %v7677_v3, %v5990_v41  ;;  %v7749_v41 = vld [vmem:[%s11735_s1 + $0x5ec] sm:$0xf]  ;;  %v7718_v3 = vld [vmem:[%s11735_s1 + $0x4f0] sm:$0xf0] }
  0xbc   :  { %v817_v0 = vpop.permute.xlu0 %816  ;;  %v742_v1 = vpop.permute.xlu1 %741 }
  0xbd   :  { %v3605_v9 = vadd.f32 %v3604_v45, %v742_v1 }
  0xbf   :  { %v3641_v14 = vpop.f32.mrf.mxu2 }
  0xc0   :  { %v3661_v23 = vpop.f32.mrf.mxu3  ;;  %v8666_v30 = vadd.f32 %v3641_v14, %v817_v0  ;;  %v3609_v32 = vpop.f32.mrf.mxu0 }
  0xc1   :  { %v8669_v31 = vadd.f32 %v3661_v23, %v8515_v36  ;;  %v3688_v33 = vpop.f32.mrf.mxu1 }
  0xc3   :  { %3979 = vmatmul.bf16.gmra.mxu0 %v5991_v29 }
  0xc4   :  { %3727 = vmatmul.bf16.gmra.mxu1 %v6231_v26  ;;  %3806 = vmatmul.bf16.gmra.mxu2 %v6067_v34  ;;  %v737_v40 = vpop.permute.xlu1 %736  ;;  %v732_v43 = vpop.permute.xlu0 %731 }
  0xc5   :  { %3890 = vmatmul.bf16.gmra.mxu3 %v5987_v39  ;;  %v3602_v47 = vadd.f32 %v3601_v17, %v737_v40  ;;  %v3600_v48 = vadd.f32 %v8581_v6, %v732_v43  ;;  %v6312_v6 = vld [vmem:[%s11735_s1 + $0x63c] sm:$0xf0]  ;;  %v6071_v43 = vor.u32 %v7687_v4, %v6068_v8  ;;  %v6152_v4 = vld [vmem:[%s11735_s1 + $0x4f4] sm:$0xf0]  ;;  %v3610_v8 = vadd.f32 %v3609_v32, %v8633_v50 }
  0xc6   :  { %v6150_v17 = vld [vmem:[%s11735_s1 + $0x4a0] sm:$0xf]  ;;  %v6315_v26 = vor.u32 %v7749_v41, %v6312_v6  ;;  %v7770_v6 = vld [vmem:[%s11735_s1 + $0x694] sm:$0xf] }
  0xc7   :  { %v3644_v51 = vpop.f32.mrf.mxu2  ;;  %v8672_v53 = vadd.f32 %v3688_v33, %v3600_v48  ;;  %v6151_v40 = vor.u32 %v7718_v3, %v6150_v17  ;;  %v747_v48 = vpop.permute.xlu2 %746  ;;  %v6396_v17 = vld [vmem:[%s11735_s1 + $0x6e4] sm:$0xf0]  ;;  %v7708_v3 = vld [vmem:[%s11735_s1 + $0x4a4] sm:$0xf] }
  0xc8   :  { %v3664_v52 = vpop.f32.mrf.mxu3  ;;  %v8674_v62 = vadd.f32 %v3644_v51, %v822_v27  ;;  %v3611_v63 = vpop.f32.mrf.mxu0  ;;  %v7698_v27 = vld [vmem:[%s11735_s1 + $0x450] sm:$0xf0]  ;;  %v3607_v45 = vadd.f32 %v3606_v59, %v747_v48  ;;  %v6234_v59 = vld [vmem:[%s11735_s1 + $0x548] sm:$0xf] }
  0xc9   :  { %v8677_v36 = vadd.f32 %v3664_v52, %v8519_v38  ;;  %v3690_v0 = vpop.f32.mrf.mxu1  ;;  %v6074_v38 = vld [vmem:[%s11735_s1 + $0x400] sm:$0xf]  ;;  %v3612_v50 = vadd.f32 %v3611_v63, %v8631_v49  ;;  %v6318_v49 = vld [vmem:[%s11735_s1 + $0x5f0] sm:$0xf]  ;;  %v7740_v63 = vld [vmem:[%s11735_s1 + $0x5a0] sm:$0xf0] }
  0xca   :  { %v8679_v2 = vadd.f32 %v3690_v0, %v3602_v47  ;;  %v6075_v29 = vor.u32 %v7698_v27, %v6074_v38  ;;  %v7719_v38 = vld [vmem:[%s11735_s1 + $0x4f8] sm:$0xf0] }
  0xcb   :  { %v7739_v27 = vld [vmem:[%s11735_s1 + $0x598] sm:$0xf0] }
  0xcc   :  { %v6235_v48 = vor.u32 %v7739_v27, %v6234_v59  ;;  %v7791_v59 = vld [vmem:[%s11735_s1 + $0x73c] sm:$0xf]  ;;  %v7760_v27 = vld [vmem:[%s11735_s1 + $0x640] sm:$0xf0] }
  0xcf   :  { %v3646_v14 = vpop.f32.mrf.mxu2 }
  0xd0   :  { %v8705_v23 = vpop.f32.mrf.mxu3  ;;  %v8708_v33 = vadd.f32 %v3646_v14, %v8597_v22  ;;  %v3614_v34 = vpop.f32.mrf.mxu0 }
  0xd1   :  { %v3693_v39 = vpop.f32.mrf.mxu1 }
  0xd2   :  { %v8710_v47 = vadd.f32 %v3693_v39, %v3605_v9 }
  0xd3   :  { %3984 = vmatmul.bf16.gmra.mxu0 %v6075_v29 }
  0xd4   :  { %3732 = vmatmul.bf16.gmra.mxu1 %v6315_v26  ;;  %3811 = vmatmul.bf16.gmra.mxu2 %v6151_v40  ;;  %v6399_v26 = vor.u32 %v7770_v6, %v6396_v17 }
  0xd5   :  { %3895 = vmatmul.bf16.gmra.mxu3 %v6071_v43 }
  0xd7   :  { %v3649_v1 = vpop.f32.mrf.mxu2 }
  0xd8   :  { %v8712_v51 = vpop.f32.mrf.mxu3  ;;  %v8715_v52 = vadd.f32 %v3649_v1, %v8587_v11  ;;  %v3616_v22 = vpop.f32.mrf.mxu0  ;;  %v6158_v11 = vld [vmem:[%s11735_s1 + $0x4a8] sm:$0xf] }
  0xd9   :  { %v3695_v0 = vpop.f32.mrf.mxu1  ;;  %v6159_v29 = vor.u32 %v7719_v38, %v6158_v11  ;;  %v6480_v38 = vld [vmem:[%s11735_s1 + $0x78c] sm:$0xf0] }
  0xda   :  { %v8717_v41 = vadd.f32 %v3695_v0, %v3607_v45  ;;  %v6155_v45 = vor.u32 %v7708_v3, %v6152_v4  ;;  %v7729_v3 = vld [vmem:[%s11735_s1 + $0x54c] sm:$0xf]  ;;  %v6236_v4 = vld [vmem:[%s11735_s1 + $0x59c] sm:$0xf0] }
  0xdf   :  { %v3651_v9 = vpop.f32.mrf.mxu2 }
  0xe0   :  { %v8744_v14 = vpop.f32.mrf.mxu3  ;;  %v8747_v39 = vadd.f32 %v3651_v9, %v8589_v12  ;;  %v3619_v40 = vpop.f32.mrf.mxu0 }
  0xe1   :  { %v3698_v43 = vpop.f32.mrf.mxu1 }
  0xe2   :  { %v8749_v1 = vadd.f32 %v3698_v43, %v3610_v8  ;;  %v3615_v8 = vadd.f32 %v3614_v34, %v8585_v10 }
  0xe3   :  { %3989 = vmatmul.bf16.gmra.mxu0 %v6159_v29  ;;  %v6483_v29 = vor.u32 %v7791_v59, %v6480_v38 }
  0xe4   :  { %3737 = vmatmul.bf16.gmra.mxu1 %v6399_v26  ;;  %3816 = vmatmul.bf16.gmra.mxu2 %v6235_v48 }
  0xe5   :  { %3900 = vmatmul.bf16.gmra.mxu3 %v6155_v45 }
  0xe7   :  { %v3777_v0 = vpop.f32.mrf.mxu2 }
  0xe8   :  { %v8752_v32 = vpop.f32.mrf.mxu3  ;;  %v3778_v6 = vadd.f32 %v3777_v0, %v8672_v53  ;;  %v3621_v17 = vpop.f32.mrf.mxu0  ;;  %v6242_v53 = vld [vmem:[%s11735_s1 + $0x550] sm:$0xf]  ;;  %v6319_v0 = vor.u32 %v7760_v27, %v6318_v49  ;;  %v7812_v49 = vld [vmem:[%s11735_s1 + $0x7e4] sm:$0xf]  ;;  %v6564_v27 = vld [vmem:[%s11735_s1 + $0x834] sm:$0xf0] }
  0xe9   :  { %11740 = vst [vmem:[#allocation3_spill] sm:$0xff] %v8752_v32  ;;  %v3700_v12 = vpop.f32.mrf.mxu1  ;;  %v6243_v43 = vor.u32 %v7740_v63, %v6242_v53  ;;  %v3617_v32 = vadd.f32 %v3616_v22, %v8605_v28  ;;  %v6402_v28 = vld [vmem:[%s11735_s1 + $0x698] sm:$0xf]  ;;  %v7761_v22 = vld [vmem:[%s11735_s1 + $0x648] sm:$0xf0] }
  0xea   :  { %v8755_v11 = vadd.f32 %v3700_v12, %v3612_v50  ;;  %v6239_v12 = vor.u32 %v7729_v3, %v6236_v4  ;;  %v6320_v3 = vld [vmem:[%s11735_s1 + $0x644] sm:$0xf0]  ;;  %v3620_v4 = vadd.f32 %v3619_v40, %v8561_v60  ;;  %v7943_v60 = vld [vmem:[%s11734_s0 + $0x178] sm:$0xff] }
  0xeb   :  { %4035 = vmatpush.bf16.msra.mxu1 %v7943_v60 }
  0xef   :  { %v3779_v26 = vpop.f32.mrf.mxu2 }
  0xf0   :  { %v8782_v9 = vpop.f32.mrf.mxu3  ;;  %v3780_v48 = vadd.f32 %v3779_v26, %v8679_v2  ;;  %v3955_v50 = vpop.f32.mrf.mxu0 }
  0xf1   :  { %11741 = vst [vmem:[#allocation4_spill] sm:$0xff] %v8782_v9  ;;  %v3703_v45 = vpop.f32.mrf.mxu1 }
  0xf2   :  { %v8785_v24 = vadd.f32 %v3703_v45, %v3615_v8 }
  0xf3   :  { %3994 = vmatmul.bf16.gmra.mxu0 %v6243_v43 }
  0xf4   :  { %3742 = vmatmul.bf16.gmra.mxu1 %v6483_v29  ;;  %3821 = vmatmul.bf16.gmra.mxu2 %v6319_v0  ;;  %v6567_v29 = vor.u32 %v7812_v49, %v6564_v27  ;;  %v7942_v49 = vld [vmem:[%s11734_s0 + $0x170] sm:$0xff] }
  0xf5   :  { %3905 = vmatmul.bf16.gmra.mxu3 %v6239_v12  ;;  %4036 = vmatpush.bf16.msra.mxu1 %v7942_v49 }
  0xf7   :  { %v3782_v10 = vpop.f32.mrf.mxu2 }
  0xf8   :  { %v3866_v34 = vpop.f32.mrf.mxu3  ;;  %v3783_v9 = vadd.f32 %v3782_v10, %v8710_v47  ;;  %v3957_v53 = vpop.f32.mrf.mxu0  ;;  %v6326_v47 = vld [vmem:[%s11735_s1 + $0x5f8] sm:$0xf] }
  0xf9   :  { %v3867_v59 = vadd.f32 %v3866_v34, %v3778_v6  ;;  %v3705_v38 = vpop.f32.mrf.mxu1  ;;  %v7750_v6 = vld [vmem:[%s11735_s1 + $0x5f4] sm:$0xf]  ;;  %v6327_v43 = vor.u32 %v7761_v22, %v6326_v47 }
  0xfa   :  { %v8789_v2 = vadd.f32 %v3705_v38, %v3617_v32  ;;  %v7781_v32 = vld [vmem:[%s11735_s1 + $0x6e8] sm:$0xf0]  ;;  %v6323_v34 = vor.u32 %v7750_v6, %v6320_v3  ;;  %v7782_v3 = vld [vmem:[%s11735_s1 + $0x6f0] sm:$0xf0] }
  0xfb   :  { %v8791_v63 = vadd.f32 %v3955_v50, %v3867_v59  ;;  %v6403_v10 = vor.u32 %v7781_v32, %v6402_v28  ;;  %v7941_v32 = vld [vmem:[%s11734_s0 + $0x168] sm:$0xff] }
  0xfc   :  { %4037 = vmatpush.bf16.msra.mxu1 %v7941_v32  ;;  %v7938_v32 = vld [vmem:[%s11734_s0 + $0x150] sm:$0xff] }
  0xff   :  { %v3784_v8 = vpop.f32.mrf.mxu2 }
 0x100   :  { %v3868_v26 = vpop.f32.mrf.mxu3  ;;  %v3785_v45 = vadd.f32 %v3784_v8, %v8717_v41  ;;  %v3960_v12 = vpop.f32.mrf.mxu0  ;;  %v3622_v41 = vadd.f32 %v3621_v17, %v8553_v56  ;;  %v7833_v56 = vld [vmem:[%s11735_s1 + $0x88c] sm:$0xf]  ;;  %v6486_v17 = vld [vmem:[%s11735_s1 + $0x740] sm:$0xf]  ;;  %v7771_v8 = vld [vmem:[%s11735_s1 + $0x69c] sm:$0xf] }
 0x101   :  { %v3869_v50 = vadd.f32 %v3868_v26, %v3780_v48  ;;  %v3708_v0 = vpop.f32.mrf.mxu1  ;;  %v6404_v26 = vld [vmem:[%s11735_s1 + $0x6ec] sm:$0xf0] }
 0x102   :  { %v8819_v59 = vadd.f32 %v3708_v0, %v3620_v4  ;;  %v7802_v4 = vld [vmem:[%s11735_s1 + $0x790] sm:$0xf0]  ;;  %v6407_v49 = vor.u32 %v7771_v8, %v6404_v26  ;;  %v7803_v8 = vld [vmem:[%s11735_s1 + $0x798] sm:$0xf0] }
 0x103   :  { %v8821_v38 = vadd.f32 %v3957_v53, %v3869_v50  ;;  %3999 = vmatmul.bf16.gmra.mxu0 %v6327_v43  ;;  %v7823_v26 = vld [vmem:[%s11735_s1 + $0x838] sm:$0xf0] }
 0x104   :  { %3747 = vmatmul.bf16.gmra.mxu1 %v6567_v29  ;;  %3826 = vmatmul.bf16.gmra.mxu2 %v6403_v10  ;;  %v3625_v29 = vadd.f32 %v8583_v7, %v8551_v55  ;;  %v7940_v10 = vld [vmem:[%s11734_s0 + $0x160] sm:$0xff]  ;;  %v7939_v55 = vld [vmem:[%s11734_s0 + $0x158] sm:$0xff]  ;;  %v3627_v7 = vadd.f32 %v8595_v18, %v8549_v54  ;;  %v7854_v54 = vld [vmem:[%s11735_s1 + $0x934] sm:$0xf] }
 0x105   :  { %3910 = vmatmul.bf16.gmra.mxu3 %v6323_v34  ;;  %4038 = vmatpush.bf16.msra.mxu1 %v7940_v10  ;;  %v6570_v18 = vld [vmem:[%s11735_s1 + $0x7e8] sm:$0xf] }
 0x107   :  { %v3787_v40 = vpop.f32.mrf.mxu2 }
 0x108   :  { %v3871_v48 = vpop.f32.mrf.mxu3  ;;  %v3788_v53 = vadd.f32 %v3787_v40, %v8749_v1  ;;  %v3962_v47 = vpop.f32.mrf.mxu0  ;;  %v6648_v1 = vld [vmem:[%s11735_s1 + $0x8dc] sm:$0xf0] }
 0x109   :  { %v3872_v27 = vadd.f32 %v3871_v48, %v3783_v9  ;;  %v3710_v28 = vpop.f32.mrf.mxu1  ;;  %v6410_v9 = vld [vmem:[%s11735_s1 + $0x6a0] sm:$0xf]  ;;  %v6651_v0 = vor.u32 %v7833_v56, %v6648_v1  ;;  %v6487_v48 = vor.u32 %v7802_v4, %v6486_v17  ;;  %4039 = vmatpush.bf16.msra.mxu1 %v7939_v55 }
 0x10a   :  { %v8831_v22 = vadd.f32 %v3710_v28, %v3622_v41 }
 0x10b   :  { %v8836_v6 = vadd.f32 %v3960_v12, %v3872_v27  ;;  %v6411_v12 = vor.u32 %v7782_v3, %v6410_v9  ;;  %v7937_v3 = vld [vmem:[%s11734_s0 + $0x148] sm:$0xff] }
 0x10d   :  { %4040 = vmatpush.bf16.msra.mxu1 %v7938_v32 }
 0x10f   :  { %v3789_v43 = vpop.f32.mrf.mxu2 }
 0x110   :  { %v3873_v50 = vpop.f32.mrf.mxu3  ;;  %v3790_v34 = vadd.f32 %v3789_v43, %v8755_v11  ;;  %v3965_v40 = vpop.f32.mrf.mxu0  ;;  %v6488_v43 = vld [vmem:[%s11735_s1 + $0x794] sm:$0xf0] }
 0x111   :  { %v3874_v60 = vadd.f32 %v3873_v50, %v3785_v45  ;;  %v3713_v41 = vpop.f32.mrf.mxu1  ;;  %4041 = vmatpush.bf16.msra.mxu1 %v7937_v3  ;;  %v3630_v50 = vadd.f32 %v8629_v46, %v8485_v21  ;;  %v7951_v21 = vld [vmem:[%s11734_s0 + $0x1b8] sm:$0xff]  ;;  %v3632_v46 = vadd.f32 %v8640_v61, %v8529_v42  ;;  %v6816_v61 = vld [vmem:[%s11735_s1 + $0xa2c] sm:$0xf0] }
 0x112   :  { %v8868_v27 = vadd.f32 %v3713_v41, %v3625_v29  ;;  %v7792_v29 = vld [vmem:[%s11735_s1 + $0x744] sm:$0xf]  ;;  %4124 = vmatpush.bf16.msra.mxu2 %v7951_v21  ;;  %v7875_v42 = vld [vmem:[%s11735_s1 + $0x9dc] sm:$0xf] }
 0x113   :  { %v8870_v28 = vadd.f32 %v3962_v47, %v3874_v60  ;;  %4004 = vmatmul.bf16.gmra.mxu0 %v6411_v12  ;;  %v7936_v41 = vld [vmem:[%s11734_s0 + $0x140] sm:$0xff] }
 0x114   :  { %3752 = vmatmul.bf16.gmra.mxu1 %v6651_v0  ;;  %3831 = vmatmul.bf16.gmra.mxu2 %v6487_v48 }
 0x115   :  { %3915 = vmatmul.bf16.gmra.mxu3 %v6407_v49  ;;  %4042 = vmatpush.bf16.msra.mxu1 %v7936_v41  ;;  %v7948_v41 = vld [vmem:[%s11734_s0 + $0x1a0] sm:$0xff] }
 0x117   :  { %v3792_v11 = vpop.f32.mrf.mxu2 }
 0x118   :  { %v3876_v45 = vpop.f32.mrf.mxu3  ;;  %v3793_v47 = vadd.f32 %v3792_v11, %v8785_v24  ;;  %v3967_v17 = vpop.f32.mrf.mxu0  ;;  %v6732_v24 = vld [vmem:[%s11735_s1 + $0x984] sm:$0xf0]  ;;  %v6491_v11 = vor.u32 %v7792_v29, %v6488_v43  ;;  %v7813_v29 = vld [vmem:[%s11735_s1 + $0x7ec] sm:$0xf]  ;;  %v6572_v43 = vld [vmem:[%s11735_s1 + $0x83c] sm:$0xf0] }
 0x119   :  { %v3877_v56 = vadd.f32 %v3876_v45, %v3788_v53  ;;  %v3715_v1 = vpop.f32.mrf.mxu1  ;;  %v6494_v53 = vld [vmem:[%s11735_s1 + $0x748] sm:$0xf]  ;;  %v6735_v10 = vor.u32 %v7854_v54, %v6732_v24  ;;  %v6575_v21 = vor.u32 %v7813_v29, %v6572_v43  ;;  %v7845_v29 = vld [vmem:[%s11735_s1 + $0x8e8] sm:$0xf0]  ;;  %v7562_v43 = vld [vmem:[%s11735_s1 + $0x14] sm:$0xf] }
 0x11a   :  { %v8881_v9 = vadd.f32 %v3715_v1, %v3627_v7  ;;  %v6495_v60 = vor.u32 %v7803_v8, %v6494_v53  ;;  %v6571_v7 = vor.u32 %v7823_v26, %v6570_v18  ;;  %v7949_v18 = vld [vmem:[%s11734_s0 + $0x1a8] sm:$0xff]  ;;  %v7824_v8 = vld [vmem:[%s11735_s1 + $0x840] sm:$0xf0] }
 0x11b   :  { %v8886_v4 = vadd.f32 %v3965_v40, %v3877_v56  ;;  %v7950_v56 = vld [vmem:[%s11734_s0 + $0x1b0] sm:$0xff]  ;;  %v7844_v26 = vld [vmem:[%s11735_s1 + $0x8e0] sm:$0xf0] }
 0x11c   :  { %4125 = vmatpush.bf16.msra.mxu2 %v7950_v56 }
 0x11f   :  { %v3794_v0 = vpop.f32.mrf.mxu2 }
 0x120   :  { %v3878_v12 = vpop.f32.mrf.mxu3  ;;  %v3795_v40 = vadd.f32 %v3794_v0, %v8789_v2  ;;  %v3970_v55 = vpop.f32.mrf.mxu0  ;;  %4126 = vmatpush.bf16.msra.mxu2 %v7949_v18 }
 0x121   :  { %v3879_v48 = vadd.f32 %v3878_v12, %v3790_v34  ;;  %v3718_v49 = vpop.f32.mrf.mxu1 }
 0x122   :  { %v8918_v45 = vadd.f32 %v3718_v49, %v3630_v50  ;;  %v3635_v50 = vadd.f32 %v8591_v13, %v8453_v5  ;;  %v7947_v5 = vld [vmem:[%s11734_s0 + $0x198] sm:$0xff] }
 0x123   :  { %v8920_v32 = vadd.f32 %v3967_v17, %v3879_v48  ;;  %4009 = vmatmul.bf16.gmra.mxu0 %v6495_v60  ;;  %v7959_v13 = vld [vmem:[%s11734_s0 + $0x1f8] sm:$0xff] }
 0x124   :  { %3757 = vmatmul.bf16.gmra.mxu1 %v6735_v10  ;;  %3836 = vmatmul.bf16.gmra.mxu2 %v6571_v7  ;;  %v6819_v10 = vor.u32 %v7875_v42, %v6816_v61 }
 0x125   :  { %3920 = vmatmul.bf16.gmra.mxu3 %v6491_v11  ;;  %4127 = vmatpush.bf16.msra.mxu2 %v7948_v41 }
 0x126   :  { %4213 = vmatpush.bf16.msra.mxu3 %v7959_v13 }
 0x127   :  { %v3797_v2 = vpop.f32.mrf.mxu2 }
 0x128   :  { %v3881_v34 = vpop.f32.mrf.mxu3  ;;  %v3798_v1 = vadd.f32 %v3797_v2, %v8819_v59  ;;  %v3972_v54 = vpop.f32.mrf.mxu0  ;;  %v6654_v59 = vld [vmem:[%s11735_s1 + $0x890] sm:$0xf] }
 0x129   :  { %v3882_v17 = vadd.f32 %v3881_v34, %v3793_v47  ;;  %v3720_v3 = vpop.f32.mrf.mxu1  ;;  %v6578_v47 = vld [vmem:[%s11735_s1 + $0x7f0] sm:$0xf]  ;;  %v6655_v11 = vor.u32 %v7844_v26, %v6654_v59  ;;  %4128 = vmatpush.bf16.msra.mxu2 %v7947_v5  ;;  %v6662_v26 = vld [vmem:[%s11735_s1 + $0x898] sm:$0xf] }
 0x12a   :  { %v8931_v24 = vadd.f32 %v3720_v3, %v3632_v46  ;;  %v6579_v60 = vor.u32 %v7824_v8, %v6578_v47  ;;  %v7958_v3 = vld [vmem:[%s11734_s0 + $0x1f0] sm:$0xff]  ;;  %v7957_v47 = vld [vmem:[%s11734_s0 + $0x1e8] sm:$0xff]  ;;  %v6738_v8 = vld [vmem:[%s11735_s1 + $0x938] sm:$0xf] }
 0x12b   :  { %v8936_v53 = vadd.f32 %v3970_v55, %v3882_v17  ;;  %v7946_v17 = vld [vmem:[%s11734_s0 + $0x190] sm:$0xff]  ;;  %4214 = vmatpush.bf16.msra.mxu3 %v7958_v3 }
 0x12d   :  { %4129 = vmatpush.bf16.msra.mxu2 %v7946_v17 }
 0x12f   :  { %v3799_v0 = vpop.f32.mrf.mxu2  ;;  %4215 = vmatpush.bf16.msra.mxu3 %v7957_v47 }
 0x130   :  { %v3883_v12 = vpop.f32.mrf.mxu3  ;;  %v3800_v48 = vadd.f32 %v3799_v0, %v8831_v22  ;;  %v3975_v7 = vpop.f32.mrf.mxu0  ;;  %v7967_v22 = vld [vmem:[%s11734_s0 + $0x238] sm:$0xff]  ;;  %v7865_v0 = vld [vmem:[%s11735_s1 + $0x988] sm:$0xf0] }
 0x131   :  { %v3884_v49 = vadd.f32 %v3883_v12, %v3795_v40  ;;  %v3723_v55 = vpop.f32.mrf.mxu1  ;;  %4302 = vmatpush.bf16.msra.mxu0 %v7967_v22  ;;  %v3637_v40 = vadd.f32 %v8625_v35, %v8479_v16  ;;  %v7945_v35 = vld [vmem:[%s11734_s0 + $0x188] sm:$0xff]  ;;  %v7834_v12 = vld [vmem:[%s11735_s1 + $0x894] sm:$0xf] }
 0x132   :  { %v8968_v46 = vadd.f32 %v3723_v55, %v3635_v50  ;;  %v5572_v50 = vld [vmem:[%s11735_s1 + $0x64] sm:$0xf0]  ;;  %4130 = vmatpush.bf16.msra.mxu2 %v7945_v35 }
 0x133   :  { %v8970_v2 = vadd.f32 %v3972_v54, %v3884_v49  ;;  %4014 = vmatmul.bf16.gmra.mxu0 %v6579_v60  ;;  %v7966_v54 = vld [vmem:[%s11734_s0 + $0x230] sm:$0xff]  ;;  %v6663_v49 = vor.u32 %v7845_v29, %v6662_v26  ;;  %v5575_v55 = vor.u32 %v7562_v43, %v5572_v50  ;;  %v7953_v26 = vld [vmem:[%s11734_s0 + $0x1c8] sm:$0xff]  ;;  %v7583_v50 = vld [vmem:[%s11735_s1 + $0xbc] sm:$0xf] }
 0x134   :  { %3762 = vmatmul.bf16.gmra.mxu1 %v6819_v10  ;;  %3841 = vmatmul.bf16.gmra.mxu2 %v6655_v11  ;;  %v6656_v10 = vld [vmem:[%s11735_s1 + $0x8e4] sm:$0xf0]  ;;  %v7956_v11 = vld [vmem:[%s11734_s0 + $0x1e0] sm:$0xff] }
 0x135   :  { %3925 = vmatmul.bf16.gmra.mxu3 %v6575_v21  ;;  %4303 = vmatpush.bf16.msra.mxu0 %v7966_v54  ;;  %v7964_v21 = vld [vmem:[%s11734_s0 + $0x220] sm:$0xff]  ;;  %v7955_v54 = vld [vmem:[%s11734_s0 + $0x1d8] sm:$0xff]  ;;  %v7961_v29 = vld [vmem:[%s11734_s0 + $0x208] sm:$0xff] }
 0x136   :  { %4216 = vmatpush.bf16.msra.mxu3 %v7956_v11  ;;  %v7952_v11 = vld [vmem:[%s11734_s0 + $0x1c0] sm:$0xff] }
 0x137   :  { %v3802_v34 = vpop.f32.mrf.mxu2 }
 0x138   :  { %v3886_v56 = vpop.f32.mrf.mxu3  ;;  %v3803_v18 = vadd.f32 %v3802_v34, %v8868_v27  ;;  %v3977_v59 = vpop.f32.mrf.mxu0  ;;  %v7965_v27 = vld [vmem:[%s11734_s0 + $0x228] sm:$0xff]  ;;  %v6739_v34 = vor.u32 %v7865_v0, %v6738_v8  ;;  %v5656_v0 = vld [vmem:[%s11735_s1 + $0x10c] sm:$0xf0] }
 0x139   :  { %v3887_v42 = vadd.f32 %v3886_v56, %v3798_v1  ;;  %v3725_v61 = vpop.f32.mrf.mxu1  ;;  %4304 = vmatpush.bf16.msra.mxu0 %v7965_v27  ;;  %v6659_v56 = vor.u32 %v7834_v12, %v6656_v10  ;;  %v7886_v12 = vld [vmem:[%s11735_s1 + $0xa30] sm:$0xf0]  ;;  %v7855_v10 = vld [vmem:[%s11735_s1 + $0x93c] sm:$0xf] }
 0x13a   :  { %v8993_v16 = vadd.f32 %v3725_v61, %v3637_v40  ;;  %4217 = vmatpush.bf16.msra.mxu3 %v7955_v54  ;;  %v7962_v61 = vld [vmem:[%s11734_s0 + $0x210] sm:$0xff] }
 0x13b   :  { %v9004_v1 = vadd.f32 %v3975_v7, %v3887_v42  ;;  %v7944_v7 = vld [vmem:[%s11734_s0 + $0x180] sm:$0xff]  ;;  %v7954_v42 = vld [vmem:[%s11734_s0 + $0x1d0] sm:$0xff] }
 0x13c   :  { %4131 = vmatpush.bf16.msra.mxu2 %v7944_v7  ;;  %v5659_v7 = vor.u32 %v7583_v50, %v5656_v0 }
 0x13d   :  { %4305 = vmatpush.bf16.msra.mxu0 %v7964_v21  ;;  %v7960_v21 = vld [vmem:[%s11734_s0 + $0x200] sm:$0xff] }
 0x13e   :  { %4218 = vmatpush.bf16.msra.mxu3 %v7954_v42 }
 0x13f   :  { %v3804_v60 = vpop.f32.mrf.mxu2 }
 0x140   :  { %v3888_v41 = vpop.f32.mrf.mxu3  ;;  %v3805_v5 = vadd.f32 %v3804_v60, %v8881_v9  ;;  %v3980_v40 = vpop.f32.mrf.mxu0  ;;  %v7963_v9 = vld [vmem:[%s11734_s0 + $0x218] sm:$0xff]  ;;  %v6740_v60 = vld [vmem:[%s11735_s1 + $0x98c] sm:$0xf0] }
 0x141   :  { %v3889_v13 = vadd.f32 %v3888_v41, %v3800_v48  ;;  %v3728_v22 = vpop.f32.mrf.mxu1  ;;  %4306 = vmatpush.bf16.msra.mxu0 %v7963_v9  ;;  %v6743_v54 = vor.u32 %v7855_v10, %v6740_v60 }
 0x142   :  { %v9041_v17 = vadd.f32 %v3728_v22, %v8635_v57  ;;  %4219 = vmatpush.bf16.msra.mxu3 %v7953_v26  ;;  %v6830_v26 = vld [vmem:[%s11735_s1 + $0x9e8] sm:$0xf] }
 0x143   :  { %v9043_v3 = vadd.f32 %v3977_v59, %v3889_v13  ;;  %4019 = vmatmul.bf16.gmra.mxu0 %v6663_v49 }
 0x144   :  { %4043 = vmatmul.bf16.vlgmr.msra.gmra.mxu1 %v5575_v55  ;;  %3846 = vmatmul.bf16.gmra.mxu2 %v6739_v34 }
 0x145   :  { %3930 = vmatmul.bf16.gmra.mxu3 %v6659_v56  ;;  %4307 = vmatpush.bf16.msra.mxu0 %v7962_v61 }
 0x146   :  { %4220 = vmatpush.bf16.msra.mxu3 %v7952_v11 }
 0x147   :  { %v3807_v57 = vpop.f32.mrf.mxu2 }
 0x148   :  { %v3891_v48 = vpop.f32.mrf.mxu3  ;;  %v3808_v59 = vadd.f32 %v3807_v57, %v8918_v45  ;;  %v3982_v27 = vpop.f32.mrf.mxu0  ;;  %v6822_v45 = vld [vmem:[%s11735_s1 + $0x9e0] sm:$0xf] }
 0x149   :  { %v3892_v35 = vadd.f32 %v3891_v48, %v3803_v18  ;;  %v3730_v47 = vpop.f32.mrf.mxu1  ;;  %v7866_v18 = vld [vmem:[%s11735_s1 + $0x990] sm:$0xf0]  ;;  %4308 = vmatpush.bf16.msra.mxu0 %v7961_v29  ;;  %v6823_v56 = vor.u32 %v7886_v12, %v6822_v45  ;;  %v6824_v29 = vld [vmem:[%s11735_s1 + $0xa34] sm:$0xf0] }
 0x14a   :  { %v9059_v8 = vadd.f32 %v3730_v47, %v8666_v30  ;;  %v6746_v30 = vld [vmem:[%s11735_s1 + $0x940] sm:$0xf]  ;;  %v5578_v45 = vld [vmem:[%s11735_s1 + $0x18] sm:$0xf] }
 0x14b   :  { %v9067_v43 = vadd.f32 %v3980_v40, %v3892_v35  ;;  %v6747_v55 = vor.u32 %v7866_v18, %v6746_v30  ;;  %v7573_v30 = vld [vmem:[%s11735_s1 + $0x68] sm:$0xf0] }
 0x14d   :  { %4309 = vmatpush.bf16.msra.mxu0 %v7960_v21 }
 0x14f   :  { %v3809_v41 = vpop.f32.mrf.mxu2 }
 0x150   :  { %v3893_v49 = vpop.f32.mrf.mxu3  ;;  %v3810_v13 = vadd.f32 %v3809_v41, %v8931_v24  ;;  %v3985_v34 = vpop.f32.mrf.mxu0 }
 0x151   :  { %v3894_v22 = vadd.f32 %v3893_v49, %v3805_v5  ;;  %v3733_v40 = vpop.f32.mrf.mxu1 }
 0x152   :  { %v9101_v9 = vadd.f32 %v3733_v40, %v8674_v62 }
 0x153   :  { %v9103_v57 = vadd.f32 %v3982_v27, %v3894_v22  ;;  %4024 = vmatmul.bf16.gmra.mxu0 %v6747_v55  ;;  %v7876_v27 = vld [vmem:[%s11735_s1 + $0x9e4] sm:$0xf] }
 0x154   :  { %4048 = vmatmul.bf16.gmra.mxu1 %v5659_v7  ;;  %3851 = vmatmul.bf16.gmra.mxu2 %v6823_v56  ;;  %v6827_v55 = vor.u32 %v7876_v27, %v6824_v29  ;;  %v5579_v7 = vor.u32 %v7573_v30, %v5578_v45 }
 0x155   :  { %3935 = vmatmul.bf16.gmra.mxu3 %v6743_v54 }
 0x157   :  { %v3812_v48 = vpop.f32.mrf.mxu2 }
 0x158   :  { %v3896_v42 = vpop.f32.mrf.mxu3  ;;  %v3813_v24 = vadd.f32 %v3812_v48, %v8968_v46  ;;  %v3987_v35 = vpop.f32.mrf.mxu0  ;;  %v7887_v46 = vld [vmem:[%s11735_s1 + $0xa38] sm:$0xf0] }
 0x159   :  { %v3897_v5 = vadd.f32 %v3896_v42, %v3808_v59  ;;  %v3735_v61 = vpop.f32.mrf.mxu1  ;;  %v7604_v59 = vld [vmem:[%s11735_s1 + $0x164] sm:$0xf]  ;;  %v6831_v0 = vor.u32 %v7887_v46, %v6830_v26  ;;  %v5824_v42 = vld [vmem:[%s11735_s1 + $0x25c] sm:$0xf0] }
 0x15a   :  { %v9107_v47 = vadd.f32 %v3735_v61, %v8708_v33  ;;  %v5740_v33 = vld [vmem:[%s11735_s1 + $0x1b4] sm:$0xf0]  ;;  %v7563_v61 = vld [vmem:[%s11735_s1 + $0x1c] sm:$0xf] }
 0x15b   :  { %v9109_v62 = vadd.f32 %v3985_v34, %v3897_v5  ;;  %v5743_v12 = vor.u32 %v7604_v59, %v5740_v33  ;;  %v7594_v5 = vld [vmem:[%s11735_s1 + $0x110] sm:$0xf0] }
 0x15f   :  { %v3814_v18 = vpop.f32.mrf.mxu2 }
 0x160   :  { %v3898_v50 = vpop.f32.mrf.mxu3  ;;  %v3815_v10 = vadd.f32 %v3814_v18, %v8993_v16  ;;  %v3990_v49 = vpop.f32.mrf.mxu0 }
 0x161   :  { %v3899_v60 = vadd.f32 %v3898_v50, %v3810_v13  ;;  %v3738_v41 = vpop.f32.mrf.mxu1 }
 0x162   :  { %v9137_v11 = vadd.f32 %v3738_v41, %v8715_v52  ;;  %v7625_v52 = vld [vmem:[%s11735_s1 + $0x20c] sm:$0xf] }
 0x163   :  { %v9139_v21 = vadd.f32 %v3987_v35, %v3899_v60  ;;  %4029 = vmatmul.bf16.gmra.mxu0 %v6831_v0  ;;  %v5580_v35 = vld [vmem:[%s11735_s1 + $0x6c] sm:$0xf0]  ;;  %v5827_v46 = vor.u32 %v7625_v52, %v5824_v42 }
 0x164   :  { %4053 = vmatmul.bf16.gmra.mxu1 %v5743_v12  ;;  %4132 = vmatmul.bf16.vlgmr.msra.gmra.mxu2 %v5579_v7  ;;  %v5583_v50 = vor.u32 %v7563_v61, %v5580_v35 }
 0x165   :  { %3940 = vmatmul.bf16.gmra.mxu3 %v6827_v55 }
 0x167   :  { %v3817_v22 = vpop.f32.mrf.mxu2 }
 0x168   :  { %v3901_v40 = vpop.f32.mrf.mxu3  ;;  %v3818_v34 = vadd.f32 %v3817_v22, %v9041_v17  ;;  %v3992_v13 = vpop.f32.mrf.mxu0  ;;  %v5662_v17 = vld [vmem:[%s11735_s1 + $0xc0] sm:$0xf] }
 0x169   :  { %v3902_v56 = vadd.f32 %v3901_v40, %v3813_v24  ;;  %v3740_v16 = vpop.f32.mrf.mxu1  ;;  %v5586_v24 = vld [vmem:[%s11735_s1 + $0x20] sm:$0xf]  ;;  %v5663_v18 = vor.u32 %v7594_v5, %v5662_v17  ;;  %v5908_v40 = vld [vmem:[%s11735_s1 + $0x304] sm:$0xf0] }
 0x16a   :  { %v9143_v54 = vadd.f32 %v3740_v16, %v8747_v39  ;;  %v7574_v39 = vld [vmem:[%s11735_s1 + $0x70] sm:$0xf0]  ;;  %v7584_v16 = vld [vmem:[%s11735_s1 + $0xc4] sm:$0xf] }
 0x16b   :  { %v9145_v48 = vadd.f32 %v3990_v49, %v3902_v56  ;;  %v5587_v59 = vor.u32 %v7574_v39, %v5586_v24  ;;  %v7615_v56 = vld [vmem:[%s11735_s1 + $0x1b8] sm:$0xf0] }
 0x16f   :  { %v3819_v27 = vpop.f32.mrf.mxu2 }
 0x170   :  { %v3903_v26 = vpop.f32.mrf.mxu3  ;;  %v3820_v33 = vadd.f32 %v3819_v27, %v9059_v8  ;;  %v3995_v30 = vpop.f32.mrf.mxu0 }
 0x171   :  { %v3904_v29 = vadd.f32 %v3903_v26, %v3815_v10  ;;  %v3743_v45 = vpop.f32.mrf.mxu1 }
 0x172   :  { %v9173_v0 = vadd.f32 %v3743_v45, %v8593_v15  ;;  %v7646_v15 = vld [vmem:[%s11735_s1 + $0x2b4] sm:$0xf] }
 0x173   :  { %v9175_v12 = vadd.f32 %v3992_v13, %v3904_v29  ;;  %4310 = vmatmul.bf16.vlgmr.msra.gmra.mxu0 %v5587_v59  ;;  %v5664_v13 = vld [vmem:[%s11735_s1 + $0x114] sm:$0xf0]  ;;  %v5911_v17 = vor.u32 %v7646_v15, %v5908_v40 }
 0x174   :  { %4058 = vmatmul.bf16.gmra.mxu1 %v5827_v46  ;;  %4137 = vmatmul.bf16.gmra.mxu2 %v5663_v18  ;;  %v5667_v26 = vor.u32 %v7584_v16, %v5664_v13 }
 0x175   :  { %4221 = vmatmul.bf16.vlgmr.msra.gmra.mxu3 %v5583_v50 }
 0x177   :  { %v3822_v60 = vpop.f32.mrf.mxu2 }
 0x178   :  { %v3906_v41 = vpop.f32.mrf.mxu3  ;;  %v3823_v49 = vadd.f32 %v3822_v60, %v9101_v9  ;;  %v3997_v10 = vpop.f32.mrf.mxu0  ;;  %v5746_v9 = vld [vmem:[%s11735_s1 + $0x168] sm:$0xf] }
 0x179   :  { %v3907_v55 = vadd.f32 %v3906_v41, %v3818_v34  ;;  %v3745_v8 = vpop.f32.mrf.mxu1  ;;  %v5670_v34 = vld [vmem:[%s11735_s1 + $0xc8] sm:$0xf]  ;;  %v5747_v27 = vor.u32 %v7615_v56, %v5746_v9  ;;  %v5992_v41 = vld [vmem:[%s11735_s1 + $0x3ac] sm:$0xf0] }
 0x17a   :  { %v9179_v7 = vadd.f32 %v3745_v8, %v8627_v44  ;;  %v7595_v44 = vld [vmem:[%s11735_s1 + $0x118] sm:$0xf0]  ;;  %v7605_v8 = vld [vmem:[%s11735_s1 + $0x16c] sm:$0xf] }
 0x17b   :  { %v9181_v22 = vadd.f32 %v3995_v30, %v3907_v55  ;;  %v5671_v24 = vor.u32 %v7595_v44, %v5670_v34  ;;  %v7636_v55 = vld [vmem:[%s11735_s1 + $0x260] sm:$0xf0] }
 0x17f   :  { %v3824_v52 = vpop.f32.mrf.mxu2 }
 0x180   :  { %v3908_v42 = vpop.f32.mrf.mxu3  ;;  %v3825_v39 = vadd.f32 %v3824_v52, %v9107_v47  ;;  %v4000_v35 = vpop.f32.mrf.mxu0 }
 0x181   :  { %v3909_v5 = vadd.f32 %v3908_v42, %v3820_v33  ;;  %v3748_v61 = vpop.f32.mrf.mxu1 }
 0x182   :  { %v9209_v46 = vadd.f32 %v3748_v61, %v8638_v58  ;;  %v7667_v58 = vld [vmem:[%s11735_s1 + $0x35c] sm:$0xf] }
 0x183   :  { %v9211_v59 = vadd.f32 %v3997_v10, %v3909_v5  ;;  %4315 = vmatmul.bf16.gmra.mxu0 %v5671_v24  ;;  %v5748_v10 = vld [vmem:[%s11735_s1 + $0x1bc] sm:$0xf0]  ;;  %v5995_v9 = vor.u32 %v7667_v58, %v5992_v41  ;;  %v3667_v5 = vadd.f32 %v8705_v23, %v8517_v37  ;;  %v5914_v37 = vld [vmem:[%s11735_s1 + $0x2b8] sm:$0xf]  ;;  %v3670_v58 = vadd.f32 %v8712_v51, %v8483_v20 }
 0x184   :  { %4063 = vmatmul.bf16.gmra.mxu1 %v5911_v17  ;;  %4142 = vmatmul.bf16.gmra.mxu2 %v5747_v27  ;;  %v5751_v42 = vor.u32 %v7605_v8, %v5748_v10  ;;  %v5838_v23 = vld [vmem:[%s11735_s1 + $0x218] sm:$0xf]  ;;  %v3672_v20 = vadd.f32 %v8744_v14, %v8495_v25  ;;  %v5998_v25 = vld [vmem:[%s11735_s1 + $0x360] sm:$0xf] }
 0x185   :  { %4226 = vmatmul.bf16.gmra.mxu3 %v5667_v26  ;;  %v5922_v14 = vld [vmem:[%s11735_s1 + $0x2c0] sm:$0xf] }
 0x187   :  { %v3827_v29 = vpop.f32.mrf.mxu2 }
 0x188   :  { %v3911_v45 = vpop.f32.mrf.mxu3  ;;  %v3828_v30 = vadd.f32 %v3827_v29, %v9137_v11  ;;  %v4002_v33 = vpop.f32.mrf.mxu0  ;;  %v5830_v11 = vld [vmem:[%s11735_s1 + $0x210] sm:$0xf] }
 0x189   :  { %v3912_v18 = vadd.f32 %v3911_v45, %v3823_v49  ;;  %v3750_v47 = vpop.f32.mrf.mxu1  ;;  %v5754_v49 = vld [vmem:[%s11735_s1 + $0x170] sm:$0xf]  ;;  %v5831_v52 = vor.u32 %v7636_v55, %v5830_v11  ;;  %v7688_v45 = vld [vmem:[%s11735_s1 + $0x404] sm:$0xf] }
 0x18a   :  { %v9215_v50 = vadd.f32 %v3750_v47, %v8669_v31  ;;  %v7616_v31 = vld [vmem:[%s11735_s1 + $0x1c0] sm:$0xf0]  ;;  %v7626_v47 = vld [vmem:[%s11735_s1 + $0x214] sm:$0xf] }
 0x18b   :  { %v9217_v60 = vadd.f32 %v4000_v35, %v3912_v18  ;;  %v5755_v34 = vor.u32 %v7616_v31, %v5754_v49  ;;  %v6076_v18 = vld [vmem:[%s11735_s1 + $0x454] sm:$0xf0] }
 0x18c   :  { %v6079_v49 = vor.u32 %v7688_v45, %v6076_v18 }
 0x18f   :  { %v3829_v15 = vpop.f32.mrf.mxu2 }
 0x190   :  { %v3913_v40 = vpop.f32.mrf.mxu3  ;;  %v3830_v44 = vadd.f32 %v3829_v15, %v9143_v54  ;;  %v4005_v13 = vpop.f32.mrf.mxu0 }
 0x191   :  { %v3914_v56 = vadd.f32 %v3913_v40, %v3825_v39  ;;  %v3753_v16 = vpop.f32.mrf.mxu1 }
 0x192   :  { %v9245_v17 = vadd.f32 %v3753_v16, %v8677_v36 }
 0x193   :  { %v9247_v24 = vadd.f32 %v4002_v33, %v3914_v56  ;;  %4320 = vmatmul.bf16.gmra.mxu0 %v5755_v34  ;;  %v5832_v33 = vld [vmem:[%s11735_s1 + $0x264] sm:$0xf0] }
 0x194   :  { %4068 = vmatmul.bf16.gmra.mxu1 %v5995_v9  ;;  %4147 = vmatmul.bf16.gmra.mxu2 %v5831_v52  ;;  %v5835_v9 = vor.u32 %v7626_v47, %v5832_v33 }
 0x195   :  { %4231 = vmatmul.bf16.gmra.mxu3 %v5751_v42 }
 0x197   :  { %v3832_v61 = vpop.f32.mrf.mxu2 }
 0x198   :  { %v3916_v35 = vpop.f32.mrf.mxu3  ;;  %v3833_v54 = vadd.f32 %v3832_v61, %v9173_v0  ;;  %v4007_v26 = vpop.f32.mrf.mxu0  ;;  %v7637_v0 = vld [vmem:[%s11735_s1 + $0x268] sm:$0xf0] }
 0x199   :  { %v3917_v39 = vadd.f32 %v3916_v35, %v3828_v30  ;;  %v3755_v27 = vpop.f32.mrf.mxu1  ;;  %v7657_v30 = vld [vmem:[%s11735_s1 + $0x308] sm:$0xf0]  ;;  %v5839_v31 = vor.u32 %v7637_v0, %v5838_v23  ;;  %v6160_v35 = vld [vmem:[%s11735_s1 + $0x4fc] sm:$0xf0] }
 0x19a   :  { %v9252_v29 = vadd.f32 %v3755_v27, %v3667_v5  ;;  %v5915_v40 = vor.u32 %v7657_v30, %v5914_v37  ;;  %v7709_v61 = vld [vmem:[%s11735_s1 + $0x4ac] sm:$0xf]  ;;  %v5916_v27 = vld [vmem:[%s11735_s1 + $0x30c] sm:$0xf0] }
 0x19b   :  { %v9254_v36 = vadd.f32 %v4005_v13, %v3917_v39  ;;  %v7647_v39 = vld [vmem:[%s11735_s1 + $0x2bc] sm:$0xf]  ;;  %v6163_v23 = vor.u32 %v7709_v61, %v6160_v35  ;;  %v7668_v35 = vld [vmem:[%s11735_s1 + $0x364] sm:$0xf] }
 0x19c   :  { %v7699_v61 = vld [vmem:[%s11735_s1 + $0x458] sm:$0xf0] }
 0x19f   :  { %v3834_v41 = vpop.f32.mrf.mxu2 }
 0x1a0   :  { %v3918_v11 = vpop.f32.mrf.mxu3  ;;  %v3835_v55 = vadd.f32 %v3834_v41, %v9179_v7  ;;  %v4010_v15 = vpop.f32.mrf.mxu0 }
 0x1a1   :  { %v3919_v8 = vadd.f32 %v3918_v11, %v3830_v44  ;;  %v3758_v10 = vpop.f32.mrf.mxu1  ;;  %v5919_v11 = vor.u32 %v7647_v39, %v5916_v27 }
 0x1a2   :  { %v9283_v34 = vadd.f32 %v3758_v10, %v3670_v58 }
 0x1a3   :  { %v9285_v56 = vadd.f32 %v4007_v26, %v3919_v8  ;;  %4325 = vmatmul.bf16.gmra.mxu0 %v5839_v31  ;;  %v11742_v26 = vld [vmem:[#allocation3_spill] sm:$0xff]  ;;  %v11744_v8 = vld [vmem:[#allocation4_spill] sm:$0xff] }
 0x1a4   :  { %4073 = vmatmul.bf16.gmra.mxu1 %v6079_v49  ;;  %4152 = vmatmul.bf16.gmra.mxu2 %v5915_v40  ;;  %v3675_v45 = vadd.f32 %v11742_v26, %v8481_v19  ;;  %v11743_v19 = vld [vmem:[#allocation2_spill] sm:$0xff] }
 0x1a5   :  { %4236 = vmatmul.bf16.gmra.mxu3 %v5835_v9  ;;  %v3677_v10 = vadd.f32 %v11744_v8, %v11743_v19 }
 0x1a7   :  { %v3837_v51 = vpop.f32.mrf.mxu2 }
 0x1a8   :  { %v3921_v16 = vpop.f32.mrf.mxu3  ;;  %v3838_v7 = vadd.f32 %v3837_v51, %v9209_v46  ;;  %v4012_v52 = vpop.f32.mrf.mxu0  ;;  %v7658_v46 = vld [vmem:[%s11735_s1 + $0x310] sm:$0xf0] }
 0x1a9   :  { %v3922_v44 = vadd.f32 %v3921_v16, %v3833_v54  ;;  %v3760_v13 = vpop.f32.mrf.mxu1  ;;  %v7678_v54 = vld [vmem:[%s11735_s1 + $0x3b0] sm:$0xf0]  ;;  %v5923_v0 = vor.u32 %v7658_v46, %v5922_v14 }
 0x1aa   :  { %v9290_v42 = vadd.f32 %v3760_v13, %v3672_v20  ;;  %v5999_v41 = vor.u32 %v7678_v54, %v5998_v25  ;;  %v6244_v13 = vld [vmem:[%s11735_s1 + $0x5a4] sm:$0xf0]  ;;  %v6000_v25 = vld [vmem:[%s11735_s1 + $0x3b4] sm:$0xf0] }
 0x1ab   :  { %v9292_v5 = vadd.f32 %v4010_v15, %v3922_v44  ;;  %v7730_v44 = vld [vmem:[%s11735_s1 + $0x554] sm:$0xf] }
 0x1ac   :  { %v6247_v54 = vor.u32 %v7730_v44, %v6244_v13 }
 0x1af   :  { %v3839_v18 = vpop.f32.mrf.mxu2 }
 0x1b0   :  { %v3923_v37 = vpop.f32.mrf.mxu3  ;;  %v3840_v30 = vadd.f32 %v3839_v18, %v9215_v50  ;;  %v4015_v58 = vpop.f32.mrf.mxu0 }
 0x1b1   :  { %v3924_v47 = vadd.f32 %v3923_v37, %v3835_v55  ;;  %v3763_v33 = vpop.f32.mrf.mxu1 }
 0x1b2   :  { %v9321_v49 = vadd.f32 %v3763_v33, %v3675_v45 }
 0x1b3   :  { %v9323_v31 = vadd.f32 %v4012_v52, %v3924_v47  ;;  %4330 = vmatmul.bf16.gmra.mxu0 %v5923_v0  ;;  %v6082_v52 = vld [vmem:[%s11735_s1 + $0x408] sm:$0xf] }
 0x1b4   :  { %4078 = vmatmul.bf16.gmra.mxu1 %v6163_v23  ;;  %4157 = vmatmul.bf16.gmra.mxu2 %v5999_v41  ;;  %v6083_v37 = vor.u32 %v7699_v61, %v6082_v52  ;;  %v6003_v23 = vor.u32 %v7668_v35, %v6000_v25 }
 0x1b5   :  { %4241 = vmatmul.bf16.gmra.mxu3 %v5919_v11 }
 0x1b7   :  { %v3842_v15 = vpop.f32.mrf.mxu2 }
 0x1b8   :  { %v3926_v40 = vpop.f32.mrf.mxu3  ;;  %v3843_v50 = vadd.f32 %v3842_v15, %v9245_v17  ;;  %v4017_v20 = vpop.f32.mrf.mxu0  ;;  %v6006_v17 = vld [vmem:[%s11735_s1 + $0x368] sm:$0xf]  ;;  %v6090_v15 = vld [vmem:[%s11735_s1 + $0x410] sm:$0xf] }
 0x1b9   :  { %v3927_v55 = vadd.f32 %v3926_v40, %v3838_v7  ;;  %v3765_v9 = vpop.f32.mrf.mxu1  ;;  %v7679_v7 = vld [vmem:[%s11735_s1 + $0x3b8] sm:$0xf0]  ;;  %v7720_v40 = vld [vmem:[%s11735_s1 + $0x500] sm:$0xf0] }
 0x1ba   :  { %v9328_v51 = vadd.f32 %v3765_v9, %v3677_v10  ;;  %v6007_v39 = vor.u32 %v7679_v7, %v6006_v17  ;;  %v6328_v10 = vld [vmem:[%s11735_s1 + $0x64c] sm:$0xf0] }
 0x1bb   :  { %v9330_v16 = vadd.f32 %v4015_v58, %v3927_v55  ;;  %v6084_v55 = vld [vmem:[%s11735_s1 + $0x45c] sm:$0xf0] }
 0x1bf   :  { %v3844_v14 = vpop.f32.mrf.mxu2 }
 0x1c0   :  { %v3928_v46 = vpop.f32.mrf.mxu3  ;;  %v3845_v27 = vadd.f32 %v3844_v14, %v9252_v29  ;;  %v4020_v45 = vpop.f32.mrf.mxu0 }
 0x1c1   :  { %v3929_v26 = vadd.f32 %v3928_v46, %v3840_v30  ;;  %v4044_v18 = vpop.f32.mrf.mxu1 }
 0x1c2   :  { %v9358_v0 = vadd.f32 %v4044_v18, %v8791_v63  ;;  %v7751_v63 = vld [vmem:[%s11735_s1 + $0x5fc] sm:$0xf] }
 0x1c3   :  { %v9360_v47 = vadd.f32 %v4017_v20, %v3929_v26  ;;  %4335 = vmatmul.bf16.gmra.mxu0 %v6007_v39  ;;  %v6331_v44 = vor.u32 %v7751_v63, %v6328_v10 }
 0x1c4   :  { %4083 = vmatmul.bf16.gmra.mxu1 %v6247_v54  ;;  %4162 = vmatmul.bf16.gmra.mxu2 %v6083_v37 }
 0x1c5   :  { %4246 = vmatmul.bf16.gmra.mxu3 %v6003_v23  ;;  %v6412_v23 = vld [vmem:[%s11735_s1 + $0x6f4] sm:$0xf0] }
 0x1c7   :  { %v3847_v33 = vpop.f32.mrf.mxu2 }
 0x1c8   :  { %v3931_v58 = vpop.f32.mrf.mxu3  ;;  %v3848_v41 = vadd.f32 %v3847_v33, %v9283_v34  ;;  %v4022_v29 = vpop.f32.mrf.mxu0  ;;  %v6166_v34 = vld [vmem:[%s11735_s1 + $0x4b0] sm:$0xf]  ;;  %v6174_v33 = vld [vmem:[%s11735_s1 + $0x4b8] sm:$0xf] }
 0x1c9   :  { %v3932_v11 = vadd.f32 %v3931_v58, %v3843_v50  ;;  %v4046_v30 = vpop.f32.mrf.mxu1  ;;  %v7689_v50 = vld [vmem:[%s11735_s1 + $0x40c] sm:$0xf]  ;;  %v6167_v35 = vor.u32 %v7720_v40, %v6166_v34 }
 0x1ca   :  { %v9364_v19 = vadd.f32 %v4046_v30, %v8821_v38  ;;  %v7700_v38 = vld [vmem:[%s11735_s1 + $0x460] sm:$0xf0]  ;;  %v6087_v25 = vor.u32 %v7689_v50, %v6084_v55  ;;  %v7741_v58 = vld [vmem:[%s11735_s1 + $0x5a8] sm:$0xf0] }
 0x1cb   :  { %v9366_v8 = vadd.f32 %v4020_v45, %v3932_v11  ;;  %v6091_v13 = vor.u32 %v7700_v38, %v6090_v15  ;;  %v6168_v11 = vld [vmem:[%s11735_s1 + $0x504] sm:$0xf0] }
 0x1cf   :  { %v3849_v9 = vpop.f32.mrf.mxu2 }
 0x1d0   :  { %v3933_v20 = vpop.f32.mrf.mxu3  ;;  %v3850_v52 = vadd.f32 %v3849_v9, %v9290_v42  ;;  %v4025_v7 = vpop.f32.mrf.mxu0 }
 0x1d1   :  { %v3934_v17 = vadd.f32 %v3933_v20, %v3845_v27  ;;  %v4049_v61 = vpop.f32.mrf.mxu1 }
 0x1d2   :  { %v9394_v14 = vadd.f32 %v4049_v61, %v8836_v6  ;;  %v7772_v6 = vld [vmem:[%s11735_s1 + $0x6a4] sm:$0xf] }
 0x1d3   :  { %v9396_v46 = vadd.f32 %v4022_v29, %v3934_v17  ;;  %4340 = vmatmul.bf16.gmra.mxu0 %v6091_v13  ;;  %v6415_v63 = vor.u32 %v7772_v6, %v6412_v23 }
 0x1d4   :  { %4088 = vmatmul.bf16.gmra.mxu1 %v6331_v44  ;;  %4167 = vmatmul.bf16.gmra.mxu2 %v6167_v35 }
 0x1d5   :  { %4251 = vmatmul.bf16.gmra.mxu3 %v6087_v25  ;;  %v6496_v25 = vld [vmem:[%s11735_s1 + $0x79c] sm:$0xf0] }
 0x1d7   :  { %v3852_v54 = vpop.f32.mrf.mxu2 }
 0x1d8   :  { %v3936_v39 = vpop.f32.mrf.mxu3  ;;  %v3853_v26 = vadd.f32 %v3852_v54, %v9321_v49  ;;  %v4027_v42 = vpop.f32.mrf.mxu0  ;;  %v6250_v49 = vld [vmem:[%s11735_s1 + $0x558] sm:$0xf]  ;;  %v6334_v54 = vld [vmem:[%s11735_s1 + $0x600] sm:$0xf] }
 0x1d9   :  { %v3937_v45 = vadd.f32 %v3936_v39, %v3848_v41  ;;  %v4051_v27 = vpop.f32.mrf.mxu1  ;;  %v7710_v41 = vld [vmem:[%s11735_s1 + $0x4b4] sm:$0xf]  ;;  %v6251_v50 = vor.u32 %v7741_v58, %v6250_v49 }
 0x1da   :  { %v9400_v18 = vadd.f32 %v4051_v27, %v8870_v28  ;;  %v7721_v28 = vld [vmem:[%s11735_s1 + $0x508] sm:$0xf0]  ;;  %v6171_v55 = vor.u32 %v7710_v41, %v6168_v11  ;;  %v7762_v39 = vld [vmem:[%s11735_s1 + $0x650] sm:$0xf0] }
 0x1db   :  { %v9402_v37 = vadd.f32 %v4025_v7, %v3937_v45  ;;  %v6175_v10 = vor.u32 %v7721_v28, %v6174_v33  ;;  %v6252_v45 = vld [vmem:[%s11735_s1 + $0x5ac] sm:$0xf0]  ;;  %v6335_v41 = vor.u32 %v7762_v39, %v6334_v54 }
 0x1df   :  { %v3854_v29 = vpop.f32.mrf.mxu2 }
 0x1e0   :  { %v3938_v30 = vpop.f32.mrf.mxu3  ;;  %v3855_v34 = vadd.f32 %v3854_v29, %v9328_v51  ;;  %v4030_v38 = vpop.f32.mrf.mxu0 }
 0x1e1   :  { %v3939_v15 = vadd.f32 %v3938_v30, %v3850_v52  ;;  %v4054_v40 = vpop.f32.mrf.mxu1 }
 0x1e2   :  { %v9430_v9 = vadd.f32 %v4054_v40, %v8886_v4  ;;  %v7793_v4 = vld [vmem:[%s11735_s1 + $0x74c] sm:$0xf] }
 0x1e3   :  { %v9432_v20 = vadd.f32 %v4027_v42, %v3939_v15  ;;  %4345 = vmatmul.bf16.gmra.mxu0 %v6175_v10  ;;  %v6499_v6 = vor.u32 %v7793_v4, %v6496_v25 }
 0x1e4   :  { %4093 = vmatmul.bf16.gmra.mxu1 %v6415_v63  ;;  %4172 = vmatmul.bf16.gmra.mxu2 %v6251_v50 }
 0x1e5   :  { %4256 = vmatmul.bf16.gmra.mxu3 %v6171_v55  ;;  %v6580_v55 = vld [vmem:[%s11735_s1 + $0x844] sm:$0xf0] }
 0x1e7   :  { %v4133_v13 = vpop.f32.mrf.mxu2 }
 0x1e8   :  { %v3941_v44 = vpop.f32.mrf.mxu3  ;;  %v4134_v7 = vadd.f32 %v4133_v13, %v9358_v0  ;;  %v4032_v51 = vpop.f32.mrf.mxu0  ;;  %v6258_v0 = vld [vmem:[%s11735_s1 + $0x560] sm:$0xf]  ;;  %v7783_v13 = vld [vmem:[%s11735_s1 + $0x6f8] sm:$0xf0] }
 0x1e9   :  { %v3942_v17 = vadd.f32 %v3941_v44, %v3853_v26  ;;  %v4056_v52 = vpop.f32.mrf.mxu1  ;;  %v7731_v26 = vld [vmem:[%s11735_s1 + $0x55c] sm:$0xf]  ;;  %v6342_v44 = vld [vmem:[%s11735_s1 + $0x608] sm:$0xf] }
 0x1ea   :  { %v9436_v61 = vadd.f32 %v4056_v52, %v8920_v32  ;;  %v7742_v32 = vld [vmem:[%s11735_s1 + $0x5b0] sm:$0xf0]  ;;  %v6255_v11 = vor.u32 %v7731_v26, %v6252_v45 }
 0x1eb   :  { %v9438_v35 = vadd.f32 %v4030_v38, %v3942_v17  ;;  %v6259_v23 = vor.u32 %v7742_v32, %v6258_v0  ;;  %v7752_v17 = vld [vmem:[%s11735_s1 + $0x604] sm:$0xf] }
 0x1ef   :  { %v4135_v27 = vpop.f32.mrf.mxu2 }
 0x1f0   :  { %v3943_v42 = vpop.f32.mrf.mxu3  ;;  %v4136_v33 = vadd.f32 %v4135_v27, %v9364_v19  ;;  %v4311_v58 = vpop.f32.mrf.mxu0 }
 0x1f1   :  { %v3944_v49 = vadd.f32 %v3943_v42, %v3855_v34  ;;  %v4059_v28 = vpop.f32.mrf.mxu1 }
 0x1f2   :  { %v9466_v29 = vadd.f32 %v4059_v28, %v8936_v53  ;;  %v7814_v53 = vld [vmem:[%s11735_s1 + $0x7f4] sm:$0xf] }
 0x1f3   :  { %v9468_v30 = vadd.f32 %v4032_v51, %v3944_v49  ;;  %4350 = vmatmul.bf16.gmra.mxu0 %v6259_v23  ;;  %v6583_v4 = vor.u32 %v7814_v53, %v6580_v55  ;;  %v7974_v49 = vld [vmem:[%s11734_s0 + $0x270] sm:$0xff]  ;;  %v6420_v53 = vld [vmem:[%s11735_s1 + $0x6fc] sm:$0xf0] }
 0x1f4   :  { %4098 = vmatmul.bf16.gmra.mxu1 %v6499_v6  ;;  %4177 = vmatmul.bf16.gmra.mxu2 %v6335_v41  ;;  %v7975_v6 = vld [vmem:[%s11734_s0 + $0x278] sm:$0xff] }
 0x1f5   :  { %4261 = vmatmul.bf16.gmra.mxu3 %v6255_v11  ;;  %4391 = vmatpush.bf16.msrb.mxu1 %v7975_v6  ;;  %v7973_v11 = vld [vmem:[%s11734_s0 + $0x268] sm:$0xff] }
 0x1f7   :  { %v4138_v63 = vpop.f32.mrf.mxu2 }
 0x1f8   :  { %v4222_v10 = vpop.f32.mrf.mxu3  ;;  %v4139_v15 = vadd.f32 %v4138_v63, %v9394_v14  ;;  %v4313_v19 = vpop.f32.mrf.mxu0  ;;  %v6418_v14 = vld [vmem:[%s11735_s1 + $0x6a8] sm:$0xf] }
 0x1f9   :  { %v4223_v34 = vadd.f32 %v4222_v10, %v4134_v7  ;;  %v4061_v38 = vpop.f32.mrf.mxu1  ;;  %v6336_v7 = vld [vmem:[%s11735_s1 + $0x654] sm:$0xf0]  ;;  %v6419_v26 = vor.u32 %v7783_v13, %v6418_v14  ;;  %4392 = vmatpush.bf16.msrb.mxu1 %v7974_v49  ;;  %v7835_v10 = vld [vmem:[%s11735_s1 + $0x89c] sm:$0xf]  ;;  %v7972_v13 = vld [vmem:[%s11734_s0 + $0x260] sm:$0xff] }
 0x1fa   :  { %v9472_v40 = vadd.f32 %v4061_v38, %v8970_v2  ;;  %v7763_v2 = vld [vmem:[%s11735_s1 + $0x658] sm:$0xf0]  ;;  %v6339_v45 = vor.u32 %v7752_v17, %v6336_v7  ;;  %v7804_v38 = vld [vmem:[%s11735_s1 + $0x7a0] sm:$0xf0]  ;;  %v7969_v49 = vld [vmem:[%s11734_s0 + $0x248] sm:$0xff] }
 0x1fb   :  { %v9474_v50 = vadd.f32 %v4311_v58, %v4223_v34  ;;  %v6343_v25 = vor.u32 %v7763_v2, %v6342_v44  ;;  %v7784_v34 = vld [vmem:[%s11735_s1 + $0x700] sm:$0xf0] }
 0x1fd   :  { %4393 = vmatpush.bf16.msrb.mxu1 %v7973_v11  ;;  %v7825_v11 = vld [vmem:[%s11735_s1 + $0x848] sm:$0xf0] }
 0x1ff   :  { %v4140_v51 = vpop.f32.mrf.mxu2 }
 0x200   :  { %v4224_v52 = vpop.f32.mrf.mxu3  ;;  %v4141_v54 = vadd.f32 %v4140_v51, %v9400_v18  ;;  %v4316_v39 = vpop.f32.mrf.mxu0 }
 0x201   :  { %v4225_v0 = vadd.f32 %v4224_v52, %v4136_v33  ;;  %v4064_v32 = vpop.f32.mrf.mxu1  ;;  %4394 = vmatpush.bf16.msrb.mxu1 %v7972_v13 }
 0x202   :  { %v9502_v42 = vadd.f32 %v4064_v32, %v9004_v1 }
 0x203   :  { %v9504_v27 = vadd.f32 %v4313_v19, %v4225_v0  ;;  %4355 = vmatmul.bf16.gmra.mxu0 %v6343_v25  ;;  %v7773_v19 = vld [vmem:[%s11735_s1 + $0x6ac] sm:$0xf] }
 0x204   :  { %4103 = vmatmul.bf16.gmra.mxu1 %v6583_v4  ;;  %4182 = vmatmul.bf16.gmra.mxu2 %v6419_v26  ;;  %v6423_v25 = vor.u32 %v7773_v19, %v6420_v53  ;;  %v7970_v26 = vld [vmem:[%s11734_s0 + $0x250] sm:$0xff]  ;;  %v7968_v19 = vld [vmem:[%s11734_s0 + $0x240] sm:$0xff] }
 0x205   :  { %4266 = vmatmul.bf16.gmra.mxu3 %v6339_v45 }
 0x207   :  { %v4143_v18 = vpop.f32.mrf.mxu2 }
 0x208   :  { %v4227_v23 = vpop.f32.mrf.mxu3  ;;  %v4144_v1 = vadd.f32 %v4143_v18, %v9430_v9  ;;  %v4318_v58 = vpop.f32.mrf.mxu0  ;;  %v6664_v9 = vld [vmem:[%s11735_s1 + $0x8ec] sm:$0xf0] }
 0x209   :  { %v4228_v33 = vadd.f32 %v4227_v23, %v4139_v15  ;;  %v4066_v28 = vpop.f32.mrf.mxu1  ;;  %v6426_v15 = vld [vmem:[%s11735_s1 + $0x6b0] sm:$0xf]  ;;  %v6667_v44 = vor.u32 %v7835_v10, %v6664_v9  ;;  %v7794_v10 = vld [vmem:[%s11735_s1 + $0x754] sm:$0xf]  ;;  %v6504_v9 = vld [vmem:[%s11735_s1 + $0x7a4] sm:$0xf0] }
 0x20a   :  { %v9514_v41 = vadd.f32 %v4066_v28, %v9043_v3  ;;  %v6502_v3 = vld [vmem:[%s11735_s1 + $0x750] sm:$0xf]  ;;  %v6427_v2 = vor.u32 %v7784_v34, %v6426_v15  ;;  %v7856_v28 = vld [vmem:[%s11735_s1 + $0x944] sm:$0xf]  ;;  %v6507_v13 = vor.u32 %v7794_v10, %v6504_v9 }
 0x20b   :  { %v9519_v63 = vadd.f32 %v4316_v39, %v4228_v33  ;;  %v6503_v4 = vor.u32 %v7804_v38, %v6502_v3  ;;  %v7971_v39 = vld [vmem:[%s11734_s0 + $0x258] sm:$0xff]  ;;  %v7980_v10 = vld [vmem:[%s11734_s0 + $0x2a0] sm:$0xff] }
 0x20c   :  { %4395 = vmatpush.bf16.msrb.mxu1 %v7971_v39 }
 0x20f   :  { %v4145_v55 = vpop.f32.mrf.mxu2 }
 0x210   :  { %v4229_v14 = vpop.f32.mrf.mxu3  ;;  %v4146_v17 = vadd.f32 %v4145_v55, %v9436_v61  ;;  %v4321_v52 = vpop.f32.mrf.mxu0  ;;  %4396 = vmatpush.bf16.msrb.mxu1 %v7970_v26  ;;  %v7981_v26 = vld [vmem:[%s11734_s0 + $0x2a8] sm:$0xff] }
 0x211   :  { %v4230_v7 = vadd.f32 %v4229_v14, %v4141_v54  ;;  %v4069_v51 = vpop.f32.mrf.mxu1 }
 0x212   :  { %v9550_v0 = vadd.f32 %v4069_v51, %v9067_v43 }
 0x213   :  { %v9552_v32 = vadd.f32 %v4318_v58, %v4230_v7  ;;  %4360 = vmatmul.bf16.gmra.mxu0 %v6427_v2  ;;  %v7805_v58 = vld [vmem:[%s11735_s1 + $0x7a8] sm:$0xf0] }
 0x214   :  { %4108 = vmatmul.bf16.gmra.mxu1 %v6667_v44  ;;  %4187 = vmatmul.bf16.gmra.mxu2 %v6503_v4  ;;  %v7982_v4 = vld [vmem:[%s11734_s0 + $0x2b0] sm:$0xff] }
 0x215   :  { %4271 = vmatmul.bf16.gmra.mxu3 %v6423_v25  ;;  %4397 = vmatpush.bf16.msrb.mxu1 %v7969_v49  ;;  %v7846_v49 = vld [vmem:[%s11735_s1 + $0x8f0] sm:$0xf0] }
 0x217   :  { %v4148_v61 = vpop.f32.mrf.mxu2 }
 0x218   :  { %v4232_v54 = vpop.f32.mrf.mxu3  ;;  %v4149_v43 = vadd.f32 %v4148_v61, %v9466_v29  ;;  %v4323_v18 = vpop.f32.mrf.mxu0  ;;  %v6748_v29 = vld [vmem:[%s11735_s1 + $0x994] sm:$0xf0] }
 0x219   :  { %v4233_v45 = vadd.f32 %v4232_v54, %v4144_v1  ;;  %v4071_v6 = vpop.f32.mrf.mxu1  ;;  %v6510_v1 = vld [vmem:[%s11735_s1 + $0x758] sm:$0xf]  ;;  %v6751_v34 = vor.u32 %v7856_v28, %v6748_v29  ;;  %4398 = vmatpush.bf16.msrb.mxu1 %v7968_v19  ;;  %v7815_v28 = vld [vmem:[%s11735_s1 + $0x7fc] sm:$0xf]  ;;  %v6588_v29 = vld [vmem:[%s11735_s1 + $0x84c] sm:$0xf0] }
 0x21a   :  { %v9562_v23 = vadd.f32 %v4071_v6, %v9103_v57  ;;  %v6586_v57 = vld [vmem:[%s11735_s1 + $0x7f8] sm:$0xf]  ;;  %v6511_v38 = vor.u32 %v7805_v58, %v6510_v1  ;;  %v7877_v6 = vld [vmem:[%s11735_s1 + $0x9ec] sm:$0xf]  ;;  %v6591_v19 = vor.u32 %v7815_v28, %v6588_v29  ;;  %v7836_v28 = vld [vmem:[%s11735_s1 + $0x8a4] sm:$0xf] }
 0x21b   :  { %v9567_v33 = vadd.f32 %v4321_v52, %v4233_v45  ;;  %v6587_v2 = vor.u32 %v7825_v11, %v6586_v57  ;;  %v7983_v52 = vld [vmem:[%s11734_s0 + $0x2b8] sm:$0xff] }
 0x21c   :  { %4480 = vmatpush.bf16.msrb.mxu2 %v7983_v52  ;;  %v7990_v52 = vld [vmem:[%s11734_s0 + $0x2f0] sm:$0xff]  ;;  %v6672_v29 = vld [vmem:[%s11735_s1 + $0x8f4] sm:$0xf0] }
 0x21f   :  { %v4150_v3 = vpop.f32.mrf.mxu2 }
 0x220   :  { %v4234_v15 = vpop.f32.mrf.mxu3  ;;  %v4151_v53 = vadd.f32 %v4150_v3, %v9472_v40  ;;  %v4326_v44 = vpop.f32.mrf.mxu0  ;;  %4481 = vmatpush.bf16.msrb.mxu2 %v7982_v4 }
 0x221   :  { %v4235_v55 = vadd.f32 %v4234_v15, %v4146_v17  ;;  %v4074_v14 = vpop.f32.mrf.mxu1 }
 0x222   :  { %v9598_v7 = vadd.f32 %v4074_v14, %v9109_v62 }
 0x223   :  { %v9600_v51 = vadd.f32 %v4323_v18, %v4235_v55  ;;  %4365 = vmatmul.bf16.gmra.mxu0 %v6511_v38  ;;  %v7826_v18 = vld [vmem:[%s11735_s1 + $0x850] sm:$0xf0] }
 0x224   :  { %4113 = vmatmul.bf16.gmra.mxu1 %v6751_v34  ;;  %4192 = vmatmul.bf16.gmra.mxu2 %v6587_v2 }
 0x225   :  { %4276 = vmatmul.bf16.gmra.mxu3 %v6507_v13  ;;  %4482 = vmatpush.bf16.msrb.mxu2 %v7981_v26  ;;  %v7978_v13 = vld [vmem:[%s11734_s0 + $0x290] sm:$0xff]  ;;  %v7977_v26 = vld [vmem:[%s11734_s0 + $0x288] sm:$0xff] }
 0x227   :  { %v4153_v40 = vpop.f32.mrf.mxu2 }
 0x228   :  { %v4237_v17 = vpop.f32.mrf.mxu3  ;;  %v4154_v62 = vadd.f32 %v4153_v40, %v9502_v42  ;;  %v4328_v61 = vpop.f32.mrf.mxu0  ;;  %v6832_v42 = vld [vmem:[%s11735_s1 + $0xa3c] sm:$0xf0]  ;;  %v7998_v40 = vld [vmem:[%s11734_s0 + $0x330] sm:$0xff] }
 0x229   :  { %v4238_v25 = vadd.f32 %v4237_v17, %v4149_v43  ;;  %v4076_v39 = vpop.f32.mrf.mxu1  ;;  %v6594_v43 = vld [vmem:[%s11735_s1 + $0x800] sm:$0xf]  ;;  %v6835_v58 = vor.u32 %v7877_v6, %v6832_v42  ;;  %4483 = vmatpush.bf16.msrb.mxu2 %v7980_v10  ;;  %v7989_v6 = vld [vmem:[%s11734_s0 + $0x2e8] sm:$0xff] }
 0x22a   :  { %v9610_v54 = vadd.f32 %v4076_v39, %v9139_v21  ;;  %v6670_v21 = vld [vmem:[%s11735_s1 + $0x8a0] sm:$0xf]  ;;  %v6595_v11 = vor.u32 %v7826_v18, %v6594_v43  ;;  %v6678_v42 = vld [vmem:[%s11735_s1 + $0x8a8] sm:$0xf]  ;;  %v7564_v43 = vld [vmem:[%s11735_s1 + $0x24] sm:$0xf] }
 0x22b   :  { %v9615_v45 = vadd.f32 %v4326_v44, %v4238_v25  ;;  %v6671_v38 = vor.u32 %v7846_v49, %v6670_v21  ;;  %v7979_v44 = vld [vmem:[%s11734_s0 + $0x298] sm:$0xff]  ;;  %v7976_v10 = vld [vmem:[%s11734_s0 + $0x280] sm:$0xff] }
 0x22c   :  { %v7847_v21 = vld [vmem:[%s11735_s1 + $0x8f8] sm:$0xf0]  ;;  %v5588_v18 = vld [vmem:[%s11735_s1 + $0x74] sm:$0xf0] }
 0x22d   :  { %4484 = vmatpush.bf16.msrb.mxu2 %v7979_v44  ;;  %v7867_v49 = vld [vmem:[%s11735_s1 + $0x998] sm:$0xf0] }
 0x22f   :  { %v4155_v57 = vpop.f32.mrf.mxu2 }
 0x230   :  { %v4239_v1 = vpop.f32.mrf.mxu3  ;;  %v4156_v9 = vadd.f32 %v4155_v57, %v9514_v41  ;;  %v4331_v34 = vpop.f32.mrf.mxu0  ;;  %v7991_v41 = vld [vmem:[%s11734_s0 + $0x2f8] sm:$0xff] }
 0x231   :  { %v4240_v3 = vadd.f32 %v4239_v1, %v4151_v53  ;;  %v4079_v15 = vpop.f32.mrf.mxu1  ;;  %4569 = vmatpush.bf16.msrb.mxu3 %v7991_v41  ;;  %4485 = vmatpush.bf16.msrb.mxu2 %v7978_v13  ;;  %v7987_v13 = vld [vmem:[%s11734_s0 + $0x2d8] sm:$0xff] }
 0x232   :  { %v9646_v55 = vadd.f32 %v4079_v15, %v9145_v48  ;;  %v7999_v48 = vld [vmem:[%s11734_s0 + $0x338] sm:$0xff]  ;;  %v7996_v15 = vld [vmem:[%s11734_s0 + $0x320] sm:$0xff] }
 0x233   :  { %v9648_v14 = vadd.f32 %v4328_v61, %v4240_v3  ;;  %4370 = vmatmul.bf16.gmra.mxu0 %v6595_v11  ;;  %v5591_v11 = vor.u32 %v7564_v43, %v5588_v18  ;;  %v7988_v3 = vld [vmem:[%s11734_s0 + $0x2e0] sm:$0xff] }
 0x234   :  { %4118 = vmatmul.bf16.gmra.mxu1 %v6835_v58  ;;  %4197 = vmatmul.bf16.gmra.mxu2 %v6671_v38  ;;  %v6679_v58 = vor.u32 %v7847_v21, %v6678_v42  ;;  %v7585_v21 = vld [vmem:[%s11735_s1 + $0xcc] sm:$0xf]  ;;  %v5672_v43 = vld [vmem:[%s11735_s1 + $0x11c] sm:$0xf0]  ;;  %v7888_v18 = vld [vmem:[%s11735_s1 + $0xa40] sm:$0xf0] }
 0x235   :  { %4281 = vmatmul.bf16.gmra.mxu3 %v6591_v19  ;;  %4658 = vmatpush.bf16.msrb.mxu0 %v7999_v48  ;;  %v6675_v48 = vor.u32 %v7836_v28, %v6672_v29  ;;  %v6756_v28 = vld [vmem:[%s11735_s1 + $0x99c] sm:$0xf0] }
 0x236   :  { %4570 = vmatpush.bf16.msrb.mxu3 %v7990_v52  ;;  %4486 = vmatpush.bf16.msrb.mxu2 %v7977_v26  ;;  %v7986_v52 = vld [vmem:[%s11734_s0 + $0x2d0] sm:$0xff] }
 0x237   :  { %v4158_v53 = vpop.f32.mrf.mxu2 }
 0x238   :  { %v4242_v2 = vpop.f32.mrf.mxu3  ;;  %v4159_v17 = vadd.f32 %v4158_v53, %v9550_v0  ;;  %v4333_v39 = vpop.f32.mrf.mxu0  ;;  %v7997_v0 = vld [vmem:[%s11734_s0 + $0x328] sm:$0xff] }
 0x239   :  { %v4243_v4 = vadd.f32 %v4242_v2, %v4154_v62  ;;  %v4081_v25 = vpop.f32.mrf.mxu1  ;;  %4659 = vmatpush.bf16.msrb.mxu0 %v7998_v40  ;;  %v7994_v40 = vld [vmem:[%s11734_s0 + $0x310] sm:$0xff] }
 0x23a   :  { %v9670_v61 = vadd.f32 %v4081_v25, %v9175_v12  ;;  %v6754_v12 = vld [vmem:[%s11735_s1 + $0x948] sm:$0xf]  ;;  %4571 = vmatpush.bf16.msrb.mxu3 %v7989_v6  ;;  %4487 = vmatpush.bf16.msrb.mxu2 %v7976_v10  ;;  %v7992_v10 = vld [vmem:[%s11734_s0 + $0x300] sm:$0xff] }
 0x23b   :  { %v9681_v62 = vadd.f32 %v4331_v34, %v4243_v4  ;;  %v6755_v41 = vor.u32 %v7867_v49, %v6754_v12  ;;  %v7993_v12 = vld [vmem:[%s11734_s0 + $0x308] sm:$0xff] }
 0x23c   :  { %v7857_v49 = vld [vmem:[%s11735_s1 + $0x94c] sm:$0xf] }
 0x23d   :  { %4660 = vmatpush.bf16.msrb.mxu0 %v7997_v0  ;;  %v7985_v0 = vld [vmem:[%s11734_s0 + $0x2c8] sm:$0xff] }
 0x23e   :  { %4572 = vmatpush.bf16.msrb.mxu3 %v7988_v3 }
 0x23f   :  { %v4160_v57 = vpop.f32.mrf.mxu2 }
 0x240   :  { %v4244_v1 = vpop.f32.mrf.mxu3  ;;  %v4161_v34 = vadd.f32 %v4160_v57, %v9562_v23  ;;  %v4336_v44 = vpop.f32.mrf.mxu0  ;;  %v7995_v23 = vld [vmem:[%s11734_s0 + $0x318] sm:$0xff] }
 0x241   :  { %v4245_v38 = vadd.f32 %v4244_v1, %v4156_v9  ;;  %v4084_v19 = vpop.f32.mrf.mxu1  ;;  %4661 = vmatpush.bf16.msrb.mxu0 %v7996_v15 }
 0x242   :  { %v9718_v53 = vadd.f32 %v4084_v19, %v9181_v22  ;;  %4573 = vmatpush.bf16.msrb.mxu3 %v7987_v13 }
 0x243   :  { %v9720_v2 = vadd.f32 %v4333_v39, %v4245_v38  ;;  %4375 = vmatmul.bf16.gmra.mxu0 %v6679_v58  ;;  %v5675_v58 = vor.u32 %v7585_v21, %v5672_v43 }
 0x244   :  { %4399 = vmatmul.bf16.vlgmr.msrb.gmra.mxu1 %v5591_v11  ;;  %4202 = vmatmul.bf16.gmra.mxu2 %v6755_v41  ;;  %v7984_v11 = vld [vmem:[%s11734_s0 + $0x2c0] sm:$0xff]  ;;  %v6759_v41 = vor.u32 %v7857_v49, %v6756_v28 }
 0x245   :  { %4286 = vmatmul.bf16.gmra.mxu3 %v6675_v48  ;;  %4662 = vmatpush.bf16.msrb.mxu0 %v7995_v23 }
 0x246   :  { %4574 = vmatpush.bf16.msrb.mxu3 %v7986_v52 }
 0x247   :  { %v4163_v22 = vpop.f32.mrf.mxu2 }
 0x248   :  { %v4247_v9 = vpop.f32.mrf.mxu3  ;;  %v4164_v4 = vadd.f32 %v4163_v22, %v9598_v7  ;;  %v4338_v26 = vpop.f32.mrf.mxu0  ;;  %v6838_v7 = vld [vmem:[%s11735_s1 + $0x9f0] sm:$0xf] }
 0x249   :  { %v4248_v25 = vadd.f32 %v4247_v9, %v4159_v17  ;;  %v4086_v39 = vpop.f32.mrf.mxu1  ;;  %4663 = vmatpush.bf16.msrb.mxu0 %v7994_v40  ;;  %v7868_v17 = vld [vmem:[%s11735_s1 + $0x9a0] sm:$0xf0] }
 0x24a   :  { %v9736_v6 = vadd.f32 %v4086_v39, %v9211_v59  ;;  %v6762_v59 = vld [vmem:[%s11735_s1 + $0x950] sm:$0xf]  ;;  %4575 = vmatpush.bf16.msrb.mxu3 %v7985_v0  ;;  %v6846_v39 = vld [vmem:[%s11735_s1 + $0x9f8] sm:$0xf]  ;;  %v5594_v0 = vld [vmem:[%s11735_s1 + $0x28] sm:$0xf] }
 0x24b   :  { %v9744_v42 = vadd.f32 %v4336_v44, %v4248_v25  ;;  %v6763_v1 = vor.u32 %v7868_v17, %v6762_v59  ;;  %v6839_v44 = vor.u32 %v7888_v18, %v6838_v7  ;;  %v7878_v25 = vld [vmem:[%s11735_s1 + $0x9f4] sm:$0xf] }
 0x24d   :  { %4664 = vmatpush.bf16.msrb.mxu0 %v7993_v12  ;;  %v7575_v12 = vld [vmem:[%s11735_s1 + $0x78] sm:$0xf0] }
 0x24e   :  { %4576 = vmatpush.bf16.msrb.mxu3 %v7984_v11 }
 0x24f   :  { %v4165_v29 = vpop.f32.mrf.mxu2 }
 0x250   :  { %v4249_v57 = vpop.f32.mrf.mxu3  ;;  %v4166_v3 = vadd.f32 %v4165_v29, %v9610_v54  ;;  %v4341_v19 = vpop.f32.mrf.mxu0 }
 0x251   :  { %v4250_v15 = vadd.f32 %v4249_v57, %v4161_v34  ;;  %v4089_v38 = vpop.f32.mrf.mxu1  ;;  %4665 = vmatpush.bf16.msrb.mxu0 %v7992_v10  ;;  %v5595_v57 = vor.u32 %v7575_v12, %v5594_v0 }
 0x252   :  { %v9778_v48 = vadd.f32 %v4089_v38, %v9217_v60 }
 0x253   :  { %v9780_v13 = vadd.f32 %v4338_v26, %v4250_v15  ;;  %4380 = vmatmul.bf16.gmra.mxu0 %v6763_v1  ;;  %v6840_v26 = vld [vmem:[%s11735_s1 + $0xa44] sm:$0xf0] }
 0x254   :  { %4404 = vmatmul.bf16.gmra.mxu1 %v5675_v58  ;;  %4207 = vmatmul.bf16.gmra.mxu2 %v6839_v44  ;;  %v6843_v29 = vor.u32 %v7878_v25, %v6840_v26 }
 0x255   :  { %4291 = vmatmul.bf16.gmra.mxu3 %v6759_v41  ;;  %v5840_v41 = vld [vmem:[%s11735_s1 + $0x26c] sm:$0xf0] }
 0x257   :  { %v4168_v23 = vpop.f32.mrf.mxu2 }
 0x258   :  { %v4252_v22 = vpop.f32.mrf.mxu3  ;;  %v4169_v54 = vadd.f32 %v4168_v23, %v9646_v55  ;;  %v4343_v52 = vpop.f32.mrf.mxu0  ;;  %v7889_v55 = vld [vmem:[%s11735_s1 + $0xa48] sm:$0xf0]  ;;  %v5602_v23 = vld [vmem:[%s11735_s1 + $0x30] sm:$0xf] }
 0x259   :  { %v4253_v34 = vadd.f32 %v4252_v22, %v4164_v4  ;;  %v4091_v9 = vpop.f32.mrf.mxu1  ;;  %v7606_v4 = vld [vmem:[%s11735_s1 + $0x174] sm:$0xf]  ;;  %v6847_v17 = vor.u32 %v7889_v55, %v6846_v39  ;;  %v7596_v22 = vld [vmem:[%s11735_s1 + $0x120] sm:$0xf0] }
 0x25a   :  { %v9784_v40 = vadd.f32 %v4091_v9, %v9247_v24  ;;  %v5756_v24 = vld [vmem:[%s11735_s1 + $0x1c4] sm:$0xf0] }
 0x25b   :  { %v9786_v60 = vadd.f32 %v4341_v19, %v4253_v34  ;;  %v5759_v21 = vor.u32 %v7606_v4, %v5756_v24  ;;  %v5596_v34 = vld [vmem:[%s11735_s1 + $0x7c] sm:$0xf0] }
 0x25f   :  { %v4170_v7 = vpop.f32.mrf.mxu2 }
 0x260   :  { %v4254_v59 = vpop.f32.mrf.mxu3  ;;  %v4171_v43 = vadd.f32 %v4170_v7, %v9670_v61  ;;  %v4346_v28 = vpop.f32.mrf.mxu0 }
 0x261   :  { %v4255_v18 = vadd.f32 %v4254_v59, %v4166_v3  ;;  %v4094_v49 = vpop.f32.mrf.mxu1 }
 0x262   :  { %v9814_v1 = vadd.f32 %v4094_v49, %v9254_v36  ;;  %v7627_v36 = vld [vmem:[%s11735_s1 + $0x21c] sm:$0xf] }
 0x263   :  { %v9816_v58 = vadd.f32 %v4343_v52, %v4255_v18  ;;  %4385 = vmatmul.bf16.gmra.mxu0 %v6847_v17  ;;  %v5843_v25 = vor.u32 %v7627_v36, %v5840_v41 }
 0x264   :  { %4409 = vmatmul.bf16.gmra.mxu1 %v5759_v21  ;;  %4488 = vmatmul.bf16.vlgmr.msrb.gmra.mxu2 %v5595_v57  ;;  %v5924_v57 = vld [vmem:[%s11735_s1 + $0x314] sm:$0xf0] }
 0x265   :  { %4296 = vmatmul.bf16.gmra.mxu3 %v6843_v29 }
 0x267   :  { %v4173_v11 = vpop.f32.mrf.mxu2 }
 0x268   :  { %v4257_v10 = vpop.f32.mrf.mxu3  ;;  %v4174_v15 = vadd.f32 %v4173_v11, %v9718_v53  ;;  %v4348_v3 = vpop.f32.mrf.mxu0  ;;  %v5678_v53 = vld [vmem:[%s11735_s1 + $0xd0] sm:$0xf]  ;;  %v5686_v11 = vld [vmem:[%s11735_s1 + $0xd8] sm:$0xf] }
 0x269   :  { %v4258_v38 = vadd.f32 %v4257_v10, %v4169_v54  ;;  %v4096_v61 = vpop.f32.mrf.mxu1  ;;  %v7565_v54 = vld [vmem:[%s11735_s1 + $0x2c] sm:$0xf]  ;;  %v5679_v0 = vor.u32 %v7596_v22, %v5678_v53 }
 0x26a   :  { %v9820_v19 = vadd.f32 %v4096_v61, %v9285_v56  ;;  %v7576_v56 = vld [vmem:[%s11735_s1 + $0x80] sm:$0xf0]  ;;  %v5599_v12 = vor.u32 %v7565_v54, %v5596_v34  ;;  %v7617_v10 = vld [vmem:[%s11735_s1 + $0x1c8] sm:$0xf0] }
 0x26b   :  { %v9822_v44 = vadd.f32 %v4346_v28, %v4258_v38  ;;  %v5603_v39 = vor.u32 %v7576_v56, %v5602_v23  ;;  %v5680_v38 = vld [vmem:[%s11735_s1 + $0x124] sm:$0xf0] }
 0x26f   :  { %v4175_v9 = vpop.f32.mrf.mxu2 }
 0x270   :  { %v4259_v52 = vpop.f32.mrf.mxu3  ;;  %v4176_v55 = vadd.f32 %v4175_v9, %v9736_v6  ;;  %v4351_v26 = vpop.f32.mrf.mxu0 }
 0x271   :  { %v4260_v4 = vadd.f32 %v4259_v52, %v4171_v43  ;;  %v4099_v24 = vpop.f32.mrf.mxu1 }
 0x272   :  { %v9850_v7 = vadd.f32 %v4099_v24, %v9292_v5  ;;  %v7648_v5 = vld [vmem:[%s11735_s1 + $0x2c4] sm:$0xf] }
 0x273   :  { %v9852_v59 = vadd.f32 %v4348_v3, %v4260_v4  ;;  %4666 = vmatmul.bf16.vlgmr.msrb.gmra.mxu0 %v5603_v39  ;;  %v5927_v36 = vor.u32 %v7648_v5, %v5924_v57 }
 0x274   :  { %4414 = vmatmul.bf16.gmra.mxu1 %v5843_v25  ;;  %4493 = vmatmul.bf16.gmra.mxu2 %v5679_v0 }
 0x275   :  { %4577 = vmatmul.bf16.vlgmr.msrb.gmra.mxu3 %v5599_v12  ;;  %v6008_v12 = vld [vmem:[%s11735_s1 + $0x3bc] sm:$0xf0] }
 0x277   :  { %v4178_v17 = vpop.f32.mrf.mxu2 }
 0x278   :  { %v4262_v21 = vpop.f32.mrf.mxu3  ;;  %v4179_v18 = vadd.f32 %v4178_v17, %v9778_v48  ;;  %v4353_v43 = vpop.f32.mrf.mxu0  ;;  %v5762_v48 = vld [vmem:[%s11735_s1 + $0x178] sm:$0xf]  ;;  %v5770_v17 = vld [vmem:[%s11735_s1 + $0x180] sm:$0xf] }
 0x279   :  { %v4263_v49 = vadd.f32 %v4262_v21, %v4174_v15  ;;  %v4101_v6 = vpop.f32.mrf.mxu1  ;;  %v7586_v15 = vld [vmem:[%s11735_s1 + $0xd4] sm:$0xf]  ;;  %v5763_v54 = vor.u32 %v7617_v10, %v5762_v48 }
 0x27a   :  { %v9856_v28 = vadd.f32 %v4101_v6, %v9323_v31  ;;  %v7597_v31 = vld [vmem:[%s11735_s1 + $0x128] sm:$0xf0]  ;;  %v5683_v34 = vor.u32 %v7586_v15, %v5680_v38  ;;  %v7638_v21 = vld [vmem:[%s11735_s1 + $0x270] sm:$0xf0] }
 0x27b   :  { %v9858_v29 = vadd.f32 %v4351_v26, %v4263_v49  ;;  %v5687_v41 = vor.u32 %v7597_v31, %v5686_v11  ;;  %v5764_v49 = vld [vmem:[%s11735_s1 + $0x1cc] sm:$0xf0] }
 0x27f   :  { %v4180_v61 = vpop.f32.mrf.mxu2 }
 0x280   :  { %v4264_v3 = vpop.f32.mrf.mxu3  ;;  %v4181_v53 = vadd.f32 %v4180_v61, %v9784_v40  ;;  %v4356_v22 = vpop.f32.mrf.mxu0 }
 0x281   :  { %v4265_v23 = vadd.f32 %v4264_v3, %v4176_v55  ;;  %v4104_v56 = vpop.f32.mrf.mxu1 }
 0x282   :  { %v9886_v9 = vadd.f32 %v4104_v56, %v9330_v16  ;;  %v7669_v16 = vld [vmem:[%s11735_s1 + $0x36c] sm:$0xf] }
 0x283   :  { %v9888_v52 = vadd.f32 %v4353_v43, %v4265_v23  ;;  %4671 = vmatmul.bf16.gmra.mxu0 %v5687_v41  ;;  %v6011_v5 = vor.u32 %v7669_v16, %v6008_v12 }
 0x284   :  { %4419 = vmatmul.bf16.gmra.mxu1 %v5927_v36  ;;  %4498 = vmatmul.bf16.gmra.mxu2 %v5763_v54 }
 0x285   :  { %4582 = vmatmul.bf16.gmra.mxu3 %v5683_v34  ;;  %v6092_v34 = vld [vmem:[%s11735_s1 + $0x464] sm:$0xf0] }
 0x287   :  { %v4183_v25 = vpop.f32.mrf.mxu2 }
 0x288   :  { %v4267_v39 = vpop.f32.mrf.mxu3  ;;  %v4184_v4 = vadd.f32 %v4183_v25, %v9814_v1  ;;  %v4358_v55 = vpop.f32.mrf.mxu0  ;;  %v5846_v1 = vld [vmem:[%s11735_s1 + $0x220] sm:$0xf]  ;;  %v5854_v25 = vld [vmem:[%s11735_s1 + $0x228] sm:$0xf] }
 0x289   :  { %v4268_v24 = vadd.f32 %v4267_v39, %v4179_v18  ;;  %v4106_v40 = vpop.f32.mrf.mxu1  ;;  %v7607_v18 = vld [vmem:[%s11735_s1 + $0x17c] sm:$0xf]  ;;  %v5847_v15 = vor.u32 %v7638_v21, %v5846_v1 }
 0x28a   :  { %v9892_v26 = vadd.f32 %v4106_v40, %v9360_v47  ;;  %v7618_v47 = vld [vmem:[%s11735_s1 + $0x1d0] sm:$0xf0]  ;;  %v5767_v38 = vor.u32 %v7607_v18, %v5764_v49  ;;  %v7659_v39 = vld [vmem:[%s11735_s1 + $0x318] sm:$0xf0] }
 0x28b   :  { %v9894_v0 = vadd.f32 %v4356_v22, %v4268_v24  ;;  %v5771_v57 = vor.u32 %v7618_v47, %v5770_v17  ;;  %v5848_v24 = vld [vmem:[%s11735_s1 + $0x274] sm:$0xf0] }
 0x28f   :  { %v4185_v6 = vpop.f32.mrf.mxu2 }
 0x290   :  { %v4269_v43 = vpop.f32.mrf.mxu3  ;;  %v4186_v48 = vadd.f32 %v4185_v6, %v9820_v19  ;;  %v4361_v10 = vpop.f32.mrf.mxu0 }
 0x291   :  { %v4270_v11 = vadd.f32 %v4269_v43, %v4181_v53  ;;  %v4109_v31 = vpop.f32.mrf.mxu1 }
 0x292   :  { %v9922_v61 = vadd.f32 %v4109_v31, %v9366_v8  ;;  %v7690_v8 = vld [vmem:[%s11735_s1 + $0x414] sm:$0xf] }
 0x293   :  { %v9924_v3 = vadd.f32 %v4358_v55, %v4270_v11  ;;  %4676 = vmatmul.bf16.gmra.mxu0 %v5771_v57  ;;  %v6095_v16 = vor.u32 %v7690_v8, %v6092_v34 }
 0x294   :  { %4424 = vmatmul.bf16.gmra.mxu1 %v6011_v5  ;;  %4503 = vmatmul.bf16.gmra.mxu2 %v5847_v15 }
 0x295   :  { %4587 = vmatmul.bf16.gmra.mxu3 %v5767_v38  ;;  %v6176_v38 = vld [vmem:[%s11735_s1 + $0x50c] sm:$0xf0] }
 0x297   :  { %v4188_v36 = vpop.f32.mrf.mxu2 }
 0x298   :  { %v4272_v41 = vpop.f32.mrf.mxu3  ;;  %v4189_v23 = vadd.f32 %v4188_v36, %v9850_v7  ;;  %v4363_v53 = vpop.f32.mrf.mxu0  ;;  %v5930_v7 = vld [vmem:[%s11735_s1 + $0x2c8] sm:$0xf]  ;;  %v5938_v36 = vld [vmem:[%s11735_s1 + $0x2d0] sm:$0xf] }
 0x299   :  { %v4273_v56 = vadd.f32 %v4272_v41, %v4184_v4  ;;  %v4111_v19 = vpop.f32.mrf.mxu1  ;;  %v7628_v4 = vld [vmem:[%s11735_s1 + $0x224] sm:$0xf]  ;;  %v5931_v18 = vor.u32 %v7659_v39, %v5930_v7 }
 0x29a   :  { %v9928_v22 = vadd.f32 %v4111_v19, %v9396_v46  ;;  %v7639_v46 = vld [vmem:[%s11735_s1 + $0x278] sm:$0xf0]  ;;  %v5851_v49 = vor.u32 %v7628_v4, %v5848_v24  ;;  %v7680_v41 = vld [vmem:[%s11735_s1 + $0x3c0] sm:$0xf0] }
 0x29b   :  { %v9930_v54 = vadd.f32 %v4361_v10, %v4273_v56  ;;  %v5855_v12 = vor.u32 %v7639_v46, %v5854_v25  ;;  %v5932_v56 = vld [vmem:[%s11735_s1 + $0x31c] sm:$0xf0] }
 0x29f   :  { %v4190_v40 = vpop.f32.mrf.mxu2 }
 0x2a0   :  { %v4274_v55 = vpop.f32.mrf.mxu3  ;;  %v4191_v1 = vadd.f32 %v4190_v40, %v9856_v28  ;;  %v4366_v21 = vpop.f32.mrf.mxu0 }
 0x2a1   :  { %v4275_v17 = vadd.f32 %v4274_v55, %v4186_v48  ;;  %v4114_v47 = vpop.f32.mrf.mxu1 }
 0x2a2   :  { %v9958_v6 = vadd.f32 %v4114_v47, %v9402_v37  ;;  %v7711_v37 = vld [vmem:[%s11735_s1 + $0x4bc] sm:$0xf] }
 0x2a3   :  { %v9960_v43 = vadd.f32 %v4363_v53, %v4275_v17  ;;  %4681 = vmatmul.bf16.gmra.mxu0 %v5855_v12  ;;  %v6179_v8 = vor.u32 %v7711_v37, %v6176_v38 }
 0x2a4   :  { %4429 = vmatmul.bf16.gmra.mxu1 %v6095_v16  ;;  %4508 = vmatmul.bf16.gmra.mxu2 %v5931_v18 }
 0x2a5   :  { %4592 = vmatmul.bf16.gmra.mxu3 %v5851_v49  ;;  %v6260_v49 = vld [vmem:[%s11735_s1 + $0x5b4] sm:$0xf0] }
 0x2a7   :  { %v4193_v5 = vpop.f32.mrf.mxu2 }
 0x2a8   :  { %v4277_v57 = vpop.f32.mrf.mxu3  ;;  %v4194_v11 = vadd.f32 %v4193_v5, %v9886_v9  ;;  %v4368_v48 = vpop.f32.mrf.mxu0  ;;  %v6014_v9 = vld [vmem:[%s11735_s1 + $0x370] sm:$0xf]  ;;  %v6022_v5 = vld [vmem:[%s11735_s1 + $0x378] sm:$0xf] }
 0x2a9   :  { %v4278_v31 = vadd.f32 %v4277_v57, %v4189_v23  ;;  %v4116_v28 = vpop.f32.mrf.mxu1  ;;  %v7649_v23 = vld [vmem:[%s11735_s1 + $0x2cc] sm:$0xf]  ;;  %v6015_v4 = vor.u32 %v7680_v41, %v6014_v9 }
 0x2aa   :  { %v9964_v10 = vadd.f32 %v4116_v28, %v9432_v20  ;;  %v7660_v20 = vld [vmem:[%s11735_s1 + $0x320] sm:$0xf0]  ;;  %v5935_v24 = vor.u32 %v7649_v23, %v5932_v56  ;;  %v7701_v57 = vld [vmem:[%s11735_s1 + $0x468] sm:$0xf0] }
 0x2ab   :  { %v9966_v15 = vadd.f32 %v4366_v21, %v4278_v31  ;;  %v5939_v34 = vor.u32 %v7660_v20, %v5938_v36  ;;  %v6016_v31 = vld [vmem:[%s11735_s1 + $0x3c4] sm:$0xf0] }
 0x2af   :  { %v4195_v19 = vpop.f32.mrf.mxu2 }
 0x2b0   :  { %v4279_v53 = vpop.f32.mrf.mxu3  ;;  %v4196_v7 = vadd.f32 %v4195_v19, %v9892_v26  ;;  %v4371_v39 = vpop.f32.mrf.mxu0 }
 0x2b1   :  { %v4280_v25 = vadd.f32 %v4279_v53, %v4191_v1  ;;  %v4119_v46 = vpop.f32.mrf.mxu1 }
 0x2b2   :  { %v9994_v40 = vadd.f32 %v4119_v46, %v9438_v35  ;;  %v7732_v35 = vld [vmem:[%s11735_s1 + $0x564] sm:$0xf] }
 0x2b3   :  { %v9996_v55 = vadd.f32 %v4368_v48, %v4280_v25  ;;  %4686 = vmatmul.bf16.gmra.mxu0 %v5939_v34  ;;  %v6263_v37 = vor.u32 %v7732_v35, %v6260_v49 }
 0x2b4   :  { %4434 = vmatmul.bf16.gmra.mxu1 %v6179_v8  ;;  %4513 = vmatmul.bf16.gmra.mxu2 %v6015_v4 }
 0x2b5   :  { %4597 = vmatmul.bf16.gmra.mxu3 %v5935_v24  ;;  %v6344_v24 = vld [vmem:[%s11735_s1 + $0x65c] sm:$0xf0] }
 0x2b7   :  { %v4198_v16 = vpop.f32.mrf.mxu2 }
 0x2b8   :  { %v4282_v12 = vpop.f32.mrf.mxu3  ;;  %v4199_v17 = vadd.f32 %v4198_v16, %v9922_v61  ;;  %v4373_v1 = vpop.f32.mrf.mxu0  ;;  %v6098_v61 = vld [vmem:[%s11735_s1 + $0x418] sm:$0xf]  ;;  %v6106_v16 = vld [vmem:[%s11735_s1 + $0x420] sm:$0xf] }
 0x2b9   :  { %v4283_v47 = vadd.f32 %v4282_v12, %v4194_v11  ;;  %v4121_v26 = vpop.f32.mrf.mxu1  ;;  %v7670_v11 = vld [vmem:[%s11735_s1 + $0x374] sm:$0xf]  ;;  %v6099_v23 = vor.u32 %v7701_v57, %v6098_v61 }
 0x2ba   :  { %v10000_v21 = vadd.f32 %v4121_v26, %v9468_v30  ;;  %v7681_v30 = vld [vmem:[%s11735_s1 + $0x3c8] sm:$0xf0]  ;;  %v6019_v56 = vor.u32 %v7670_v11, %v6016_v31  ;;  %v7722_v12 = vld [vmem:[%s11735_s1 + $0x510] sm:$0xf0] }
 0x2bb   :  { %v10002_v18 = vadd.f32 %v4371_v39, %v4283_v47  ;;  %v6023_v38 = vor.u32 %v7681_v30, %v6022_v5  ;;  %v6100_v47 = vld [vmem:[%s11735_s1 + $0x46c] sm:$0xf0] }
 0x2bf   :  { %v4200_v28 = vpop.f32.mrf.mxu2 }
 0x2c0   :  { %v4284_v48 = vpop.f32.mrf.mxu3  ;;  %v4201_v9 = vadd.f32 %v4200_v28, %v9928_v22  ;;  %v4376_v20 = vpop.f32.mrf.mxu0 }
 0x2c1   :  { %v4285_v36 = vadd.f32 %v4284_v48, %v4196_v7  ;;  %v4400_v41 = vpop.f32.mrf.mxu1 }
 0x2c2   :  { %v10030_v19 = vadd.f32 %v4400_v41, %v9474_v50  ;;  %v7753_v50 = vld [vmem:[%s11735_s1 + $0x60c] sm:$0xf] }
 0x2c3   :  { %v10032_v53 = vadd.f32 %v4373_v1, %v4285_v36  ;;  %4691 = vmatmul.bf16.gmra.mxu0 %v6023_v38  ;;  %v6347_v35 = vor.u32 %v7753_v50, %v6344_v24 }
 0x2c4   :  { %4439 = vmatmul.bf16.gmra.mxu1 %v6263_v37  ;;  %4518 = vmatmul.bf16.gmra.mxu2 %v6099_v23 }
 0x2c5   :  { %4602 = vmatmul.bf16.gmra.mxu3 %v6019_v56  ;;  %v6428_v56 = vld [vmem:[%s11735_s1 + $0x704] sm:$0xf0] }
 0x2c7   :  { %v4203_v8 = vpop.f32.mrf.mxu2 }
 0x2c8   :  { %v4287_v34 = vpop.f32.mrf.mxu3  ;;  %v4204_v25 = vadd.f32 %v4203_v8, %v9958_v6  ;;  %v4378_v22 = vpop.f32.mrf.mxu0  ;;  %v6182_v6 = vld [vmem:[%s11735_s1 + $0x4c0] sm:$0xf]  ;;  %v6190_v8 = vld [vmem:[%s11735_s1 + $0x4c8] sm:$0xf] }
 0x2c9   :  { %v4288_v46 = vadd.f32 %v4287_v34, %v4199_v17  ;;  %v4402_v7 = vpop.f32.mrf.mxu1  ;;  %v7691_v17 = vld [vmem:[%s11735_s1 + $0x41c] sm:$0xf]  ;;  %v6183_v11 = vor.u32 %v7722_v12, %v6182_v6 }
 0x2ca   :  { %v10036_v39 = vadd.f32 %v4402_v7, %v9504_v27  ;;  %v7702_v27 = vld [vmem:[%s11735_s1 + $0x470] sm:$0xf0]  ;;  %v6103_v31 = vor.u32 %v7691_v17, %v6100_v47  ;;  %v7743_v34 = vld [vmem:[%s11735_s1 + $0x5b8] sm:$0xf0] }
 0x2cb   :  { %v10038_v4 = vadd.f32 %v4376_v20, %v4288_v46  ;;  %v6107_v49 = vor.u32 %v7702_v27, %v6106_v16  ;;  %v6184_v46 = vld [vmem:[%s11735_s1 + $0x514] sm:$0xf0] }
 0x2cf   :  { %v4205_v26 = vpop.f32.mrf.mxu2 }
 0x2d0   :  { %v4289_v1 = vpop.f32.mrf.mxu3  ;;  %v4206_v61 = vadd.f32 %v4205_v26, %v9964_v10  ;;  %v4381_v30 = vpop.f32.mrf.mxu0 }
 0x2d1   :  { %v4290_v5 = vadd.f32 %v4289_v1, %v4201_v9  ;;  %v4405_v57 = vpop.f32.mrf.mxu1 }
 0x2d2   :  { %v10066_v28 = vadd.f32 %v4405_v57, %v9519_v63  ;;  %v7774_v63 = vld [vmem:[%s11735_s1 + $0x6b4] sm:$0xf] }
 0x2d3   :  { %v10068_v48 = vadd.f32 %v4378_v22, %v4290_v5  ;;  %4696 = vmatmul.bf16.gmra.mxu0 %v6107_v49  ;;  %v6431_v50 = vor.u32 %v7774_v63, %v6428_v56 }
 0x2d4   :  { %4444 = vmatmul.bf16.gmra.mxu1 %v6347_v35  ;;  %4523 = vmatmul.bf16.gmra.mxu2 %v6183_v11 }
 0x2d5   :  { %4607 = vmatmul.bf16.gmra.mxu3 %v6103_v31  ;;  %v6512_v31 = vld [vmem:[%s11735_s1 + $0x7ac] sm:$0xf0] }
 0x2d7   :  { %v4208_v37 = vpop.f32.mrf.mxu2 }
 0x2d8   :  { %v4292_v38 = vpop.f32.mrf.mxu3  ;;  %v4209_v36 = vadd.f32 %v4208_v37, %v9994_v40  ;;  %v4383_v10 = vpop.f32.mrf.mxu0  ;;  %v6266_v40 = vld [vmem:[%s11735_s1 + $0x568] sm:$0xf]  ;;  %v6350_v37 = vld [vmem:[%s11735_s1 + $0x610] sm:$0xf] }
 0x2d9   :  { %v4293_v20 = vadd.f32 %v4292_v38, %v4204_v25  ;;  %v4407_v9 = vpop.f32.mrf.mxu1  ;;  %v7712_v25 = vld [vmem:[%s11735_s1 + $0x4c4] sm:$0xf]  ;;  %v6267_v17 = vor.u32 %v7743_v34, %v6266_v40 }
 0x2da   :  { %v10072_v41 = vadd.f32 %v4407_v9, %v9552_v32  ;;  %v7723_v32 = vld [vmem:[%s11735_s1 + $0x518] sm:$0xf0]  ;;  %v6187_v47 = vor.u32 %v7712_v25, %v6184_v46  ;;  %v7764_v38 = vld [vmem:[%s11735_s1 + $0x660] sm:$0xf0] }
 0x2db   :  { %v10074_v23 = vadd.f32 %v4381_v30, %v4293_v20  ;;  %v6191_v24 = vor.u32 %v7723_v32, %v6190_v8  ;;  %v6268_v20 = vld [vmem:[%s11735_s1 + $0x5bc] sm:$0xf0]  ;;  %v6351_v25 = vor.u32 %v7764_v38, %v6350_v37 }
 0x2df   :  { %v4210_v22 = vpop.f32.mrf.mxu2 }
 0x2e0   :  { %v4294_v7 = vpop.f32.mrf.mxu3  ;;  %v4211_v6 = vadd.f32 %v4210_v22, %v10000_v21  ;;  %v4386_v27 = vpop.f32.mrf.mxu0 }
 0x2e1   :  { %v4295_v16 = vadd.f32 %v4294_v7, %v4206_v61  ;;  %v4410_v12 = vpop.f32.mrf.mxu1 }
 0x2e2   :  { %v10102_v26 = vadd.f32 %v4410_v12, %v9567_v33  ;;  %v7795_v33 = vld [vmem:[%s11735_s1 + $0x75c] sm:$0xf] }
 0x2e3   :  { %v10104_v1 = vadd.f32 %v4383_v10, %v4295_v16  ;;  %4701 = vmatmul.bf16.gmra.mxu0 %v6191_v24  ;;  %v6515_v63 = vor.u32 %v7795_v33, %v6512_v31 }
 0x2e4   :  { %4449 = vmatmul.bf16.gmra.mxu1 %v6431_v50  ;;  %4528 = vmatmul.bf16.gmra.mxu2 %v6267_v17 }
 0x2e5   :  { %4612 = vmatmul.bf16.gmra.mxu3 %v6187_v47  ;;  %v6596_v47 = vld [vmem:[%s11735_s1 + $0x854] sm:$0xf0] }
 0x2e7   :  { %v4489_v49 = vpop.f32.mrf.mxu2 }
 0x2e8   :  { %v4297_v35 = vpop.f32.mrf.mxu3  ;;  %v4490_v30 = vadd.f32 %v4489_v49, %v10030_v19  ;;  %v4388_v21 = vpop.f32.mrf.mxu0  ;;  %v6274_v19 = vld [vmem:[%s11735_s1 + $0x570] sm:$0xf]  ;;  %v7785_v49 = vld [vmem:[%s11735_s1 + $0x708] sm:$0xf0] }
 0x2e9   :  { %v4298_v5 = vadd.f32 %v4297_v35, %v4209_v36  ;;  %v4412_v61 = vpop.f32.mrf.mxu1  ;;  %v7733_v36 = vld [vmem:[%s11735_s1 + $0x56c] sm:$0xf]  ;;  %v6358_v35 = vld [vmem:[%s11735_s1 + $0x618] sm:$0xf] }
 0x2ea   :  { %v10108_v57 = vadd.f32 %v4412_v61, %v9600_v51  ;;  %v7744_v51 = vld [vmem:[%s11735_s1 + $0x5c0] sm:$0xf0]  ;;  %v6271_v46 = vor.u32 %v7733_v36, %v6268_v20 }
 0x2eb   :  { %v10110_v11 = vadd.f32 %v4386_v27, %v4298_v5  ;;  %v6275_v56 = vor.u32 %v7744_v51, %v6274_v19  ;;  %v7754_v5 = vld [vmem:[%s11735_s1 + $0x614] sm:$0xf] }
 0x2ef   :  { %v4491_v9 = vpop.f32.mrf.mxu2 }
 0x2f0   :  { %v4299_v10 = vpop.f32.mrf.mxu3  ;;  %v4492_v8 = vadd.f32 %v4491_v9, %v10036_v39  ;;  %v4667_v34 = vpop.f32.mrf.mxu0 }
 0x2f1   :  { %v4300_v40 = vadd.f32 %v4299_v10, %v4211_v6  ;;  %v4415_v32 = vpop.f32.mrf.mxu1 }
 0x2f2   :  { %v10138_v22 = vadd.f32 %v4415_v32, %v9615_v45  ;;  %v7816_v45 = vld [vmem:[%s11735_s1 + $0x804] sm:$0xf] }
 0x2f3   :  { %v10140_v7 = vadd.f32 %v4388_v21, %v4300_v40  ;;  %4706 = vmatmul.bf16.gmra.mxu0 %v6275_v56  ;;  %v6599_v33 = vor.u32 %v7816_v45, %v6596_v47  ;;  %v8006_v40 = vld [vmem:[%s11734_s0 + $0x370] sm:$0xff] }
 0x2f4   :  { %4454 = vmatmul.bf16.gmra.mxu1 %v6515_v63  ;;  %4533 = vmatmul.bf16.gmra.mxu2 %v6351_v25  ;;  %v8007_v63 = vld [vmem:[%s11734_s0 + $0x378] sm:$0xff]  ;;  %v6436_v45 = vld [vmem:[%s11735_s1 + $0x70c] sm:$0xf0] }
 0x2f5   :  { %4617 = vmatmul.bf16.gmra.mxu3 %v6271_v46  ;;  %4747 = vmatpush.bf16.msra.mxu1 %v8007_v63  ;;  %v8005_v46 = vld [vmem:[%s11734_s0 + $0x368] sm:$0xff] }
 0x2f7   :  { %v4494_v50 = vpop.f32.mrf.mxu2 }
 0x2f8   :  { %v4578_v24 = vpop.f32.mrf.mxu3  ;;  %v4495_v16 = vadd.f32 %v4494_v50, %v10066_v28  ;;  %v4669_v39 = vpop.f32.mrf.mxu0  ;;  %v6434_v28 = vld [vmem:[%s11735_s1 + $0x6b8] sm:$0xf] }
 0x2f9   :  { %v4579_v6 = vadd.f32 %v4578_v24, %v4490_v30  ;;  %v4417_v27 = vpop.f32.mrf.mxu1  ;;  %v6352_v30 = vld [vmem:[%s11735_s1 + $0x664] sm:$0xf0]  ;;  %v6435_v36 = vor.u32 %v7785_v49, %v6434_v28  ;;  %4748 = vmatpush.bf16.msra.mxu1 %v8006_v40  ;;  %v7837_v24 = vld [vmem:[%s11735_s1 + $0x8ac] sm:$0xf]  ;;  %v8004_v49 = vld [vmem:[%s11734_s0 + $0x360] sm:$0xff] }
 0x2fa   :  { %v10144_v12 = vadd.f32 %v4417_v27, %v9648_v14  ;;  %v7765_v14 = vld [vmem:[%s11735_s1 + $0x668] sm:$0xf0]  ;;  %v6355_v20 = vor.u32 %v7754_v5, %v6352_v30  ;;  %v7806_v27 = vld [vmem:[%s11735_s1 + $0x7b0] sm:$0xf0] }
 0x2fb   :  { %v10146_v17 = vadd.f32 %v4667_v34, %v4579_v6  ;;  %v6359_v31 = vor.u32 %v7765_v14, %v6358_v35  ;;  %v7786_v6 = vld [vmem:[%s11735_s1 + $0x710] sm:$0xf0]  ;;  %v8001_v40 = vld [vmem:[%s11734_s0 + $0x348] sm:$0xff] }
 0x2fd   :  { %4749 = vmatpush.bf16.msra.mxu1 %v8005_v46  ;;  %v7827_v46 = vld [vmem:[%s11735_s1 + $0x858] sm:$0xf0] }
 0x2ff   :  { %v4496_v21 = vpop.f32.mrf.mxu2 }
 0x300   :  { %v4580_v61 = vpop.f32.mrf.mxu3  ;;  %v4497_v37 = vadd.f32 %v4496_v21, %v10072_v41  ;;  %v4672_v38 = vpop.f32.mrf.mxu0 }
 0x301   :  { %v4581_v19 = vadd.f32 %v4580_v61, %v4492_v8  ;;  %v4420_v51 = vpop.f32.mrf.mxu1  ;;  %4750 = vmatpush.bf16.msra.mxu1 %v8004_v49 }
 0x302   :  { %v10174_v10 = vadd.f32 %v4420_v51, %v9681_v62 }
 0x303   :  { %v10176_v9 = vadd.f32 %v4669_v39, %v4581_v19  ;;  %4711 = vmatmul.bf16.gmra.mxu0 %v6359_v31  ;;  %v7775_v39 = vld [vmem:[%s11735_s1 + $0x6bc] sm:$0xf] }
 0x304   :  { %4459 = vmatmul.bf16.gmra.mxu1 %v6599_v33  ;;  %4538 = vmatmul.bf16.gmra.mxu2 %v6435_v36  ;;  %v6439_v31 = vor.u32 %v7775_v39, %v6436_v45  ;;  %v8002_v36 = vld [vmem:[%s11734_s0 + $0x350] sm:$0xff]  ;;  %v8000_v39 = vld [vmem:[%s11734_s0 + $0x340] sm:$0xff] }
 0x305   :  { %4622 = vmatmul.bf16.gmra.mxu3 %v6355_v20 }
 0x307   :  { %v4499_v41 = vpop.f32.mrf.mxu2 }
 0x308   :  { %v4583_v56 = vpop.f32.mrf.mxu3  ;;  %v4500_v62 = vadd.f32 %v4499_v41, %v10102_v26  ;;  %v4674_v34 = vpop.f32.mrf.mxu0  ;;  %v6680_v26 = vld [vmem:[%s11735_s1 + $0x8fc] sm:$0xf0] }
 0x309   :  { %v4584_v8 = vadd.f32 %v4583_v56, %v4495_v16  ;;  %v4422_v32 = vpop.f32.mrf.mxu1  ;;  %v6442_v16 = vld [vmem:[%s11735_s1 + $0x6c0] sm:$0xf]  ;;  %v6683_v35 = vor.u32 %v7837_v24, %v6680_v26  ;;  %v7796_v24 = vld [vmem:[%s11735_s1 + $0x764] sm:$0xf]  ;;  %v6520_v26 = vld [vmem:[%s11735_s1 + $0x7b4] sm:$0xf0] }
 0x30a   :  { %v10186_v25 = vadd.f32 %v4422_v32, %v9720_v2  ;;  %v6518_v2 = vld [vmem:[%s11735_s1 + $0x760] sm:$0xf]  ;;  %v6443_v14 = vor.u32 %v7786_v6, %v6442_v16  ;;  %v7858_v32 = vld [vmem:[%s11735_s1 + $0x954] sm:$0xf]  ;;  %v6523_v49 = vor.u32 %v7796_v24, %v6520_v26 }
 0x30b   :  { %v10191_v50 = vadd.f32 %v4672_v38, %v4584_v8  ;;  %v6519_v33 = vor.u32 %v7806_v27, %v6518_v2  ;;  %v8003_v38 = vld [vmem:[%s11734_s0 + $0x358] sm:$0xff]  ;;  %v8012_v24 = vld [vmem:[%s11734_s0 + $0x3a0] sm:$0xff] }
 0x30c   :  { %4751 = vmatpush.bf16.msra.mxu1 %v8003_v38 }
 0x30f   :  { %v4501_v47 = vpop.f32.mrf.mxu2 }
 0x310   :  { %v4585_v28 = vpop.f32.mrf.mxu3  ;;  %v4502_v5 = vadd.f32 %v4501_v47, %v10108_v57  ;;  %v4677_v61 = vpop.f32.mrf.mxu0  ;;  %4752 = vmatpush.bf16.msra.mxu1 %v8002_v36  ;;  %v8013_v36 = vld [vmem:[%s11734_s0 + $0x3a8] sm:$0xff] }
 0x311   :  { %v4586_v30 = vadd.f32 %v4585_v28, %v4497_v37  ;;  %v4425_v21 = vpop.f32.mrf.mxu1 }
 0x312   :  { %v10222_v19 = vadd.f32 %v4425_v21, %v9744_v42 }
 0x313   :  { %v10224_v51 = vadd.f32 %v4674_v34, %v4586_v30  ;;  %4716 = vmatmul.bf16.gmra.mxu0 %v6443_v14  ;;  %v7807_v34 = vld [vmem:[%s11735_s1 + $0x7b8] sm:$0xf0] }
 0x314   :  { %4464 = vmatmul.bf16.gmra.mxu1 %v6683_v35  ;;  %4543 = vmatmul.bf16.gmra.mxu2 %v6519_v33  ;;  %v8014_v33 = vld [vmem:[%s11734_s0 + $0x3b0] sm:$0xff] }
 0x315   :  { %4627 = vmatmul.bf16.gmra.mxu3 %v6439_v31  ;;  %4753 = vmatpush.bf16.msra.mxu1 %v8001_v40  ;;  %v7848_v40 = vld [vmem:[%s11735_s1 + $0x900] sm:$0xf0] }
 0x317   :  { %v4504_v57 = vpop.f32.mrf.mxu2 }
 0x318   :  { %v4588_v37 = vpop.f32.mrf.mxu3  ;;  %v4505_v42 = vadd.f32 %v4504_v57, %v10138_v22  ;;  %v4679_v41 = vpop.f32.mrf.mxu0  ;;  %v6764_v22 = vld [vmem:[%s11735_s1 + $0x9a4] sm:$0xf0] }
 0x319   :  { %v4589_v20 = vadd.f32 %v4588_v37, %v4500_v62  ;;  %v4427_v63 = vpop.f32.mrf.mxu1  ;;  %v6526_v62 = vld [vmem:[%s11735_s1 + $0x768] sm:$0xf]  ;;  %v6767_v6 = vor.u32 %v7858_v32, %v6764_v22  ;;  %4754 = vmatpush.bf16.msra.mxu1 %v8000_v39  ;;  %v7817_v32 = vld [vmem:[%s11735_s1 + $0x80c] sm:$0xf]  ;;  %v6604_v22 = vld [vmem:[%s11735_s1 + $0x85c] sm:$0xf0] }
 0x31a   :  { %v10234_v56 = vadd.f32 %v4427_v63, %v9780_v13  ;;  %v6602_v13 = vld [vmem:[%s11735_s1 + $0x808] sm:$0xf]  ;;  %v6527_v27 = vor.u32 %v7807_v34, %v6526_v62  ;;  %v7879_v63 = vld [vmem:[%s11735_s1 + $0x9fc] sm:$0xf]  ;;  %v6607_v39 = vor.u32 %v7817_v32, %v6604_v22  ;;  %v7838_v32 = vld [vmem:[%s11735_s1 + $0x8b4] sm:$0xf] }
 0x31b   :  { %v10239_v8 = vadd.f32 %v4677_v61, %v4589_v20  ;;  %v6603_v14 = vor.u32 %v7827_v46, %v6602_v13  ;;  %v8015_v61 = vld [vmem:[%s11734_s0 + $0x3b8] sm:$0xff]  ;;  %v6688_v22 = vld [vmem:[%s11735_s1 + $0x904] sm:$0xf0] }
 0x31c   :  { %4836 = vmatpush.bf16.msra.mxu2 %v8015_v61  ;;  %v8022_v61 = vld [vmem:[%s11734_s0 + $0x3f0] sm:$0xff] }
 0x31f   :  { %v4506_v2 = vpop.f32.mrf.mxu2 }
 0x320   :  { %v4590_v16 = vpop.f32.mrf.mxu3  ;;  %v4507_v45 = vadd.f32 %v4506_v2, %v10144_v12  ;;  %v4682_v35 = vpop.f32.mrf.mxu0  ;;  %4837 = vmatpush.bf16.msra.mxu2 %v8014_v33 }
 0x321   :  { %v4591_v47 = vadd.f32 %v4590_v16, %v4502_v5  ;;  %v4430_v28 = vpop.f32.mrf.mxu1 }
 0x322   :  { %v10270_v30 = vadd.f32 %v4430_v28, %v9786_v60 }
 0x323   :  { %v10272_v21 = vadd.f32 %v4679_v41, %v4591_v47  ;;  %4721 = vmatmul.bf16.gmra.mxu0 %v6527_v27  ;;  %v7828_v41 = vld [vmem:[%s11735_s1 + $0x860] sm:$0xf0] }
 0x324   :  { %4469 = vmatmul.bf16.gmra.mxu1 %v6767_v6  ;;  %4548 = vmatmul.bf16.gmra.mxu2 %v6603_v14 }
 0x325   :  { %4632 = vmatmul.bf16.gmra.mxu3 %v6523_v49  ;;  %4838 = vmatpush.bf16.msra.mxu2 %v8013_v36  ;;  %v8010_v49 = vld [vmem:[%s11734_s0 + $0x390] sm:$0xff]  ;;  %v8009_v36 = vld [vmem:[%s11734_s0 + $0x388] sm:$0xff] }
 0x327   :  { %v4509_v12 = vpop.f32.mrf.mxu2 }
 0x328   :  { %v4593_v5 = vpop.f32.mrf.mxu3  ;;  %v4510_v60 = vadd.f32 %v4509_v12, %v10174_v10  ;;  %v4684_v57 = vpop.f32.mrf.mxu0  ;;  %v6848_v10 = vld [vmem:[%s11735_s1 + $0xa4c] sm:$0xf0] }
 0x329   :  { %v4594_v31 = vadd.f32 %v4593_v5, %v4505_v42  ;;  %v4432_v38 = vpop.f32.mrf.mxu1  ;;  %v6610_v42 = vld [vmem:[%s11735_s1 + $0x810] sm:$0xf]  ;;  %v6851_v34 = vor.u32 %v7879_v63, %v6848_v10  ;;  %4839 = vmatpush.bf16.msra.mxu2 %v8012_v24  ;;  %v8021_v63 = vld [vmem:[%s11734_s0 + $0x3e8] sm:$0xff]  ;;  %v6694_v10 = vld [vmem:[%s11735_s1 + $0x8b8] sm:$0xf] }
 0x32a   :  { %v10282_v37 = vadd.f32 %v4432_v38, %v9816_v58  ;;  %v6686_v58 = vld [vmem:[%s11735_s1 + $0x8b0] sm:$0xf]  ;;  %v6611_v46 = vor.u32 %v7828_v41, %v6610_v42  ;;  %v7566_v42 = vld [vmem:[%s11735_s1 + $0x34] sm:$0xf]  ;;  %v5604_v41 = vld [vmem:[%s11735_s1 + $0x84] sm:$0xf0] }
 0x32b   :  { %v10287_v20 = vadd.f32 %v4682_v35, %v4594_v31  ;;  %v6687_v27 = vor.u32 %v7848_v40, %v6686_v58  ;;  %v8011_v35 = vld [vmem:[%s11734_s0 + $0x398] sm:$0xff]  ;;  %v8030_v12 = vld [vmem:[%s11734_s0 + $0x430] sm:$0xff]  ;;  %v7849_v58 = vld [vmem:[%s11735_s1 + $0x908] sm:$0xf0] }
 0x32c   :  { %v7869_v40 = vld [vmem:[%s11735_s1 + $0x9a8] sm:$0xf0]  ;;  %v8008_v24 = vld [vmem:[%s11734_s0 + $0x380] sm:$0xff] }
 0x32d   :  { %4840 = vmatpush.bf16.msra.mxu2 %v8011_v35 }
 0x32f   :  { %v4511_v13 = vpop.f32.mrf.mxu2 }
 0x330   :  { %v4595_v62 = vpop.f32.mrf.mxu3  ;;  %v4512_v26 = vadd.f32 %v4511_v13, %v10186_v25  ;;  %v4687_v6 = vpop.f32.mrf.mxu0  ;;  %v8023_v25 = vld [vmem:[%s11734_s0 + $0x3f8] sm:$0xff] }
 0x331   :  { %v4596_v2 = vadd.f32 %v4595_v62, %v4507_v45  ;;  %v4435_v16 = vpop.f32.mrf.mxu1  ;;  %4925 = vmatpush.bf16.msra.mxu3 %v8023_v25  ;;  %4841 = vmatpush.bf16.msra.mxu2 %v8010_v49  ;;  %v8019_v49 = vld [vmem:[%s11734_s0 + $0x3d8] sm:$0xff] }
 0x332   :  { %v10318_v47 = vadd.f32 %v4435_v16, %v9822_v44  ;;  %v8031_v44 = vld [vmem:[%s11734_s0 + $0x438] sm:$0xff]  ;;  %v8028_v16 = vld [vmem:[%s11734_s0 + $0x420] sm:$0xff] }
 0x333   :  { %v10320_v28 = vadd.f32 %v4684_v57, %v4596_v2  ;;  %4726 = vmatmul.bf16.gmra.mxu0 %v6611_v46  ;;  %v5607_v46 = vor.u32 %v7566_v42, %v5604_v41  ;;  %v8020_v2 = vld [vmem:[%s11734_s0 + $0x3e0] sm:$0xff]  ;;  %v5688_v42 = vld [vmem:[%s11735_s1 + $0x12c] sm:$0xf0]  ;;  %v7890_v41 = vld [vmem:[%s11735_s1 + $0xa50] sm:$0xf0] }
 0x334   :  { %4474 = vmatmul.bf16.gmra.mxu1 %v6851_v34  ;;  %4553 = vmatmul.bf16.gmra.mxu2 %v6687_v27  ;;  %v6695_v34 = vor.u32 %v7849_v58, %v6694_v10  ;;  %v7587_v58 = vld [vmem:[%s11735_s1 + $0xdc] sm:$0xf] }
 0x335   :  { %4637 = vmatmul.bf16.gmra.mxu3 %v6607_v39  ;;  %5014 = vmatpush.bf16.msra.mxu0 %v8031_v44  ;;  %v6691_v44 = vor.u32 %v7838_v32, %v6688_v22  ;;  %v6772_v32 = vld [vmem:[%s11735_s1 + $0x9ac] sm:$0xf0] }
 0x336   :  { %4926 = vmatpush.bf16.msra.mxu3 %v8022_v61  ;;  %4842 = vmatpush.bf16.msra.mxu2 %v8009_v36  ;;  %v8018_v61 = vld [vmem:[%s11734_s0 + $0x3d0] sm:$0xff] }
 0x337   :  { %v4514_v45 = vpop.f32.mrf.mxu2 }
 0x338   :  { %v4598_v14 = vpop.f32.mrf.mxu3  ;;  %v4515_v5 = vadd.f32 %v4514_v45, %v10222_v19  ;;  %v4689_v38 = vpop.f32.mrf.mxu0  ;;  %v8029_v19 = vld [vmem:[%s11734_s0 + $0x428] sm:$0xff] }
 0x339   :  { %v4599_v33 = vadd.f32 %v4598_v14, %v4510_v60  ;;  %v4437_v31 = vpop.f32.mrf.mxu1  ;;  %5015 = vmatpush.bf16.msra.mxu0 %v8030_v12  ;;  %v8026_v12 = vld [vmem:[%s11734_s0 + $0x410] sm:$0xff] }
 0x33a   :  { %v10342_v57 = vadd.f32 %v4437_v31, %v9852_v59  ;;  %v6770_v59 = vld [vmem:[%s11735_s1 + $0x958] sm:$0xf]  ;;  %4927 = vmatpush.bf16.msra.mxu3 %v8021_v63  ;;  %4843 = vmatpush.bf16.msra.mxu2 %v8008_v24  ;;  %v8024_v24 = vld [vmem:[%s11734_s0 + $0x400] sm:$0xff] }
 0x33b   :  { %v10353_v60 = vadd.f32 %v4687_v6, %v4599_v33  ;;  %v6771_v25 = vor.u32 %v7869_v40, %v6770_v59  ;;  %v8025_v59 = vld [vmem:[%s11734_s0 + $0x408] sm:$0xff]  ;;  %v7859_v40 = vld [vmem:[%s11735_s1 + $0x95c] sm:$0xf] }
 0x33d   :  { %5016 = vmatpush.bf16.msra.mxu0 %v8029_v19  ;;  %v8017_v19 = vld [vmem:[%s11734_s0 + $0x3c8] sm:$0xff] }
 0x33e   :  { %4928 = vmatpush.bf16.msra.mxu3 %v8020_v2 }
 0x33f   :  { %v4516_v13 = vpop.f32.mrf.mxu2 }
 0x340   :  { %v4600_v62 = vpop.f32.mrf.mxu3  ;;  %v4517_v6 = vadd.f32 %v4516_v13, %v10234_v56  ;;  %v4692_v35 = vpop.f32.mrf.mxu0  ;;  %v8027_v56 = vld [vmem:[%s11734_s0 + $0x418] sm:$0xff] }
 0x341   :  { %v4601_v27 = vadd.f32 %v4600_v62, %v4512_v26  ;;  %v4440_v39 = vpop.f32.mrf.mxu1  ;;  %5017 = vmatpush.bf16.msra.mxu0 %v8028_v16 }
 0x342   :  { %v10390_v45 = vadd.f32 %v4440_v39, %v9858_v29  ;;  %4929 = vmatpush.bf16.msra.mxu3 %v8019_v49 }
 0x343   :  { %v10392_v14 = vadd.f32 %v4689_v38, %v4601_v27  ;;  %4731 = vmatmul.bf16.gmra.mxu0 %v6695_v34  ;;  %v5691_v34 = vor.u32 %v7587_v58, %v5688_v42 }
 0x344   :  { %4755 = vmatmul.bf16.vlgmr.msra.gmra.mxu1 %v5607_v46  ;;  %4558 = vmatmul.bf16.gmra.mxu2 %v6771_v25  ;;  %v8016_v46 = vld [vmem:[%s11734_s0 + $0x3c0] sm:$0xff]  ;;  %v6775_v25 = vor.u32 %v7859_v40, %v6772_v32 }
 0x345   :  { %4642 = vmatmul.bf16.gmra.mxu3 %v6691_v44  ;;  %5018 = vmatpush.bf16.msra.mxu0 %v8027_v56 }
 0x346   :  { %4930 = vmatpush.bf16.msra.mxu3 %v8018_v61 }
 0x347   :  { %v4519_v29 = vpop.f32.mrf.mxu2 }
 0x348   :  { %v4603_v26 = vpop.f32.mrf.mxu3  ;;  %v4520_v33 = vadd.f32 %v4519_v29, %v10270_v30  ;;  %v4694_v36 = vpop.f32.mrf.mxu0  ;;  %v6854_v30 = vld [vmem:[%s11735_s1 + $0xa00] sm:$0xf] }
 0x349   :  { %v4604_v31 = vadd.f32 %v4603_v26, %v4515_v5  ;;  %v4442_v38 = vpop.f32.mrf.mxu1  ;;  %5019 = vmatpush.bf16.msra.mxu0 %v8026_v12  ;;  %v7870_v5 = vld [vmem:[%s11735_s1 + $0x9b0] sm:$0xf0] }
 0x34a   :  { %v10408_v63 = vadd.f32 %v4442_v38, %v9888_v52  ;;  %v6778_v52 = vld [vmem:[%s11735_s1 + $0x960] sm:$0xf]  ;;  %4931 = vmatpush.bf16.msra.mxu3 %v8017_v19  ;;  %v6862_v38 = vld [vmem:[%s11735_s1 + $0xa08] sm:$0xf]  ;;  %v5610_v19 = vld [vmem:[%s11735_s1 + $0x38] sm:$0xf] }
 0x34b   :  { %v10416_v10 = vadd.f32 %v4692_v35, %v4604_v31  ;;  %v6779_v62 = vor.u32 %v7870_v5, %v6778_v52  ;;  %v6855_v35 = vor.u32 %v7890_v41, %v6854_v30  ;;  %v7880_v31 = vld [vmem:[%s11735_s1 + $0xa04] sm:$0xf] }
 0x34d   :  { %5020 = vmatpush.bf16.msra.mxu0 %v8025_v59  ;;  %v7577_v59 = vld [vmem:[%s11735_s1 + $0x88] sm:$0xf0] }
 0x34e   :  { %4932 = vmatpush.bf16.msra.mxu3 %v8016_v46 }
 0x34f   :  { %v4521_v22 = vpop.f32.mrf.mxu2 }
 0x350   :  { %v4605_v13 = vpop.f32.mrf.mxu3  ;;  %v4522_v2 = vadd.f32 %v4521_v22, %v10282_v37  ;;  %v4697_v39 = vpop.f32.mrf.mxu0 }
 0x351   :  { %v4606_v16 = vadd.f32 %v4605_v13, %v4517_v6  ;;  %v4445_v27 = vpop.f32.mrf.mxu1  ;;  %5021 = vmatpush.bf16.msra.mxu0 %v8024_v24  ;;  %v5611_v13 = vor.u32 %v7577_v59, %v5610_v19 }
 0x352   :  { %v10450_v44 = vadd.f32 %v4445_v27, %v9894_v0 }
 0x353   :  { %v10452_v49 = vadd.f32 %v4694_v36, %v4606_v16  ;;  %4736 = vmatmul.bf16.gmra.mxu0 %v6779_v62  ;;  %v6856_v36 = vld [vmem:[%s11735_s1 + $0xa54] sm:$0xf0] }
 0x354   :  { %4760 = vmatmul.bf16.gmra.mxu1 %v5691_v34  ;;  %4563 = vmatmul.bf16.gmra.mxu2 %v6855_v35  ;;  %v6859_v22 = vor.u32 %v7880_v31, %v6856_v36 }
 0x355   :  { %4647 = vmatmul.bf16.gmra.mxu3 %v6775_v25  ;;  %v5856_v25 = vld [vmem:[%s11735_s1 + $0x27c] sm:$0xf0] }
 0x357   :  { %v4524_v56 = vpop.f32.mrf.mxu2 }
 0x358   :  { %v4608_v29 = vpop.f32.mrf.mxu3  ;;  %v4525_v37 = vadd.f32 %v4524_v56, %v10318_v47  ;;  %v4699_v61 = vpop.f32.mrf.mxu0  ;;  %v7891_v47 = vld [vmem:[%s11735_s1 + $0xa58] sm:$0xf0]  ;;  %v5618_v56 = vld [vmem:[%s11735_s1 + $0x40] sm:$0xf] }
 0x359   :  { %v4609_v6 = vadd.f32 %v4608_v29, %v4520_v33  ;;  %v4447_v26 = vpop.f32.mrf.mxu1  ;;  %v7608_v33 = vld [vmem:[%s11735_s1 + $0x184] sm:$0xf]  ;;  %v6863_v5 = vor.u32 %v7891_v47, %v6862_v38  ;;  %v7598_v29 = vld [vmem:[%s11735_s1 + $0x130] sm:$0xf0] }
 0x35a   :  { %v10456_v12 = vadd.f32 %v4447_v26, %v9924_v3  ;;  %v5772_v3 = vld [vmem:[%s11735_s1 + $0x1d4] sm:$0xf0] }
 0x35b   :  { %v10458_v0 = vadd.f32 %v4697_v39, %v4609_v6  ;;  %v5775_v58 = vor.u32 %v7608_v33, %v5772_v3  ;;  %v5612_v6 = vld [vmem:[%s11735_s1 + $0x8c] sm:$0xf0] }
 0x35f   :  { %v4526_v30 = vpop.f32.mrf.mxu2 }
 0x360   :  { %v4610_v52 = vpop.f32.mrf.mxu3  ;;  %v4527_v42 = vadd.f32 %v4526_v30, %v10342_v57  ;;  %v4702_v32 = vpop.f32.mrf.mxu0 }
 0x361   :  { %v4611_v41 = vadd.f32 %v4610_v52, %v4522_v2  ;;  %v4450_v40 = vpop.f32.mrf.mxu1 }
 0x362   :  { %v10486_v62 = vadd.f32 %v4450_v40, %v9930_v54  ;;  %v7629_v54 = vld [vmem:[%s11735_s1 + $0x22c] sm:$0xf] }
 0x363   :  { %v10488_v34 = vadd.f32 %v4699_v61, %v4611_v41  ;;  %4741 = vmatmul.bf16.gmra.mxu0 %v6863_v5  ;;  %v5859_v31 = vor.u32 %v7629_v54, %v5856_v25 }
 0x364   :  { %4765 = vmatmul.bf16.gmra.mxu1 %v5775_v58  ;;  %4844 = vmatmul.bf16.vlgmr.msra.gmra.mxu2 %v5611_v13  ;;  %v5940_v13 = vld [vmem:[%s11735_s1 + $0x324] sm:$0xf0] }
 0x365   :  { %4652 = vmatmul.bf16.gmra.mxu3 %v6859_v22 }
 0x367   :  { %v4529_v46 = vpop.f32.mrf.mxu2 }
 0x368   :  { %v4613_v24 = vpop.f32.mrf.mxu3  ;;  %v4530_v16 = vadd.f32 %v4529_v46, %v10390_v45  ;;  %v4704_v2 = vpop.f32.mrf.mxu0  ;;  %v5694_v45 = vld [vmem:[%s11735_s1 + $0xe0] sm:$0xf]  ;;  %v5702_v46 = vld [vmem:[%s11735_s1 + $0xe8] sm:$0xf] }
 0x369   :  { %v4614_v27 = vadd.f32 %v4613_v24, %v4525_v37  ;;  %v4452_v57 = vpop.f32.mrf.mxu1  ;;  %v7567_v37 = vld [vmem:[%s11735_s1 + $0x3c] sm:$0xf]  ;;  %v5695_v19 = vor.u32 %v7598_v29, %v5694_v45 }
 0x36a   :  { %v10492_v39 = vadd.f32 %v4452_v57, %v9960_v43  ;;  %v7578_v43 = vld [vmem:[%s11735_s1 + $0x90] sm:$0xf0]  ;;  %v5615_v59 = vor.u32 %v7567_v37, %v5612_v6  ;;  %v7619_v24 = vld [vmem:[%s11735_s1 + $0x1d8] sm:$0xf0] }
 0x36b   :  { %v10494_v35 = vadd.f32 %v4702_v32, %v4614_v27  ;;  %v5619_v38 = vor.u32 %v7578_v43, %v5618_v56  ;;  %v5696_v27 = vld [vmem:[%s11735_s1 + $0x134] sm:$0xf0] }
 0x36f   :  { %v4531_v26 = vpop.f32.mrf.mxu2 }
 0x370   :  { %v4615_v61 = vpop.f32.mrf.mxu3  ;;  %v4532_v47 = vadd.f32 %v4531_v26, %v10408_v63  ;;  %v4707_v36 = vpop.f32.mrf.mxu0 }
 0x371   :  { %v4616_v33 = vadd.f32 %v4615_v61, %v4527_v42  ;;  %v4455_v3 = vpop.f32.mrf.mxu1 }
 0x372   :  { %v10522_v30 = vadd.f32 %v4455_v3, %v9966_v15  ;;  %v7650_v15 = vld [vmem:[%s11735_s1 + $0x2d4] sm:$0xf] }
 0x373   :  { %v10524_v52 = vadd.f32 %v4704_v2, %v4616_v33  ;;  %5022 = vmatmul.bf16.vlgmr.msra.gmra.mxu0 %v5619_v38  ;;  %v5943_v54 = vor.u32 %v7650_v15, %v5940_v13 }
 0x374   :  { %4770 = vmatmul.bf16.gmra.mxu1 %v5859_v31  ;;  %4849 = vmatmul.bf16.gmra.mxu2 %v5695_v19 }
 0x375   :  { %4933 = vmatmul.bf16.vlgmr.msra.gmra.mxu3 %v5615_v59  ;;  %v6024_v59 = vld [vmem:[%s11735_s1 + $0x3cc] sm:$0xf0] }
 0x377   :  { %v4534_v5 = vpop.f32.mrf.mxu2 }
 0x378   :  { %v4618_v58 = vpop.f32.mrf.mxu3  ;;  %v4535_v41 = vadd.f32 %v4534_v5, %v10450_v44  ;;  %v4709_v42 = vpop.f32.mrf.mxu0  ;;  %v5778_v44 = vld [vmem:[%s11735_s1 + $0x188] sm:$0xf]  ;;  %v5786_v5 = vld [vmem:[%s11735_s1 + $0x190] sm:$0xf] }
 0x379   :  { %v4619_v40 = vadd.f32 %v4618_v58, %v4530_v16  ;;  %v4457_v63 = vpop.f32.mrf.mxu1  ;;  %v7588_v16 = vld [vmem:[%s11735_s1 + $0xe4] sm:$0xf]  ;;  %v5779_v37 = vor.u32 %v7619_v24, %v5778_v44 }
 0x37a   :  { %v10528_v32 = vadd.f32 %v4457_v63, %v9996_v55  ;;  %v7599_v55 = vld [vmem:[%s11735_s1 + $0x138] sm:$0xf0]  ;;  %v5699_v6 = vor.u32 %v7588_v16, %v5696_v27  ;;  %v7640_v58 = vld [vmem:[%s11735_s1 + $0x280] sm:$0xf0] }
 0x37b   :  { %v10530_v22 = vadd.f32 %v4707_v36, %v4619_v40  ;;  %v5703_v25 = vor.u32 %v7599_v55, %v5702_v46  ;;  %v5780_v40 = vld [vmem:[%s11735_s1 + $0x1dc] sm:$0xf0] }
 0x37f   :  { %v4536_v57 = vpop.f32.mrf.mxu2 }
 0x380   :  { %v4620_v2 = vpop.f32.mrf.mxu3  ;;  %v4537_v45 = vadd.f32 %v4536_v57, %v10456_v12  ;;  %v4712_v29 = vpop.f32.mrf.mxu0 }
 0x381   :  { %v4621_v56 = vadd.f32 %v4620_v2, %v4532_v47  ;;  %v4460_v43 = vpop.f32.mrf.mxu1 }
 0x382   :  { %v10558_v26 = vadd.f32 %v4460_v43, %v10002_v18  ;;  %v7671_v18 = vld [vmem:[%s11735_s1 + $0x37c] sm:$0xf] }
 0x383   :  { %v10560_v61 = vadd.f32 %v4709_v42, %v4621_v56  ;;  %5027 = vmatmul.bf16.gmra.mxu0 %v5703_v25  ;;  %v6027_v15 = vor.u32 %v7671_v18, %v6024_v59 }
 0x384   :  { %4775 = vmatmul.bf16.gmra.mxu1 %v5943_v54  ;;  %4854 = vmatmul.bf16.gmra.mxu2 %v5779_v37 }
 0x385   :  { %4938 = vmatmul.bf16.gmra.mxu3 %v5699_v6  ;;  %v6108_v6 = vld [vmem:[%s11735_s1 + $0x474] sm:$0xf0] }
 0x387   :  { %v4539_v31 = vpop.f32.mrf.mxu2 }
 0x388   :  { %v4623_v38 = vpop.f32.mrf.mxu3  ;;  %v4540_v33 = vadd.f32 %v4539_v31, %v10486_v62  ;;  %v4714_v47 = vpop.f32.mrf.mxu0  ;;  %v5862_v62 = vld [vmem:[%s11735_s1 + $0x230] sm:$0xf]  ;;  %v5870_v31 = vld [vmem:[%s11735_s1 + $0x238] sm:$0xf] }
 0x389   :  { %v4624_v3 = vadd.f32 %v4623_v38, %v4535_v41  ;;  %v4462_v12 = vpop.f32.mrf.mxu1  ;;  %v7609_v41 = vld [vmem:[%s11735_s1 + $0x18c] sm:$0xf]  ;;  %v5863_v16 = vor.u32 %v7640_v58, %v5862_v62 }
 0x38a   :  { %v10564_v36 = vadd.f32 %v4462_v12, %v10032_v53  ;;  %v7620_v53 = vld [vmem:[%s11735_s1 + $0x1e0] sm:$0xf0]  ;;  %v5783_v27 = vor.u32 %v7609_v41, %v5780_v40  ;;  %v7661_v38 = vld [vmem:[%s11735_s1 + $0x328] sm:$0xf0] }
 0x38b   :  { %v10566_v19 = vadd.f32 %v4712_v29, %v4624_v3  ;;  %v5787_v13 = vor.u32 %v7620_v53, %v5786_v5  ;;  %v5864_v3 = vld [vmem:[%s11735_s1 + $0x284] sm:$0xf0] }
 0x38f   :  { %v4541_v63 = vpop.f32.mrf.mxu2 }
 0x390   :  { %v4625_v42 = vpop.f32.mrf.mxu3  ;;  %v4542_v44 = vadd.f32 %v4541_v63, %v10492_v39  ;;  %v4717_v24 = vpop.f32.mrf.mxu0 }
 0x391   :  { %v4626_v46 = vadd.f32 %v4625_v42, %v4537_v45  ;;  %v4465_v55 = vpop.f32.mrf.mxu1 }
 0x392   :  { %v10594_v57 = vadd.f32 %v4465_v55, %v10038_v4  ;;  %v7692_v4 = vld [vmem:[%s11735_s1 + $0x424] sm:$0xf] }
 0x393   :  { %v10596_v2 = vadd.f32 %v4714_v47, %v4626_v46  ;;  %5032 = vmatmul.bf16.gmra.mxu0 %v5787_v13  ;;  %v6111_v18 = vor.u32 %v7692_v4, %v6108_v6 }
 0x394   :  { %4780 = vmatmul.bf16.gmra.mxu1 %v6027_v15  ;;  %4859 = vmatmul.bf16.gmra.mxu2 %v5863_v16 }
 0x395   :  { %4943 = vmatmul.bf16.gmra.mxu3 %v5783_v27  ;;  %v6192_v27 = vld [vmem:[%s11735_s1 + $0x51c] sm:$0xf0] }
 0x397   :  { %v4544_v54 = vpop.f32.mrf.mxu2 }
 0x398   :  { %v4628_v25 = vpop.f32.mrf.mxu3  ;;  %v4545_v56 = vadd.f32 %v4544_v54, %v10522_v30  ;;  %v4719_v45 = vpop.f32.mrf.mxu0  ;;  %v5946_v30 = vld [vmem:[%s11735_s1 + $0x2d8] sm:$0xf]  ;;  %v5954_v54 = vld [vmem:[%s11735_s1 + $0x2e0] sm:$0xf] }
 0x399   :  { %v4629_v43 = vadd.f32 %v4628_v25, %v4540_v33  ;;  %v4467_v39 = vpop.f32.mrf.mxu1  ;;  %v7630_v33 = vld [vmem:[%s11735_s1 + $0x234] sm:$0xf]  ;;  %v5947_v41 = vor.u32 %v7661_v38, %v5946_v30 }
 0x39a   :  { %v10600_v29 = vadd.f32 %v4467_v39, %v10068_v48  ;;  %v7641_v48 = vld [vmem:[%s11735_s1 + $0x288] sm:$0xf0]  ;;  %v5867_v40 = vor.u32 %v7630_v33, %v5864_v3  ;;  %v7682_v25 = vld [vmem:[%s11735_s1 + $0x3d0] sm:$0xf0] }
 0x39b   :  { %v10602_v37 = vadd.f32 %v4717_v24, %v4629_v43  ;;  %v5871_v59 = vor.u32 %v7641_v48, %v5870_v31  ;;  %v5948_v43 = vld [vmem:[%s11735_s1 + $0x32c] sm:$0xf0] }
 0x39f   :  { %v4546_v12 = vpop.f32.mrf.mxu2 }
 0x3a0   :  { %v4630_v47 = vpop.f32.mrf.mxu3  ;;  %v4547_v62 = vadd.f32 %v4546_v12, %v10528_v32  ;;  %v4722_v58 = vpop.f32.mrf.mxu0 }
 0x3a1   :  { %v4631_v5 = vadd.f32 %v4630_v47, %v4542_v44  ;;  %v4470_v53 = vpop.f32.mrf.mxu1 }
 0x3a2   :  { %v10630_v63 = vadd.f32 %v4470_v53, %v10074_v23  ;;  %v7713_v23 = vld [vmem:[%s11735_s1 + $0x4cc] sm:$0xf] }
 0x3a3   :  { %v10632_v42 = vadd.f32 %v4719_v45, %v4631_v5  ;;  %5037 = vmatmul.bf16.gmra.mxu0 %v5871_v59  ;;  %v6195_v4 = vor.u32 %v7713_v23, %v6192_v27 }
 0x3a4   :  { %4785 = vmatmul.bf16.gmra.mxu1 %v6111_v18  ;;  %4864 = vmatmul.bf16.gmra.mxu2 %v5947_v41 }
 0x3a5   :  { %4948 = vmatmul.bf16.gmra.mxu3 %v5867_v40  ;;  %v6276_v40 = vld [vmem:[%s11735_s1 + $0x5c4] sm:$0xf0] }
 0x3a7   :  { %v4549_v15 = vpop.f32.mrf.mxu2 }
 0x3a8   :  { %v4633_v13 = vpop.f32.mrf.mxu3  ;;  %v4550_v46 = vadd.f32 %v4549_v15, %v10558_v26  ;;  %v4724_v44 = vpop.f32.mrf.mxu0  ;;  %v6030_v26 = vld [vmem:[%s11735_s1 + $0x380] sm:$0xf]  ;;  %v6038_v15 = vld [vmem:[%s11735_s1 + $0x388] sm:$0xf] }
 0x3a9   :  { %v4634_v55 = vadd.f32 %v4633_v13, %v4545_v56  ;;  %v4472_v32 = vpop.f32.mrf.mxu1  ;;  %v7651_v56 = vld [vmem:[%s11735_s1 + $0x2dc] sm:$0xf]  ;;  %v6031_v33 = vor.u32 %v7682_v25, %v6030_v26 }
 0x3aa   :  { %v10636_v24 = vadd.f32 %v4472_v32, %v10104_v1  ;;  %v7662_v1 = vld [vmem:[%s11735_s1 + $0x330] sm:$0xf0]  ;;  %v5951_v3 = vor.u32 %v7651_v56, %v5948_v43  ;;  %v7703_v13 = vld [vmem:[%s11735_s1 + $0x478] sm:$0xf0] }
 0x3ab   :  { %v10638_v16 = vadd.f32 %v4722_v58, %v4634_v55  ;;  %v5955_v6 = vor.u32 %v7662_v1, %v5954_v54  ;;  %v6032_v55 = vld [vmem:[%s11735_s1 + $0x3d4] sm:$0xf0] }
 0x3af   :  { %v4551_v39 = vpop.f32.mrf.mxu2 }
 0x3b0   :  { %v4635_v45 = vpop.f32.mrf.mxu3  ;;  %v4552_v30 = vadd.f32 %v4551_v39, %v10564_v36  ;;  %v4727_v38 = vpop.f32.mrf.mxu0 }
 0x3b1   :  { %v4636_v31 = vadd.f32 %v4635_v45, %v4547_v62  ;;  %v4475_v48 = vpop.f32.mrf.mxu1 }
 0x3b2   :  { %v10666_v12 = vadd.f32 %v4475_v48, %v10110_v11  ;;  %v7734_v11 = vld [vmem:[%s11735_s1 + $0x574] sm:$0xf] }
 0x3b3   :  { %v10668_v47 = vadd.f32 %v4724_v44, %v4636_v31  ;;  %5042 = vmatmul.bf16.gmra.mxu0 %v5955_v6  ;;  %v6279_v23 = vor.u32 %v7734_v11, %v6276_v40 }
 0x3b4   :  { %4790 = vmatmul.bf16.gmra.mxu1 %v6195_v4  ;;  %4869 = vmatmul.bf16.gmra.mxu2 %v6031_v33 }
 0x3b5   :  { %4953 = vmatmul.bf16.gmra.mxu3 %v5951_v3  ;;  %v6360_v3 = vld [vmem:[%s11735_s1 + $0x66c] sm:$0xf0] }
 0x3b7   :  { %v4554_v18 = vpop.f32.mrf.mxu2 }
 0x3b8   :  { %v4638_v59 = vpop.f32.mrf.mxu3  ;;  %v4555_v5 = vadd.f32 %v4554_v18, %v10594_v57  ;;  %v4729_v62 = vpop.f32.mrf.mxu0  ;;  %v6114_v57 = vld [vmem:[%s11735_s1 + $0x428] sm:$0xf]  ;;  %v6122_v18 = vld [vmem:[%s11735_s1 + $0x430] sm:$0xf] }
 0x3b9   :  { %v4639_v53 = vadd.f32 %v4638_v59, %v4550_v46  ;;  %v4477_v36 = vpop.f32.mrf.mxu1  ;;  %v7672_v46 = vld [vmem:[%s11735_s1 + $0x384] sm:$0xf]  ;;  %v6115_v56 = vor.u32 %v7703_v13, %v6114_v57 }
 0x3ba   :  { %v10672_v58 = vadd.f32 %v4477_v36, %v10140_v7  ;;  %v7683_v7 = vld [vmem:[%s11735_s1 + $0x3d8] sm:$0xf0]  ;;  %v6035_v43 = vor.u32 %v7672_v46, %v6032_v55  ;;  %v7724_v59 = vld [vmem:[%s11735_s1 + $0x520] sm:$0xf0] }
 0x3bb   :  { %v10674_v41 = vadd.f32 %v4727_v38, %v4639_v53  ;;  %v6039_v27 = vor.u32 %v7683_v7, %v6038_v15  ;;  %v6116_v53 = vld [vmem:[%s11735_s1 + $0x47c] sm:$0xf0] }
 0x3bf   :  { %v4556_v32 = vpop.f32.mrf.mxu2 }
 0x3c0   :  { %v4640_v44 = vpop.f32.mrf.mxu3  ;;  %v4557_v26 = vadd.f32 %v4556_v32, %v10600_v29  ;;  %v4732_v1 = vpop.f32.mrf.mxu0 }
 0x3c1   :  { %v4641_v54 = vadd.f32 %v4640_v44, %v4552_v30  ;;  %v4756_v25 = vpop.f32.mrf.mxu1 }
 0x3c2   :  { %v10702_v39 = vadd.f32 %v4756_v25, %v10146_v17  ;;  %v7755_v17 = vld [vmem:[%s11735_s1 + $0x61c] sm:$0xf] }
 0x3c3   :  { %v10704_v45 = vadd.f32 %v4729_v62, %v4641_v54  ;;  %5047 = vmatmul.bf16.gmra.mxu0 %v6039_v27  ;;  %v6363_v11 = vor.u32 %v7755_v17, %v6360_v3 }
 0x3c4   :  { %4795 = vmatmul.bf16.gmra.mxu1 %v6279_v23  ;;  %4874 = vmatmul.bf16.gmra.mxu2 %v6115_v56 }
 0x3c5   :  { %4958 = vmatmul.bf16.gmra.mxu3 %v6035_v43  ;;  %v6444_v43 = vld [vmem:[%s11735_s1 + $0x714] sm:$0xf0] }
 0x3c7   :  { %v4559_v4 = vpop.f32.mrf.mxu2 }
 0x3c8   :  { %v4643_v6 = vpop.f32.mrf.mxu3  ;;  %v4560_v31 = vadd.f32 %v4559_v4, %v10630_v63  ;;  %v4734_v29 = vpop.f32.mrf.mxu0  ;;  %v6198_v63 = vld [vmem:[%s11735_s1 + $0x4d0] sm:$0xf]  ;;  %v6206_v4 = vld [vmem:[%s11735_s1 + $0x4d8] sm:$0xf] }
 0x3c9   :  { %v4644_v48 = vadd.f32 %v4643_v6, %v4555_v5  ;;  %v4758_v30 = vpop.f32.mrf.mxu1  ;;  %v7693_v5 = vld [vmem:[%s11735_s1 + $0x42c] sm:$0xf]  ;;  %v6199_v46 = vor.u32 %v7724_v59, %v6198_v63 }
 0x3ca   :  { %v10708_v38 = vadd.f32 %v4758_v30, %v10176_v9  ;;  %v7704_v9 = vld [vmem:[%s11735_s1 + $0x480] sm:$0xf0]  ;;  %v6119_v55 = vor.u32 %v7693_v5, %v6116_v53  ;;  %v7745_v6 = vld [vmem:[%s11735_s1 + $0x5c8] sm:$0xf0] }
 0x3cb   :  { %v10710_v33 = vadd.f32 %v4732_v1, %v4644_v48  ;;  %v6123_v40 = vor.u32 %v7704_v9, %v6122_v18  ;;  %v6200_v48 = vld [vmem:[%s11735_s1 + $0x524] sm:$0xf0] }
 0x3cf   :  { %v4561_v36 = vpop.f32.mrf.mxu2 }
 0x3d0   :  { %v4645_v62 = vpop.f32.mrf.mxu3  ;;  %v4562_v57 = vadd.f32 %v4561_v36, %v10636_v24  ;;  %v4737_v7 = vpop.f32.mrf.mxu0 }
 0x3d1   :  { %v4646_v15 = vadd.f32 %v4645_v62, %v4557_v26  ;;  %v4761_v13 = vpop.f32.mrf.mxu1 }
 0x3d2   :  { %v10738_v32 = vadd.f32 %v4761_v13, %v10191_v50  ;;  %v7776_v50 = vld [vmem:[%s11735_s1 + $0x6c4] sm:$0xf] }
 0x3d3   :  { %v10740_v44 = vadd.f32 %v4734_v29, %v4646_v15  ;;  %5052 = vmatmul.bf16.gmra.mxu0 %v6123_v40  ;;  %v6447_v17 = vor.u32 %v7776_v50, %v6444_v43 }
 0x3d4   :  { %4800 = vmatmul.bf16.gmra.mxu1 %v6363_v11  ;;  %4879 = vmatmul.bf16.gmra.mxu2 %v6199_v46 }
 0x3d5   :  { %4963 = vmatmul.bf16.gmra.mxu3 %v6119_v55  ;;  %v6528_v55 = vld [vmem:[%s11735_s1 + $0x7bc] sm:$0xf0] }
 0x3d7   :  { %v4564_v23 = vpop.f32.mrf.mxu2 }
 0x3d8   :  { %v4648_v27 = vpop.f32.mrf.mxu3  ;;  %v4565_v54 = vadd.f32 %v4564_v23, %v10666_v12  ;;  %v4739_v24 = vpop.f32.mrf.mxu0  ;;  %v6282_v12 = vld [vmem:[%s11735_s1 + $0x578] sm:$0xf]  ;;  %v6366_v23 = vld [vmem:[%s11735_s1 + $0x620] sm:$0xf] }
 0x3d9   :  { %v4649_v1 = vadd.f32 %v4648_v27, %v4560_v31  ;;  %v4763_v26 = vpop.f32.mrf.mxu1  ;;  %v7714_v31 = vld [vmem:[%s11735_s1 + $0x4d4] sm:$0xf]  ;;  %v6283_v5 = vor.u32 %v7745_v6, %v6282_v12 }
 0x3da   :  { %v10744_v25 = vadd.f32 %v4763_v26, %v10224_v51  ;;  %v7725_v51 = vld [vmem:[%s11735_s1 + $0x528] sm:$0xf0]  ;;  %v6203_v53 = vor.u32 %v7714_v31, %v6200_v48  ;;  %v7766_v27 = vld [vmem:[%s11735_s1 + $0x670] sm:$0xf0] }
 0x3db   :  { %v10746_v56 = vadd.f32 %v4737_v7, %v4649_v1  ;;  %v6207_v3 = vor.u32 %v7725_v51, %v6206_v4  ;;  %v6284_v1 = vld [vmem:[%s11735_s1 + $0x5cc] sm:$0xf0]  ;;  %v6367_v31 = vor.u32 %v7766_v27, %v6366_v23 }
 0x3df   :  { %v4566_v29 = vpop.f32.mrf.mxu2 }
 0x3e0   :  { %v4650_v30 = vpop.f32.mrf.mxu3  ;;  %v4567_v63 = vadd.f32 %v4566_v29, %v10672_v58  ;;  %v4742_v9 = vpop.f32.mrf.mxu0 }
 0x3e1   :  { %v4651_v18 = vadd.f32 %v4650_v30, %v4562_v57  ;;  %v4766_v59 = vpop.f32.mrf.mxu1 }
 0x3e2   :  { %v10774_v36 = vadd.f32 %v4766_v59, %v10239_v8  ;;  %v7797_v8 = vld [vmem:[%s11735_s1 + $0x76c] sm:$0xf] }
 0x3e3   :  { %v10776_v62 = vadd.f32 %v4739_v24, %v4651_v18  ;;  %5057 = vmatmul.bf16.gmra.mxu0 %v6207_v3  ;;  %v6531_v50 = vor.u32 %v7797_v8, %v6528_v55 }
 0x3e4   :  { %4805 = vmatmul.bf16.gmra.mxu1 %v6447_v17  ;;  %4884 = vmatmul.bf16.gmra.mxu2 %v6283_v5 }
 0x3e5   :  { %4968 = vmatmul.bf16.gmra.mxu3 %v6203_v53  ;;  %v6612_v53 = vld [vmem:[%s11735_s1 + $0x864] sm:$0xf0] }
 0x3e7   :  { %v4845_v40 = vpop.f32.mrf.mxu2 }
 0x3e8   :  { %v4653_v11 = vpop.f32.mrf.mxu3  ;;  %v4846_v7 = vadd.f32 %v4845_v40, %v10702_v39  ;;  %v4744_v58 = vpop.f32.mrf.mxu0  ;;  %v6290_v39 = vld [vmem:[%s11735_s1 + $0x580] sm:$0xf]  ;;  %v7787_v40 = vld [vmem:[%s11735_s1 + $0x718] sm:$0xf0] }
 0x3e9   :  { %v4654_v15 = vadd.f32 %v4653_v11, %v4565_v54  ;;  %v4768_v57 = vpop.f32.mrf.mxu1  ;;  %v7735_v54 = vld [vmem:[%s11735_s1 + $0x57c] sm:$0xf]  ;;  %v6374_v11 = vld [vmem:[%s11735_s1 + $0x628] sm:$0xf] }
 0x3ea   :  { %v10780_v13 = vadd.f32 %v4768_v57, %v10272_v21  ;;  %v7746_v21 = vld [vmem:[%s11735_s1 + $0x5d0] sm:$0xf0]  ;;  %v6287_v48 = vor.u32 %v7735_v54, %v6284_v1 }
 0x3eb   :  { %v10782_v46 = vadd.f32 %v4742_v9, %v4654_v15  ;;  %v6291_v43 = vor.u32 %v7746_v21, %v6290_v39  ;;  %v7756_v15 = vld [vmem:[%s11735_s1 + $0x624] sm:$0xf] }
 0x3ef   :  { %v4847_v26 = vpop.f32.mrf.mxu2 }
 0x3f0   :  { %v4655_v24 = vpop.f32.mrf.mxu3  ;;  %v4848_v4 = vadd.f32 %v4847_v26, %v10708_v38  ;;  %v5023_v6 = vpop.f32.mrf.mxu0 }
 0x3f1   :  { %v4656_v12 = vadd.f32 %v4655_v24, %v4567_v63  ;;  %v4771_v51 = vpop.f32.mrf.mxu1 }
 0x3f2   :  { %v10810_v29 = vadd.f32 %v4771_v51, %v10287_v20  ;;  %v7818_v20 = vld [vmem:[%s11735_s1 + $0x814] sm:$0xf] }
 0x3f3   :  { %v10812_v30 = vadd.f32 %v4744_v58, %v4656_v12  ;;  %5062 = vmatmul.bf16.gmra.mxu0 %v6291_v43  ;;  %v6615_v8 = vor.u32 %v7818_v20, %v6612_v53  ;;  %v8038_v12 = vld [vmem:[%s11734_s0 + $0x470] sm:$0xff]  ;;  %v6452_v20 = vld [vmem:[%s11735_s1 + $0x71c] sm:$0xf0] }
 0x3f4   :  { %4810 = vmatmul.bf16.gmra.mxu1 %v6531_v50  ;;  %4889 = vmatmul.bf16.gmra.mxu2 %v6367_v31  ;;  %v8039_v50 = vld [vmem:[%s11734_s0 + $0x478] sm:$0xff] }
 0x3f5   :  { %4973 = vmatmul.bf16.gmra.mxu3 %v6287_v48  ;;  %5103 = vmatpush.bf16.msrb.mxu1 %v8039_v50  ;;  %v8037_v48 = vld [vmem:[%s11734_s0 + $0x468] sm:$0xff] }
 0x3f7   :  { %v4850_v17 = vpop.f32.mrf.mxu2 }
 0x3f8   :  { %v4934_v3 = vpop.f32.mrf.mxu3  ;;  %v4851_v18 = vadd.f32 %v4850_v17, %v10738_v32  ;;  %v5025_v38 = vpop.f32.mrf.mxu0  ;;  %v6450_v32 = vld [vmem:[%s11735_s1 + $0x6c8] sm:$0xf] }
 0x3f9   :  { %v4935_v63 = vadd.f32 %v4934_v3, %v4846_v7  ;;  %v4773_v9 = vpop.f32.mrf.mxu1  ;;  %v6368_v7 = vld [vmem:[%s11735_s1 + $0x674] sm:$0xf0]  ;;  %v6451_v54 = vor.u32 %v7787_v40, %v6450_v32  ;;  %5104 = vmatpush.bf16.msrb.mxu1 %v8038_v12  ;;  %v7839_v3 = vld [vmem:[%s11735_s1 + $0x8bc] sm:$0xf]  ;;  %v8036_v40 = vld [vmem:[%s11734_s0 + $0x460] sm:$0xff] }
 0x3fa   :  { %v10816_v59 = vadd.f32 %v4773_v9, %v10320_v28  ;;  %v7767_v28 = vld [vmem:[%s11735_s1 + $0x678] sm:$0xf0]  ;;  %v6371_v1 = vor.u32 %v7756_v15, %v6368_v7  ;;  %v7808_v9 = vld [vmem:[%s11735_s1 + $0x7c0] sm:$0xf0]  ;;  %v8033_v12 = vld [vmem:[%s11734_s0 + $0x448] sm:$0xff] }
 0x3fb   :  { %v10818_v5 = vadd.f32 %v5023_v6, %v4935_v63  ;;  %v6375_v55 = vor.u32 %v7767_v28, %v6374_v11  ;;  %v7788_v63 = vld [vmem:[%s11735_s1 + $0x720] sm:$0xf0] }
 0x3fd   :  { %5105 = vmatpush.bf16.msrb.mxu1 %v8037_v48  ;;  %v7829_v48 = vld [vmem:[%s11735_s1 + $0x868] sm:$0xf0] }
 0x3ff   :  { %v4852_v58 = vpop.f32.mrf.mxu2 }
 0x400   :  { %v4936_v57 = vpop.f32.mrf.mxu3  ;;  %v4853_v23 = vadd.f32 %v4852_v58, %v10744_v25  ;;  %v5028_v27 = vpop.f32.mrf.mxu0 }
 0x401   :  { %v4937_v39 = vadd.f32 %v4936_v57, %v4848_v4  ;;  %v4776_v21 = vpop.f32.mrf.mxu1  ;;  %5106 = vmatpush.bf16.msrb.mxu1 %v8036_v40 }
 0x402   :  { %v10846_v24 = vadd.f32 %v4776_v21, %v10353_v60 }
 0x403   :  { %v10848_v26 = vadd.f32 %v5025_v38, %v4937_v39  ;;  %5067 = vmatmul.bf16.gmra.mxu0 %v6375_v55  ;;  %v7777_v38 = vld [vmem:[%s11735_s1 + $0x6cc] sm:$0xf] }
 0x404   :  { %4815 = vmatmul.bf16.gmra.mxu1 %v6615_v8  ;;  %4894 = vmatmul.bf16.gmra.mxu2 %v6451_v54  ;;  %v6455_v55 = vor.u32 %v7777_v38, %v6452_v20  ;;  %v8034_v54 = vld [vmem:[%s11734_s0 + $0x450] sm:$0xff]  ;;  %v8032_v38 = vld [vmem:[%s11734_s0 + $0x440] sm:$0xff] }
 0x405   :  { %4978 = vmatmul.bf16.gmra.mxu3 %v6371_v1 }
 0x407   :  { %v4855_v25 = vpop.f32.mrf.mxu2 }
 0x408   :  { %v4939_v43 = vpop.f32.mrf.mxu3  ;;  %v4856_v60 = vadd.f32 %v4855_v25, %v10774_v36  ;;  %v5030_v6 = vpop.f32.mrf.mxu0  ;;  %v6696_v36 = vld [vmem:[%s11735_s1 + $0x90c] sm:$0xf0] }
 0x409   :  { %v4940_v4 = vadd.f32 %v4939_v43, %v4851_v18  ;;  %v4778_v51 = vpop.f32.mrf.mxu1  ;;  %v6458_v18 = vld [vmem:[%s11735_s1 + $0x6d0] sm:$0xf]  ;;  %v6699_v11 = vor.u32 %v7839_v3, %v6696_v36  ;;  %v7798_v3 = vld [vmem:[%s11735_s1 + $0x774] sm:$0xf]  ;;  %v6536_v36 = vld [vmem:[%s11735_s1 + $0x7c4] sm:$0xf0] }
 0x40a   :  { %v10858_v31 = vadd.f32 %v4778_v51, %v10392_v14  ;;  %v6534_v14 = vld [vmem:[%s11735_s1 + $0x770] sm:$0xf]  ;;  %v6459_v28 = vor.u32 %v7788_v63, %v6458_v18  ;;  %v7860_v51 = vld [vmem:[%s11735_s1 + $0x964] sm:$0xf]  ;;  %v6539_v40 = vor.u32 %v7798_v3, %v6536_v36 }
 0x40b   :  { %v10863_v17 = vadd.f32 %v5028_v27, %v4940_v4  ;;  %v6535_v8 = vor.u32 %v7808_v9, %v6534_v14  ;;  %v8035_v27 = vld [vmem:[%s11734_s0 + $0x458] sm:$0xff]  ;;  %v8044_v3 = vld [vmem:[%s11734_s0 + $0x4a0] sm:$0xff] }
 0x40c   :  { %5107 = vmatpush.bf16.msrb.mxu1 %v8035_v27 }
 0x40f   :  { %v4857_v53 = vpop.f32.mrf.mxu2 }
 0x410   :  { %v4941_v32 = vpop.f32.mrf.mxu3  ;;  %v4858_v15 = vadd.f32 %v4857_v53, %v10780_v13  ;;  %v5033_v57 = vpop.f32.mrf.mxu0  ;;  %5108 = vmatpush.bf16.msrb.mxu1 %v8034_v54  ;;  %v8045_v54 = vld [vmem:[%s11734_s0 + $0x4a8] sm:$0xff] }
 0x411   :  { %v4942_v7 = vadd.f32 %v4941_v32, %v4853_v23  ;;  %v4781_v58 = vpop.f32.mrf.mxu1 }
 0x412   :  { %v10894_v39 = vadd.f32 %v4781_v58, %v10416_v10 }
 0x413   :  { %v10896_v21 = vadd.f32 %v5030_v6, %v4942_v7  ;;  %5072 = vmatmul.bf16.gmra.mxu0 %v6459_v28  ;;  %v7809_v6 = vld [vmem:[%s11735_s1 + $0x7c8] sm:$0xf0] }
 0x414   :  { %4820 = vmatmul.bf16.gmra.mxu1 %v6699_v11  ;;  %4899 = vmatmul.bf16.gmra.mxu2 %v6535_v8  ;;  %v8046_v8 = vld [vmem:[%s11734_s0 + $0x4b0] sm:$0xff] }
 0x415   :  { %4983 = vmatmul.bf16.gmra.mxu3 %v6455_v55  ;;  %5109 = vmatpush.bf16.msrb.mxu1 %v8033_v12  ;;  %v7850_v12 = vld [vmem:[%s11735_s1 + $0x910] sm:$0xf0] }
 0x417   :  { %v4860_v13 = vpop.f32.mrf.mxu2 }
 0x418   :  { %v4944_v23 = vpop.f32.mrf.mxu3  ;;  %v4861_v10 = vadd.f32 %v4860_v13, %v10810_v29  ;;  %v5035_v25 = vpop.f32.mrf.mxu0  ;;  %v6780_v29 = vld [vmem:[%s11735_s1 + $0x9b4] sm:$0xf0] }
 0x419   :  { %v4945_v1 = vadd.f32 %v4944_v23, %v4856_v60  ;;  %v4783_v50 = vpop.f32.mrf.mxu1  ;;  %v6542_v60 = vld [vmem:[%s11735_s1 + $0x778] sm:$0xf]  ;;  %v6783_v63 = vor.u32 %v7860_v51, %v6780_v29  ;;  %5110 = vmatpush.bf16.msrb.mxu1 %v8032_v38  ;;  %v7819_v51 = vld [vmem:[%s11735_s1 + $0x81c] sm:$0xf]  ;;  %v6620_v29 = vld [vmem:[%s11735_s1 + $0x86c] sm:$0xf0] }
 0x41a   :  { %v10906_v43 = vadd.f32 %v4783_v50, %v10452_v49  ;;  %v6618_v49 = vld [vmem:[%s11735_s1 + $0x818] sm:$0xf]  ;;  %v6543_v9 = vor.u32 %v7809_v6, %v6542_v60  ;;  %v7881_v50 = vld [vmem:[%s11735_s1 + $0xa0c] sm:$0xf]  ;;  %v6623_v38 = vor.u32 %v7819_v51, %v6620_v29 }
 0x41b   :  { %v10911_v4 = vadd.f32 %v5033_v57, %v4945_v1  ;;  %v6619_v28 = vor.u32 %v7829_v48, %v6618_v49  ;;  %v8047_v57 = vld [vmem:[%s11734_s0 + $0x4b8] sm:$0xff] }
 0x41c   :  { %5192 = vmatpush.bf16.msrb.mxu2 %v8047_v57 }
 0x41f   :  { %v4862_v14 = vpop.f32.mrf.mxu2 }
 0x420   :  { %v4946_v18 = vpop.f32.mrf.mxu3  ;;  %v4863_v20 = vadd.f32 %v4862_v14, %v10816_v59  ;;  %v5038_v11 = vpop.f32.mrf.mxu0  ;;  %5193 = vmatpush.bf16.msrb.mxu2 %v8046_v8 }
 0x421   :  { %v4947_v53 = vadd.f32 %v4946_v18, %v4858_v15  ;;  %v4786_v32 = vpop.f32.mrf.mxu1 }
 0x422   :  { %v10942_v7 = vadd.f32 %v4786_v32, %v10458_v0 }
 0x423   :  { %v10944_v58 = vadd.f32 %v5035_v25, %v4947_v53  ;;  %5077 = vmatmul.bf16.gmra.mxu0 %v6543_v9  ;;  %v7830_v25 = vld [vmem:[%s11735_s1 + $0x870] sm:$0xf0] }
 0x424   :  { %4825 = vmatmul.bf16.gmra.mxu1 %v6783_v63  ;;  %4904 = vmatmul.bf16.gmra.mxu2 %v6619_v28  ;;  %v8042_v28 = vld [vmem:[%s11734_s0 + $0x490] sm:$0xff] }
 0x425   :  { %4988 = vmatmul.bf16.gmra.mxu3 %v6539_v40  ;;  %5194 = vmatpush.bf16.msrb.mxu2 %v8045_v54  ;;  %v8054_v40 = vld [vmem:[%s11734_s0 + $0x4f0] sm:$0xff]  ;;  %v6710_v54 = vld [vmem:[%s11735_s1 + $0x8c8] sm:$0xf] }
 0x427   :  { %v4865_v59 = vpop.f32.mrf.mxu2 }
 0x428   :  { %v4949_v15 = vpop.f32.mrf.mxu3  ;;  %v4866_v0 = vadd.f32 %v4865_v59, %v10846_v24  ;;  %v5040_v13 = vpop.f32.mrf.mxu0  ;;  %v6864_v24 = vld [vmem:[%s11735_s1 + $0xa5c] sm:$0xf0] }
 0x429   :  { %v4950_v55 = vadd.f32 %v4949_v15, %v4861_v10  ;;  %v4788_v27 = vpop.f32.mrf.mxu1  ;;  %v6626_v10 = vld [vmem:[%s11735_s1 + $0x820] sm:$0xf]  ;;  %v6867_v6 = vor.u32 %v7881_v50, %v6864_v24  ;;  %5195 = vmatpush.bf16.msrb.mxu2 %v8044_v3  ;;  %v7851_v50 = vld [vmem:[%s11735_s1 + $0x918] sm:$0xf0]  ;;  %v7568_v24 = vld [vmem:[%s11735_s1 + $0x44] sm:$0xf] }
 0x42a   :  { %v10954_v23 = vadd.f32 %v4788_v27, %v10488_v34  ;;  %v6702_v34 = vld [vmem:[%s11735_s1 + $0x8c0] sm:$0xf]  ;;  %v6627_v48 = vor.u32 %v7830_v25, %v6626_v10  ;;  %v8041_v27 = vld [vmem:[%s11734_s0 + $0x488] sm:$0xff]  ;;  %v7871_v10 = vld [vmem:[%s11735_s1 + $0x9b8] sm:$0xf0] }
 0x42b   :  { %v10959_v1 = vadd.f32 %v5038_v11, %v4950_v55  ;;  %v6703_v9 = vor.u32 %v7850_v12, %v6702_v34  ;;  %v8043_v11 = vld [vmem:[%s11734_s0 + $0x498] sm:$0xff]  ;;  %v7840_v25 = vld [vmem:[%s11735_s1 + $0x8c4] sm:$0xf] }
 0x42c   :  { %v5620_v34 = vld [vmem:[%s11735_s1 + $0x94] sm:$0xf0] }
 0x42d   :  { %5196 = vmatpush.bf16.msrb.mxu2 %v8043_v11  ;;  %v6704_v12 = vld [vmem:[%s11735_s1 + $0x914] sm:$0xf0] }
 0x42f   :  { %v4867_v49 = vpop.f32.mrf.mxu2 }
 0x430   :  { %v4951_v60 = vpop.f32.mrf.mxu3  ;;  %v4868_v36 = vadd.f32 %v4867_v49, %v10858_v31  ;;  %v5043_v63 = vpop.f32.mrf.mxu0  ;;  %v8055_v31 = vld [vmem:[%s11734_s0 + $0x4f8] sm:$0xff]  ;;  %v6711_v49 = vor.u32 %v7851_v50, %v6710_v54  ;;  %v7861_v54 = vld [vmem:[%s11735_s1 + $0x96c] sm:$0xf]  ;;  %v6788_v50 = vld [vmem:[%s11735_s1 + $0x9bc] sm:$0xf0] }
 0x431   :  { %v4952_v14 = vadd.f32 %v4951_v60, %v4863_v20  ;;  %v4791_v18 = vpop.f32.mrf.mxu1  ;;  %5281 = vmatpush.bf16.msrb.mxu3 %v8055_v31  ;;  %5197 = vmatpush.bf16.msrb.mxu2 %v8042_v28  ;;  %v5623_v60 = vor.u32 %v7568_v24, %v5620_v34 }
 0x432   :  { %v10990_v53 = vadd.f32 %v4791_v18, %v10494_v35 }
 0x433   :  { %v10992_v32 = vadd.f32 %v5040_v13, %v4952_v14  ;;  %5082 = vmatmul.bf16.gmra.mxu0 %v6627_v48  ;;  %v8057_v13 = vld [vmem:[%s11734_s0 + $0x508] sm:$0xff]  ;;  %v8052_v48 = vld [vmem:[%s11734_s0 + $0x4e0] sm:$0xff] }
 0x434   :  { %4830 = vmatmul.bf16.gmra.mxu1 %v6867_v6  ;;  %4909 = vmatmul.bf16.gmra.mxu2 %v6703_v9  ;;  %v8040_v6 = vld [vmem:[%s11734_s0 + $0x480] sm:$0xff] }
 0x435   :  { %4993 = vmatmul.bf16.gmra.mxu3 %v6623_v38  ;;  %5376 = vmatpush.bf16.msrb.mxu0 %v8057_v13  ;;  %v6707_v38 = vor.u32 %v7840_v25, %v6704_v12  ;;  %v6870_v13 = vld [vmem:[%s11735_s1 + $0xa10] sm:$0xf]  ;;  %v8048_v12 = vld [vmem:[%s11734_s0 + $0x4c0] sm:$0xff] }
 0x436   :  { %5282 = vmatpush.bf16.msrb.mxu3 %v8054_v40  ;;  %5198 = vmatpush.bf16.msrb.mxu2 %v8041_v27 }
 0x437   :  { %v4870_v20 = vpop.f32.mrf.mxu2 }
 0x438   :  { %v4954_v35 = vpop.f32.mrf.mxu3  ;;  %v4871_v57 = vadd.f32 %v4870_v20, %v10894_v39  ;;  %v5045_v8 = vpop.f32.mrf.mxu0  ;;  %v8053_v39 = vld [vmem:[%s11734_s0 + $0x4e8] sm:$0xff]  ;;  %v8051_v20 = vld [vmem:[%s11734_s0 + $0x4d8] sm:$0xff] }
 0x439   :  { %v4955_v59 = vadd.f32 %v4954_v35, %v4866_v0  ;;  %v4793_v15 = vpop.f32.mrf.mxu1 }
 0x43a   :  { %v11008_v55 = vadd.f32 %v4793_v15, %v10524_v52  ;;  %v6786_v52 = vld [vmem:[%s11735_s1 + $0x968] sm:$0xf]  ;;  %5283 = vmatpush.bf16.msrb.mxu3 %v8053_v39  ;;  %5199 = vmatpush.bf16.msrb.mxu2 %v8040_v6  ;;  %v5704_v39 = vld [vmem:[%s11735_s1 + $0x13c] sm:$0xf0] }
 0x43b   :  { %v11019_v0 = vadd.f32 %v5043_v63, %v4955_v59  ;;  %v6787_v9 = vor.u32 %v7871_v10, %v6786_v52  ;;  %v7892_v52 = vld [vmem:[%s11735_s1 + $0xa60] sm:$0xf0] }
 0x43e   :  { %5284 = vmatpush.bf16.msrb.mxu3 %v8052_v48  ;;  %v6871_v48 = vor.u32 %v7892_v52, %v6870_v13 }
 0x43f   :  { %v4872_v51 = vpop.f32.mrf.mxu2 }
 0x440   :  { %v4956_v29 = vpop.f32.mrf.mxu3  ;;  %v4873_v3 = vadd.f32 %v4872_v51, %v10906_v43  ;;  %v5048_v63 = vpop.f32.mrf.mxu0  ;;  %v8056_v51 = vld [vmem:[%s11734_s0 + $0x500] sm:$0xff] }
 0x441   :  { %v4957_v14 = vadd.f32 %v4956_v29, %v4868_v36  ;;  %v4796_v18 = vpop.f32.mrf.mxu1  ;;  %5377 = vmatpush.bf16.msrb.mxu0 %v8056_v51 }
 0x442   :  { %v11053_v11 = vadd.f32 %v4796_v18, %v10530_v22  ;;  %5285 = vmatpush.bf16.msrb.mxu3 %v8051_v20  ;;  %v8050_v22 = vld [vmem:[%s11734_s0 + $0x4d0] sm:$0xff] }
 0x443   :  { %v11055_v31 = vadd.f32 %v5045_v8, %v4957_v14  ;;  %5087 = vmatmul.bf16.gmra.mxu0 %v6711_v49  ;;  %v8049_v8 = vld [vmem:[%s11734_s0 + $0x4c8] sm:$0xff]  ;;  %v6791_v14 = vor.u32 %v7861_v54, %v6788_v50 }
 0x444   :  { %5111 = vmatmul.bf16.vlgmr.msrb.gmra.mxu1 %v5623_v60  ;;  %4914 = vmatmul.bf16.gmra.mxu2 %v6787_v9 }
 0x445   :  { %4998 = vmatmul.bf16.gmra.mxu3 %v6707_v38 }
 0x446   :  { %5286 = vmatpush.bf16.msrb.mxu3 %v8050_v22  ;;  %v7882_v22 = vld [vmem:[%s11735_s1 + $0xa14] sm:$0xf] }
 0x447   :  { %v4875_v43 = vpop.f32.mrf.mxu2 }
 0x448   :  { %v4959_v36 = vpop.f32.mrf.mxu3  ;;  %v4876_v35 = vadd.f32 %v4875_v43, %v10942_v7  ;;  %v5050_v59 = vpop.f32.mrf.mxu0  ;;  %v6794_v7 = vld [vmem:[%s11735_s1 + $0x970] sm:$0xf] }
 0x449   :  { %v4960_v28 = vadd.f32 %v4959_v36, %v4871_v57  ;;  %v4798_v40 = vpop.f32.mrf.mxu1  ;;  %v7589_v57 = vld [vmem:[%s11735_s1 + $0xec] sm:$0xf] }
 0x44a   :  { %v11065_v15 = vadd.f32 %v4798_v40, %v10560_v61  ;;  %v7872_v61 = vld [vmem:[%s11735_s1 + $0x9c0] sm:$0xf0]  ;;  %5287 = vmatpush.bf16.msrb.mxu3 %v8049_v8  ;;  %v5707_v25 = vor.u32 %v7589_v57, %v5704_v39  ;;  %v6872_v40 = vld [vmem:[%s11735_s1 + $0xa64] sm:$0xf0]  ;;  %v7579_v8 = vld [vmem:[%s11735_s1 + $0x98] sm:$0xf0] }
 0x44b   :  { %v11070_v27 = vadd.f32 %v5048_v63, %v4960_v28  ;;  %v6795_v10 = vor.u32 %v7872_v61, %v6794_v7  ;;  %v6878_v28 = vld [vmem:[%s11735_s1 + $0xa18] sm:$0xf] }
 0x44e   :  { %5288 = vmatpush.bf16.msrb.mxu3 %v8048_v12 }
 0x44f   :  { %v4877_v24 = vpop.f32.mrf.mxu2 }
 0x450   :  { %v4961_v34 = vpop.f32.mrf.mxu3  ;;  %v4878_v29 = vadd.f32 %v4877_v24, %v10954_v23  ;;  %v5053_v6 = vpop.f32.mrf.mxu0  ;;  %v6875_v24 = vor.u32 %v7882_v22, %v6872_v40 }
 0x451   :  { %v4962_v49 = vadd.f32 %v4961_v34, %v4873_v3  ;;  %v4801_v60 = vpop.f32.mrf.mxu1 }
 0x452   :  { %v11104_v18 = vadd.f32 %v4801_v60, %v10566_v19 }
 0x453   :  { %v11106_v63 = vadd.f32 %v5050_v59, %v4962_v49  ;;  %5092 = vmatmul.bf16.gmra.mxu0 %v6795_v10  ;;  %v5626_v59 = vld [vmem:[%s11735_s1 + $0x48] sm:$0xf] }
 0x454   :  { %5116 = vmatmul.bf16.gmra.mxu1 %v5707_v25  ;;  %4919 = vmatmul.bf16.gmra.mxu2 %v6871_v48  ;;  %v5627_v34 = vor.u32 %v7579_v8, %v5626_v59 }
 0x455   :  { %5003 = vmatmul.bf16.gmra.mxu3 %v6791_v14  ;;  %v5872_v14 = vld [vmem:[%s11735_s1 + $0x28c] sm:$0xf0] }
 0x457   :  { %v4880_v9 = vpop.f32.mrf.mxu2 }
 0x458   :  { %v4964_v38 = vpop.f32.mrf.mxu3  ;;  %v4881_v23 = vadd.f32 %v4880_v9, %v10990_v53  ;;  %v5055_v43 = vpop.f32.mrf.mxu0  ;;  %v7893_v53 = vld [vmem:[%s11735_s1 + $0xa68] sm:$0xf0]  ;;  %v7600_v9 = vld [vmem:[%s11735_s1 + $0x140] sm:$0xf0] }
 0x459   :  { %v4965_v3 = vadd.f32 %v4964_v38, %v4876_v35  ;;  %v4803_v20 = vpop.f32.mrf.mxu1  ;;  %v7610_v35 = vld [vmem:[%s11735_s1 + $0x194] sm:$0xf]  ;;  %v6879_v61 = vor.u32 %v7893_v53, %v6878_v28  ;;  %v7580_v38 = vld [vmem:[%s11735_s1 + $0xa0] sm:$0xf0] }
 0x45a   :  { %v11110_v36 = vadd.f32 %v4803_v20, %v10596_v2  ;;  %v5788_v2 = vld [vmem:[%s11735_s1 + $0x1e4] sm:$0xf0] }
 0x45b   :  { %v11112_v19 = vadd.f32 %v5053_v6, %v4965_v3  ;;  %v5791_v57 = vor.u32 %v7610_v35, %v5788_v2  ;;  %v5628_v3 = vld [vmem:[%s11735_s1 + $0x9c] sm:$0xf0] }
 0x45f   :  { %v4882_v13 = vpop.f32.mrf.mxu2 }
 0x460   :  { %v4966_v7 = vpop.f32.mrf.mxu3  ;;  %v4883_v39 = vadd.f32 %v4882_v13, %v11008_v55  ;;  %v5058_v50 = vpop.f32.mrf.mxu0 }
 0x461   :  { %v4967_v52 = vadd.f32 %v4966_v7, %v4878_v29  ;;  %v4806_v54 = vpop.f32.mrf.mxu1 }
 0x462   :  { %v11140_v10 = vadd.f32 %v4806_v54, %v10602_v37  ;;  %v7631_v37 = vld [vmem:[%s11735_s1 + $0x23c] sm:$0xf] }
 0x463   :  { %v11142_v25 = vadd.f32 %v5055_v43, %v4967_v52  ;;  %5097 = vmatmul.bf16.gmra.mxu0 %v6879_v61  ;;  %v5875_v22 = vor.u32 %v7631_v37, %v5872_v14 }
 0x464   :  { %5121 = vmatmul.bf16.gmra.mxu1 %v5791_v57  ;;  %5200 = vmatmul.bf16.vlgmr.msrb.gmra.mxu2 %v5627_v34  ;;  %v5956_v34 = vld [vmem:[%s11735_s1 + $0x334] sm:$0xf0] }
 0x465   :  { %5008 = vmatmul.bf16.gmra.mxu3 %v6875_v24 }
 0x467   :  { %v4885_v12 = vpop.f32.mrf.mxu2 }
 0x468   :  { %v4969_v51 = vpop.f32.mrf.mxu3  ;;  %v4886_v49 = vadd.f32 %v4885_v12, %v11053_v11  ;;  %v5060_v29 = vpop.f32.mrf.mxu0  ;;  %v5710_v11 = vld [vmem:[%s11735_s1 + $0xf0] sm:$0xf]  ;;  %v5718_v12 = vld [vmem:[%s11735_s1 + $0xf8] sm:$0xf] }
 0x469   :  { %v4970_v60 = vadd.f32 %v4969_v51, %v4881_v23  ;;  %v4808_v55 = vpop.f32.mrf.mxu1  ;;  %v7569_v23 = vld [vmem:[%s11735_s1 + $0x4c] sm:$0xf]  ;;  %v5711_v28 = vor.u32 %v7600_v9, %v5710_v11 }
 0x46a   :  { %v11146_v6 = vadd.f32 %v4808_v55, %v10632_v42  ;;  %v5634_v42 = vld [vmem:[%s11735_s1 + $0x50] sm:$0xf]  ;;  %v5631_v8 = vor.u32 %v7569_v23, %v5628_v3  ;;  %v7621_v51 = vld [vmem:[%s11735_s1 + $0x1e8] sm:$0xf0] }
 0x46b   :  { %v11148_v48 = vadd.f32 %v5058_v50, %v4970_v60  ;;  %v5635_v53 = vor.u32 %v7580_v38, %v5634_v42  ;;  %v5712_v60 = vld [vmem:[%s11735_s1 + $0x144] sm:$0xf0] }
 0x46f   :  { %v4887_v20 = vpop.f32.mrf.mxu2 }
 0x470   :  { %v4971_v43 = vpop.f32.mrf.mxu3  ;;  %v4888_v35 = vadd.f32 %v4887_v20, %v11065_v15  ;;  %v5063_v59 = vpop.f32.mrf.mxu0 }
 0x471   :  { %v4972_v2 = vadd.f32 %v4971_v43, %v4883_v39  ;;  %v4811_v40 = vpop.f32.mrf.mxu1 }
 0x472   :  { %v11176_v13 = vadd.f32 %v4811_v40, %v10638_v16  ;;  %v7652_v16 = vld [vmem:[%s11735_s1 + $0x2e4] sm:$0xf] }
 0x473   :  { %v11178_v7 = vadd.f32 %v5060_v29, %v4972_v2  ;;  %7544 = vmatmul.msk.bf16.vlgmr.msrb.gmra.mxu0 %vm3541_vm0, %v5635_v53  ;;  %v5959_v37 = vor.u32 %v7652_v16, %v5956_v34 }
 0x474   :  { %5126 = vmatmul.bf16.gmra.mxu1 %v5875_v22  ;;  %5205 = vmatmul.bf16.gmra.mxu2 %v5711_v28 }
 0x475   :  { %5289 = vmatmul.bf16.vlgmr.msrb.gmra.mxu3 %v5631_v8  ;;  %v6040_v8 = vld [vmem:[%s11735_s1 + $0x3dc] sm:$0xf0] }
 0x477   :  { %v4890_v61 = vpop.f32.mrf.mxu2 }
 0x478   :  { %v4974_v57 = vpop.f32.mrf.mxu3  ;;  %v4891_v52 = vadd.f32 %v4890_v61, %v11104_v18  ;;  %v5065_v54 = vpop.f32.mrf.mxu0  ;;  %v5794_v18 = vld [vmem:[%s11735_s1 + $0x198] sm:$0xf]  ;;  %v5802_v61 = vld [vmem:[%s11735_s1 + $0x1a0] sm:$0xf] }
 0x479   :  { %v4975_v15 = vadd.f32 %v4974_v57, %v4886_v49  ;;  %v4813_v39 = vpop.f32.mrf.mxu1  ;;  %v7590_v49 = vld [vmem:[%s11735_s1 + $0xf4] sm:$0xf]  ;;  %v5795_v23 = vor.u32 %v7621_v51, %v5794_v18 }
 0x47a   :  { %v11183_v50 = vadd.f32 %v4813_v39, %v10668_v47  ;;  %v7601_v47 = vld [vmem:[%s11735_s1 + $0x148] sm:$0xf0]  ;;  %v5715_v3 = vor.u32 %v7590_v49, %v5712_v60  ;;  %v7642_v57 = vld [vmem:[%s11735_s1 + $0x290] sm:$0xf0] }
 0x47b   :  { %v11185_v24 = vadd.f32 %v5063_v59, %v4975_v15  ;;  %v5719_v14 = vor.u32 %v7601_v47, %v5718_v12  ;;  %v5796_v15 = vld [vmem:[%s11735_s1 + $0x1ec] sm:$0xf0] }
 0x47f   :  { %v4892_v55 = vpop.f32.mrf.mxu2 }
 0x480   :  { %v4976_v29 = vpop.f32.mrf.mxu3  ;;  %v4893_v11 = vadd.f32 %v4892_v55, %v11110_v36  ;;  %v5068_v38 = vpop.f32.mrf.mxu0 }
 0x481   :  { %v4977_v9 = vadd.f32 %v4976_v29, %v4888_v35  ;;  %v4816_v42 = vpop.f32.mrf.mxu1 }
 0x482   :  { %v11213_v20 = vadd.f32 %v4816_v42, %v10674_v41  ;;  %v7673_v41 = vld [vmem:[%s11735_s1 + $0x38c] sm:$0xf] }
 0x483   :  { %v11215_v43 = vadd.f32 %v5065_v54, %v4977_v9  ;;  %7545 = vmatmul.msk.bf16.gmra.mxu0 %vm3541_vm0, %v5719_v14  ;;  %v6043_v16 = vor.u32 %v7673_v41, %v6040_v8 }
 0x484   :  { %5131 = vmatmul.bf16.gmra.mxu1 %v5959_v37  ;;  %5210 = vmatmul.bf16.gmra.mxu2 %v5795_v23 }
 0x485   :  { %5294 = vmatmul.bf16.gmra.mxu3 %v5715_v3  ;;  %v6124_v3 = vld [vmem:[%s11735_s1 + $0x484] sm:$0xf0] }
 0x487   :  { %v4895_v22 = vpop.f32.mrf.mxu2 }
 0x488   :  { %v4979_v28 = vpop.f32.mrf.mxu3  ;;  %v4896_v53 = vadd.f32 %v4895_v22, %v11140_v10  ;;  %v5070_v2 = vpop.f32.mrf.mxu0  ;;  %v5878_v10 = vld [vmem:[%s11735_s1 + $0x240] sm:$0xf]  ;;  %v5886_v22 = vld [vmem:[%s11735_s1 + $0x248] sm:$0xf] }
 0x489   :  { %v4980_v36 = vadd.f32 %v4979_v28, %v4891_v52  ;;  %v4818_v35 = vpop.f32.mrf.mxu1  ;;  %v7611_v52 = vld [vmem:[%s11735_s1 + $0x19c] sm:$0xf]  ;;  %v5879_v49 = vor.u32 %v7642_v57, %v5878_v10 }
 0x48a   :  { %v11220_v40 = vadd.f32 %v4818_v35, %v10704_v45  ;;  %v7622_v45 = vld [vmem:[%s11735_s1 + $0x1f0] sm:$0xf0]  ;;  %v5799_v60 = vor.u32 %v7611_v52, %v5796_v15  ;;  %v7663_v28 = vld [vmem:[%s11735_s1 + $0x338] sm:$0xf0] }
 0x48b   :  { %v11222_v59 = vadd.f32 %v5068_v38, %v4980_v36  ;;  %v5803_v34 = vor.u32 %v7622_v45, %v5802_v61  ;;  %v5880_v36 = vld [vmem:[%s11735_s1 + $0x294] sm:$0xf0] }
 0x48f   :  { %v4897_v39 = vpop.f32.mrf.mxu2 }
 0x490   :  { %v4981_v54 = vpop.f32.mrf.mxu3  ;;  %v4898_v18 = vadd.f32 %v4897_v39, %v11146_v6  ;;  %v5073_v51 = vpop.f32.mrf.mxu0 }
 0x491   :  { %v4982_v12 = vadd.f32 %v4981_v54, %v4893_v11  ;;  %v4821_v47 = vpop.f32.mrf.mxu1 }
 0x492   :  { %v11250_v55 = vadd.f32 %v4821_v47, %v10710_v33  ;;  %v7694_v33 = vld [vmem:[%s11735_s1 + $0x434] sm:$0xf] }
 0x493   :  { %v11252_v29 = vadd.f32 %v5070_v2, %v4982_v12  ;;  %7546 = vmatmul.msk.bf16.gmra.mxu0 %vm3541_vm0, %v5803_v34  ;;  %v6127_v41 = vor.u32 %v7694_v33, %v6124_v3 }
 0x494   :  { %5136 = vmatmul.bf16.gmra.mxu1 %v6043_v16  ;;  %5215 = vmatmul.bf16.gmra.mxu2 %v5879_v49 }
 0x495   :  { %5299 = vmatmul.bf16.gmra.mxu3 %v5799_v60  ;;  %v6208_v60 = vld [vmem:[%s11735_s1 + $0x52c] sm:$0xf0] }
 0x497   :  { %v4900_v37 = vpop.f32.mrf.mxu2 }
 0x498   :  { %v4984_v14 = vpop.f32.mrf.mxu3  ;;  %v4901_v9 = vadd.f32 %v4900_v37, %v11176_v13  ;;  %v5075_v42 = vpop.f32.mrf.mxu0  ;;  %v5962_v13 = vld [vmem:[%s11735_s1 + $0x2e8] sm:$0xf]  ;;  %v5970_v37 = vld [vmem:[%s11735_s1 + $0x2f0] sm:$0xf] }
 0x499   :  { %v4985_v6 = vadd.f32 %v4984_v14, %v4896_v53  ;;  %v4823_v11 = vpop.f32.mrf.mxu1  ;;  %v7632_v53 = vld [vmem:[%s11735_s1 + $0x244] sm:$0xf]  ;;  %v5963_v52 = vor.u32 %v7663_v28, %v5962_v13 }
 0x49a   :  { %v11257_v38 = vadd.f32 %v4823_v11, %v10740_v44  ;;  %v7643_v44 = vld [vmem:[%s11735_s1 + $0x298] sm:$0xf0]  ;;  %v5883_v15 = vor.u32 %v7632_v53, %v5880_v36  ;;  %v7684_v14 = vld [vmem:[%s11735_s1 + $0x3e0] sm:$0xf0] }
 0x49b   :  { %v11259_v23 = vadd.f32 %v5073_v51, %v4985_v6  ;;  %v5887_v8 = vor.u32 %v7643_v44, %v5886_v22  ;;  %v5964_v6 = vld [vmem:[%s11735_s1 + $0x33c] sm:$0xf0] }
 0x49f   :  { %v4902_v35 = vpop.f32.mrf.mxu2 }
 0x4a0   :  { %v4986_v2 = vpop.f32.mrf.mxu3  ;;  %v4903_v10 = vadd.f32 %v4902_v35, %v11183_v50  ;;  %v5078_v57 = vpop.f32.mrf.mxu0 }
 0x4a1   :  { %v4987_v61 = vadd.f32 %v4986_v2, %v4898_v18  ;;  %v4826_v45 = vpop.f32.mrf.mxu1 }
 0x4a2   :  { %v11287_v39 = vadd.f32 %v4826_v45, %v10746_v56  ;;  %v7715_v56 = vld [vmem:[%s11735_s1 + $0x4dc] sm:$0xf] }
 0x4a3   :  { %v11289_v54 = vadd.f32 %v5075_v42, %v4987_v61  ;;  %7547 = vmatmul.msk.bf16.gmra.mxu0 %vm3541_vm0, %v5887_v8  ;;  %v6211_v33 = vor.u32 %v7715_v56, %v6208_v60 }
 0x4a4   :  { %5141 = vmatmul.bf16.gmra.mxu1 %v6127_v41  ;;  %5220 = vmatmul.bf16.gmra.mxu2 %v5963_v52 }
 0x4a5   :  { %5304 = vmatmul.bf16.gmra.mxu3 %v5883_v15  ;;  %v6292_v15 = vld [vmem:[%s11735_s1 + $0x5d4] sm:$0xf0] }
 0x4a7   :  { %v4905_v16 = vpop.f32.mrf.mxu2 }
 0x4a8   :  { %v4989_v34 = vpop.f32.mrf.mxu3  ;;  %v4906_v12 = vadd.f32 %v4905_v16, %v11213_v20  ;;  %v5080_v47 = vpop.f32.mrf.mxu0  ;;  %v6046_v20 = vld [vmem:[%s11735_s1 + $0x390] sm:$0xf]  ;;  %v6054_v16 = vld [vmem:[%s11735_s1 + $0x398] sm:$0xf] }
 0x4a9   :  { %v4990_v50 = vadd.f32 %v4989_v34, %v4901_v9  ;;  %v4828_v18 = vpop.f32.mrf.mxu1  ;;  %v7653_v9 = vld [vmem:[%s11735_s1 + $0x2ec] sm:$0xf]  ;;  %v6047_v53 = vor.u32 %v7684_v14, %v6046_v20 }
 0x4aa   :  { %v11294_v51 = vadd.f32 %v4828_v18, %v10776_v62  ;;  %v7664_v62 = vld [vmem:[%s11735_s1 + $0x340] sm:$0xf0]  ;;  %v5967_v36 = vor.u32 %v7653_v9, %v5964_v6  ;;  %v7705_v34 = vld [vmem:[%s11735_s1 + $0x488] sm:$0xf0] }
 0x4ab   :  { %v11296_v49 = vadd.f32 %v5078_v57, %v4990_v50  ;;  %v5971_v3 = vor.u32 %v7664_v62, %v5970_v37  ;;  %v6048_v50 = vld [vmem:[%s11735_s1 + $0x3e4] sm:$0xf0] }
 0x4af   :  { %v4907_v11 = vpop.f32.mrf.mxu2 }
 0x4b0   :  { %v4991_v42 = vpop.f32.mrf.mxu3  ;;  %v4908_v13 = vadd.f32 %v4907_v11, %v11220_v40  ;;  %v5083_v28 = vpop.f32.mrf.mxu0 }
 0x4b1   :  { %v4992_v22 = vadd.f32 %v4991_v42, %v4903_v10  ;;  %v4831_v44 = vpop.f32.mrf.mxu1 }
 0x4b2   :  { %v11324_v35 = vadd.f32 %v4831_v44, %v10782_v46  ;;  %v7736_v46 = vld [vmem:[%s11735_s1 + $0x584] sm:$0xf] }
 0x4b3   :  { %v11326_v2 = vadd.f32 %v5080_v47, %v4992_v22  ;;  %7548 = vmatmul.msk.bf16.gmra.mxu0 %vm3541_vm0, %v5971_v3  ;;  %v6295_v56 = vor.u32 %v7736_v46, %v6292_v15 }
 0x4b4   :  { %5146 = vmatmul.bf16.gmra.mxu1 %v6211_v33  ;;  %5225 = vmatmul.bf16.gmra.mxu2 %v6047_v53 }
 0x4b5   :  { %5309 = vmatmul.bf16.gmra.mxu3 %v5967_v36  ;;  %v6376_v36 = vld [vmem:[%s11735_s1 + $0x67c] sm:$0xf0] }
 0x4b7   :  { %v4910_v41 = vpop.f32.mrf.mxu2 }
 0x4b8   :  { %v4994_v8 = vpop.f32.mrf.mxu3  ;;  %v4911_v61 = vadd.f32 %v4910_v41, %v11250_v55  ;;  %v5085_v45 = vpop.f32.mrf.mxu0  ;;  %v6130_v55 = vld [vmem:[%s11735_s1 + $0x438] sm:$0xf]  ;;  %v6138_v41 = vld [vmem:[%s11735_s1 + $0x440] sm:$0xf] }
 0x4b9   :  { %v4995_v40 = vadd.f32 %v4994_v8, %v4906_v12  ;;  %v4833_v10 = vpop.f32.mrf.mxu1  ;;  %v7674_v12 = vld [vmem:[%s11735_s1 + $0x394] sm:$0xf]  ;;  %v6131_v9 = vor.u32 %v7705_v34, %v6130_v55 }
 0x4ba   :  { %v11331_v57 = vadd.f32 %v4833_v10, %v10812_v30  ;;  %v7685_v30 = vld [vmem:[%s11735_s1 + $0x3e8] sm:$0xf0]  ;;  %v6051_v6 = vor.u32 %v7674_v12, %v6048_v50  ;;  %v7726_v8 = vld [vmem:[%s11735_s1 + $0x530] sm:$0xf0] }
 0x4bb   :  { %v11333_v52 = vadd.f32 %v5083_v28, %v4995_v40  ;;  %v6055_v60 = vor.u32 %v7685_v30, %v6054_v16  ;;  %v6132_v40 = vld [vmem:[%s11735_s1 + $0x48c] sm:$0xf0] }
 0x4bf   :  { %v4912_v18 = vpop.f32.mrf.mxu2 }
 0x4c0   :  { %v4996_v47 = vpop.f32.mrf.mxu3  ;;  %v4913_v20 = vadd.f32 %v4912_v18, %v11257_v38  ;;  %v5088_v62 = vpop.f32.mrf.mxu0 }
 0x4c1   :  { %v4997_v37 = vadd.f32 %v4996_v47, %v4908_v13  ;;  %v5112_v14 = vpop.f32.mrf.mxu1 }
 0x4c2   :  { %v11361_v11 = vadd.f32 %v5112_v14, %v10818_v5  ;;  %v7757_v5 = vld [vmem:[%s11735_s1 + $0x62c] sm:$0xf] }
 0x4c3   :  { %v11363_v42 = vadd.f32 %v5085_v45, %v4997_v37  ;;  %7549 = vmatmul.msk.bf16.gmra.mxu0 %vm3541_vm0, %v6055_v60  ;;  %v6379_v46 = vor.u32 %v7757_v5, %v6376_v36 }
 0x4c4   :  { %5151 = vmatmul.bf16.gmra.mxu1 %v6295_v56  ;;  %5230 = vmatmul.bf16.gmra.mxu2 %v6131_v9 }
 0x4c5   :  { %5314 = vmatmul.bf16.gmra.mxu3 %v6051_v6  ;;  %v6460_v6 = vld [vmem:[%s11735_s1 + $0x724] sm:$0xf0] }
 0x4c7   :  { %v4915_v33 = vpop.f32.mrf.mxu2 }
 0x4c8   :  { %v4999_v3 = vpop.f32.mrf.mxu3  ;;  %v4916_v22 = vadd.f32 %v4915_v33, %v11287_v39  ;;  %v5090_v13 = vpop.f32.mrf.mxu0  ;;  %v6214_v39 = vld [vmem:[%s11735_s1 + $0x4e0] sm:$0xf]  ;;  %v6222_v33 = vld [vmem:[%s11735_s1 + $0x4e8] sm:$0xf] }
 0x4c9   :  { %v5000_v38 = vadd.f32 %v4999_v3, %v4911_v61  ;;  %v5114_v44 = vpop.f32.mrf.mxu1  ;;  %v7695_v61 = vld [vmem:[%s11735_s1 + $0x43c] sm:$0xf]  ;;  %v6215_v12 = vor.u32 %v7726_v8, %v6214_v39 }
 0x4ca   :  { %v11368_v28 = vadd.f32 %v5114_v44, %v10848_v26  ;;  %v7706_v26 = vld [vmem:[%s11735_s1 + $0x490] sm:$0xf0]  ;;  %v6135_v50 = vor.u32 %v7695_v61, %v6132_v40  ;;  %v7747_v3 = vld [vmem:[%s11735_s1 + $0x5d8] sm:$0xf0] }
 0x4cb   :  { %v11370_v53 = vadd.f32 %v5088_v62, %v5000_v38  ;;  %v6139_v15 = vor.u32 %v7706_v26, %v6138_v41  ;;  %v6216_v38 = vld [vmem:[%s11735_s1 + $0x534] sm:$0xf0] }
 0x4cf   :  { %v4917_v10 = vpop.f32.mrf.mxu2 }
 0x4d0   :  { %v5001_v45 = vpop.f32.mrf.mxu3  ;;  %v4918_v55 = vadd.f32 %v4917_v10, %v11294_v51  ;;  %v5093_v30 = vpop.f32.mrf.mxu0 }
 0x4d1   :  { %v5002_v16 = vadd.f32 %v5001_v45, %v4913_v20  ;;  %v5117_v34 = vpop.f32.mrf.mxu1 }
 0x4d2   :  { %v11398_v18 = vadd.f32 %v5117_v34, %v10863_v17  ;;  %v7778_v17 = vld [vmem:[%s11735_s1 + $0x6d4] sm:$0xf] }
 0x4d3   :  { %v11400_v47 = vadd.f32 %v5090_v13, %v5002_v16  ;;  %7550 = vmatmul.msk.bf16.gmra.mxu0 %vm3541_vm0, %v6139_v15  ;;  %v6463_v5 = vor.u32 %v7778_v17, %v6460_v6 }
 0x4d4   :  { %5156 = vmatmul.bf16.gmra.mxu1 %v6379_v46  ;;  %5235 = vmatmul.bf16.gmra.mxu2 %v6215_v12 }
 0x4d5   :  { %5319 = vmatmul.bf16.gmra.mxu3 %v6135_v50  ;;  %v6544_v50 = vld [vmem:[%s11735_s1 + $0x7cc] sm:$0xf0] }
 0x4d7   :  { %v4920_v56 = vpop.f32.mrf.mxu2 }
 0x4d8   :  { %v5004_v60 = vpop.f32.mrf.mxu3  ;;  %v4921_v37 = vadd.f32 %v4920_v56, %v11324_v35  ;;  %v5095_v20 = vpop.f32.mrf.mxu0  ;;  %v6298_v35 = vld [vmem:[%s11735_s1 + $0x588] sm:$0xf]  ;;  %v6382_v56 = vld [vmem:[%s11735_s1 + $0x630] sm:$0xf] }
 0x4d9   :  { %v5005_v51 = vadd.f32 %v5004_v60, %v4916_v22  ;;  %v5119_v62 = vpop.f32.mrf.mxu1  ;;  %v7716_v22 = vld [vmem:[%s11735_s1 + $0x4e4] sm:$0xf]  ;;  %v6299_v61 = vor.u32 %v7747_v3, %v6298_v35 }
 0x4da   :  { %v11405_v14 = vadd.f32 %v5119_v62, %v10896_v21  ;;  %v7727_v21 = vld [vmem:[%s11735_s1 + $0x538] sm:$0xf0]  ;;  %v6219_v40 = vor.u32 %v7716_v22, %v6216_v38  ;;  %v7768_v60 = vld [vmem:[%s11735_s1 + $0x680] sm:$0xf0] }
 0x4db   :  { %v11407_v9 = vadd.f32 %v5093_v30, %v5005_v51  ;;  %v6223_v36 = vor.u32 %v7727_v21, %v6222_v33  ;;  %v6300_v51 = vld [vmem:[%s11735_s1 + $0x5dc] sm:$0xf0]  ;;  %v6383_v22 = vor.u32 %v7768_v60, %v6382_v56 }
 0x4df   :  { %v4922_v13 = vpop.f32.mrf.mxu2 }
 0x4e0   :  { %v5006_v44 = vpop.f32.mrf.mxu3  ;;  %v4923_v39 = vadd.f32 %v4922_v13, %v11331_v57  ;;  %v5098_v26 = vpop.f32.mrf.mxu0 }
 0x4e1   :  { %v5007_v41 = vadd.f32 %v5006_v44, %v4918_v55  ;;  %v5122_v8 = vpop.f32.mrf.mxu1 }
 0x4e2   :  { %v11435_v10 = vadd.f32 %v5122_v8, %v10911_v4  ;;  %v7799_v4 = vld [vmem:[%s11735_s1 + $0x77c] sm:$0xf] }
 0x4e3   :  { %v11437_v45 = vadd.f32 %v5095_v20, %v5007_v41  ;;  %7551 = vmatmul.msk.bf16.gmra.mxu0 %vm3541_vm0, %v6223_v36  ;;  %v6547_v17 = vor.u32 %v7799_v4, %v6544_v50 }
 0x4e4   :  { %5161 = vmatmul.bf16.gmra.mxu1 %v6463_v5  ;;  %5240 = vmatmul.bf16.gmra.mxu2 %v6299_v61 }
 0x4e5   :  { %5324 = vmatmul.bf16.gmra.mxu3 %v6219_v40  ;;  %v6628_v40 = vld [vmem:[%s11735_s1 + $0x874] sm:$0xf0] }
 0x4e7   :  { %v5201_v15 = vpop.f32.mrf.mxu2 }
 0x4e8   :  { %v5009_v46 = vpop.f32.mrf.mxu3  ;;  %v5202_v57 = vadd.f32 %v5201_v15, %v11361_v11  ;;  %v5100_v55 = vpop.f32.mrf.mxu0  ;;  %v6306_v11 = vld [vmem:[%s11735_s1 + $0x590] sm:$0xf]  ;;  %v7789_v15 = vld [vmem:[%s11735_s1 + $0x728] sm:$0xf0] }
 0x4e9   :  { %v5010_v16 = vadd.f32 %v5009_v46, %v4921_v37  ;;  %v5124_v30 = vpop.f32.mrf.mxu1  ;;  %v7737_v37 = vld [vmem:[%s11735_s1 + $0x58c] sm:$0xf]  ;;  %v6466_v46 = vld [vmem:[%s11735_s1 + $0x6d8] sm:$0xf] }
 0x4ea   :  { %v11442_v34 = vadd.f32 %v5124_v30, %v10944_v58  ;;  %v7748_v58 = vld [vmem:[%s11735_s1 + $0x5e0] sm:$0xf0]  ;;  %v6303_v38 = vor.u32 %v7737_v37, %v6300_v51  ;;  %v6467_v37 = vor.u32 %v7789_v15, %v6466_v46 }
 0x4eb   :  { %v11444_v12 = vadd.f32 %v5098_v26, %v5010_v16  ;;  %v6307_v6 = vor.u32 %v7748_v58, %v6306_v11  ;;  %v7758_v16 = vld [vmem:[%s11735_s1 + $0x634] sm:$0xf] }
 0x4ef   :  { %v5203_v62 = vpop.f32.mrf.mxu2 }
 0x4f0   :  { %v5011_v20 = vpop.f32.mrf.mxu3  ;;  %v5204_v33 = vadd.f32 %v5203_v62, %v11368_v28  ;;  %v5379_v3 = vpop.f32.mrf.mxu0 }
 0x4f1   :  { %v5012_v35 = vadd.f32 %v5011_v20, %v4923_v39  ;;  %v5127_v21 = vpop.f32.mrf.mxu1 }
 0x4f2   :  { %v11472_v13 = vadd.f32 %v5127_v21, %v10959_v1  ;;  %v7820_v1 = vld [vmem:[%s11735_s1 + $0x824] sm:$0xf] }
 0x4f3   :  { %v11474_v44 = vadd.f32 %v5100_v55, %v5012_v35  ;;  %7552 = vmatmul.msk.bf16.gmra.mxu0 %vm3541_vm0, %v6307_v6  ;;  %v6631_v4 = vor.u32 %v7820_v1, %v6628_v40 }
 0x4f4   :  { %5166 = vmatmul.bf16.gmra.mxu1 %v6547_v17  ;;  %5245 = vmatmul.bf16.gmra.mxu2 %v6383_v22 }
 0x4f5   :  { %5329 = vmatmul.bf16.gmra.mxu3 %v6303_v38 }
 0x4f7   :  { %v5206_v5 = vpop.f32.mrf.mxu2 }
 0x4f8   :  { %v5290_v36 = vpop.f32.mrf.mxu3  ;;  %v5207_v39 = vadd.f32 %v5206_v5, %v11398_v18  ;;  %v5381_v26 = vpop.f32.mrf.mxu0  ;;  %v6390_v18 = vld [vmem:[%s11735_s1 + $0x638] sm:$0xf]  ;;  %v7841_v5 = vld [vmem:[%s11735_s1 + $0x8cc] sm:$0xf] }
 0x4f9   :  { %v5291_v41 = vadd.f32 %v5290_v36, %v5202_v57  ;;  %v5129_v28 = vpop.f32.mrf.mxu1  ;;  %v6384_v57 = vld [vmem:[%s11735_s1 + $0x684] sm:$0xf0]  ;;  %v6712_v36 = vld [vmem:[%s11735_s1 + $0x91c] sm:$0xf0] }
 0x4fa   :  { %v11479_v8 = vadd.f32 %v5129_v28, %v10992_v32  ;;  %v7769_v32 = vld [vmem:[%s11735_s1 + $0x688] sm:$0xf0]  ;;  %v6387_v51 = vor.u32 %v7758_v16, %v6384_v57  ;;  %v7810_v28 = vld [vmem:[%s11735_s1 + $0x7d0] sm:$0xf0]  ;;  %v6715_v46 = vor.u32 %v7841_v5, %v6712_v36 }
 0x4fb   :  { %v5380_v61 = vadd.f32 %v5379_v3, %v5291_v41  ;;  %v6391_v50 = vor.u32 %v7769_v32, %v6390_v18  ;;  %v6550_v41 = vld [vmem:[%s11735_s1 + $0x780] sm:$0xf] }
 0x4fd   :  { %v5459_v17 = vmax.f32 %v5380_v61, 0.0  ;;  %v6468_v61 = vld [vmem:[%s11735_s1 + $0x72c] sm:$0xf0] }
 0x4ff   :  { %v5208_v55 = vpop.f32.mrf.mxu2 }
 0x500   :  { %v5292_v30 = vpop.f32.mrf.mxu3  ;;  %v5209_v56 = vadd.f32 %v5208_v55, %v11405_v14  ;;  %v5384_v60 = vpop.f32.mrf.mxu0  ;;  %v6551_v55 = vor.u32 %v7810_v28, %v6550_v41 }
 0x501   :  { %v5293_v11 = vadd.f32 %v5292_v30, %v5204_v33  ;;  %v5132_v58 = vpop.f32.mrf.mxu1 }
 0x502   :  { %v11507_v20 = vadd.f32 %v5132_v58, %v11019_v0 }
 0x503   :  { %v5382_v62 = vadd.f32 %v5381_v26, %v5293_v11  ;;  %7553 = vmatmul.msk.bf16.gmra.mxu0 %vm3541_vm0, %v6391_v50  ;;  %v7779_v26 = vld [vmem:[%s11735_s1 + $0x6dc] sm:$0xf] }
 0x504   :  { %5171 = vmatmul.bf16.gmra.mxu1 %v6631_v4  ;;  %5250 = vmatmul.bf16.gmra.mxu2 %v6467_v37  ;;  %v6471_v30 = vor.u32 %v7779_v26, %v6468_v61 }
 0x505   :  { %v5460_v6 = vmax.f32 %v5382_v62, 0.0  ;;  %5334 = vmatmul.bf16.gmra.mxu3 %v6387_v51 }
 0x507   :  { %v11510_v35 = vpack.c.bf16 %v5460_v6, %v5459_v17  ;;  %v5211_v21 = vpop.f32.mrf.mxu2  ;;  %v7862_v6 = vld [vmem:[%s11735_s1 + $0x974] sm:$0xf] }
 0x508   :  { %v5295_v14 = vpop.f32.mrf.mxu3  ;;  %v5212_v33 = vadd.f32 %v5211_v21, %v11435_v10  ;;  %v5386_v38 = vpop.f32.mrf.mxu0  ;;  %v6474_v10 = vld [vmem:[%s11735_s1 + $0x6e0] sm:$0xf]  ;;  %v6796_v21 = vld [vmem:[%s11735_s1 + $0x9c4] sm:$0xf0] }
 0x509   :  { %v5296_v3 = vadd.f32 %v5295_v14, %v5207_v39  ;;  %v11513_v22 = vpop.f32.mrf.mxu1  ;;  %v7790_v39 = vld [vmem:[%s11735_s1 + $0x730] sm:$0xf0]  ;;  %v6634_v14 = vld [vmem:[%s11735_s1 + $0x828] sm:$0xf]  ;;  %v6799_v41 = vor.u32 %v7862_v6, %v6796_v21  ;;  %v7821_v6 = vld [vmem:[%s11735_s1 + $0x82c] sm:$0xf] }
 0x50a   :  { %v6475_v18 = vor.u32 %v7790_v39, %v6474_v10  ;;  %v6636_v21 = vld [vmem:[%s11735_s1 + $0x87c] sm:$0xf0] }
 0x50b   :  { %v5385_v0 = vadd.f32 %v5384_v60, %v5296_v3  ;;  %v7831_v3 = vld [vmem:[%s11735_s1 + $0x878] sm:$0xf0] }
 0x50d   :  { %v5461_v50 = vmax.f32 %v5385_v0, 0.0  ;;  %v6552_v0 = vld [vmem:[%s11735_s1 + $0x7d4] sm:$0xf0] }
 0x50f   :  { %v5213_v1 = vpop.f32.mrf.mxu2 }
 0x510   :  { %v5297_v40 = vpop.f32.mrf.mxu3  ;;  %v5214_v32 = vadd.f32 %v5213_v1, %v11442_v34  ;;  %v5389_v57 = vpop.f32.mrf.mxu0  ;;  %v6635_v1 = vor.u32 %v7831_v3, %v6634_v14 }
 0x511   :  { %v5298_v15 = vadd.f32 %v5297_v40, %v5209_v56  ;;  %v11540_v16 = vpop.f32.mrf.mxu1 }
 0x513   :  { %v5387_v4 = vadd.f32 %v5386_v38, %v5298_v15  ;;  %7554 = vmatmul.msk.bf16.gmra.mxu0 %vm3541_vm0, %v6475_v18  ;;  %v7800_v38 = vld [vmem:[%s11735_s1 + $0x784] sm:$0xf] }
 0x514   :  { %5176 = vmatmul.bf16.gmra.mxu1 %v6715_v46  ;;  %5255 = vmatmul.bf16.gmra.mxu2 %v6551_v55  ;;  %v6555_v40 = vor.u32 %v7800_v38, %v6552_v0 }
 0x515   :  { %v5462_v11 = vmax.f32 %v5387_v4, 0.0  ;;  %5339 = vmatmul.bf16.gmra.mxu3 %v6471_v30 }
 0x517   :  { %v11543_v58 = vpack.c.bf16 %v5462_v11, %v5461_v50  ;;  %v5216_v60 = vpop.f32.mrf.mxu2 }
 0x518   :  { %v5300_v37 = vpop.f32.mrf.mxu3  ;;  %v5217_v34 = vadd.f32 %v5216_v60, %v11472_v13  ;;  %v5391_v62 = vpop.f32.mrf.mxu0  ;;  %v6558_v13 = vld [vmem:[%s11735_s1 + $0x788] sm:$0xf] }
 0x519   :  { %v5301_v56 = vadd.f32 %v5300_v37, %v5212_v33  ;;  %v11546_v51 = vpop.f32.mrf.mxu1  ;;  %v7811_v33 = vld [vmem:[%s11735_s1 + $0x7d8] sm:$0xf0] }
 0x51a   :  { %v6559_v10 = vor.u32 %v7811_v33, %v6558_v13  ;;  %v7883_v37 = vld [vmem:[%s11735_s1 + $0xa1c] sm:$0xf] }
 0x51b   :  { %v5390_v17 = vadd.f32 %v5389_v57, %v5301_v56  ;;  %v5508_v57 = vld [vmem:[%s11736_s4] sm:$0xf]  ;;  %v6880_v56 = vld [vmem:[%s11735_s1 + $0xa6c] sm:$0xf0] }
 0x51c   :  { %5511 = vperm.xlu2 %8085, %v5508_v57   ;;  %v6883_v33 = vor.u32 %v7883_v37, %v6880_v56 }
 0x51d   :  { %v5463_v18 = vmax.f32 %v5390_v17, 0.0  ;;  %v7852_v17 = vld [vmem:[%s11735_s1 + $0x920] sm:$0xf0] }
 0x51f   :  { %v5218_v5 = vpop.f32.mrf.mxu2 }
 0x520   :  { %v5302_v36 = vpop.f32.mrf.mxu3  ;;  %v5219_v39 = vadd.f32 %v5218_v5, %v11479_v8  ;;  %v5394_v61 = vpop.f32.mrf.mxu0 }
 0x521   :  { %v5303_v28 = vadd.f32 %v5302_v36, %v5214_v32  ;;  %v11573_v26 = vpop.f32.mrf.mxu1 }
 0x523   :  { %v5392_v46 = vadd.f32 %v5391_v62, %v5303_v28  ;;  %7555 = vmatmul.msk.bf16.gmra.mxu0 %vm3541_vm0, %v6559_v10  ;;  %v6718_v62 = vld [vmem:[%s11735_s1 + $0x8d0] sm:$0xf] }
 0x524   :  { %5181 = vmatmul.bf16.gmra.mxu1 %v6799_v41  ;;  %5260 = vmatmul.bf16.gmra.mxu2 %v6635_v1  ;;  %v6719_v36 = vor.u32 %v7852_v17, %v6718_v62  ;;  %v6639_v41 = vor.u32 %v7821_v6, %v6636_v21 }
 0x525   :  { %v5464_v15 = vmax.f32 %v5392_v46, 0.0  ;;  %5344 = vmatmul.bf16.gmra.mxu3 %v6555_v40 }
 0x527   :  { %v11579_v8 = vpack.c.bf16 %v5464_v15, %v5463_v18  ;;  %v5221_v32 = vpop.f32.mrf.mxu2 }
 0x528   :  { %v5305_v55 = vpop.f32.mrf.mxu3  ;;  %v5222_v30 = vadd.f32 %v5221_v32, %v11507_v20  ;;  %v5396_v11 = vpop.f32.mrf.mxu0  ;;  %v6642_v20 = vld [vmem:[%s11735_s1 + $0x830] sm:$0xf]  ;;  %v5135_v32 = vadd.f32 %v11513_v22, %v11055_v31  ;;  %v7842_v31 = vld [vmem:[%s11735_s1 + $0x8d4] sm:$0xf]  ;;  %v6720_v22 = vld [vmem:[%s11735_s1 + $0x924] sm:$0xf0] }
 0x529   :  { %v5306_v4 = vadd.f32 %v5305_v55, %v5217_v34  ;;  %v11582_v50 = vpop.f32.mrf.mxu1  ;;  %v7832_v34 = vld [vmem:[%s11735_s1 + $0x880] sm:$0xf0]  ;;  %v6802_v55 = vld [vmem:[%s11735_s1 + $0x978] sm:$0xf]  ;;  %v6723_v21 = vor.u32 %v7842_v31, %v6720_v22 }
 0x52a   :  { %v6643_v3 = vor.u32 %v7832_v34, %v6642_v20 }
 0x52b   :  { %v5395_v60 = vadd.f32 %v5394_v61, %v5306_v4  ;;  %v6726_v4 = vld [vmem:[%s11735_s1 + $0x8d8] sm:$0xf] }
 0x52d   :  { %v5465_v28 = vmax.f32 %v5395_v60, 0.0 }
 0x52f   :  { %v5223_v14 = vpop.f32.mrf.mxu2 }
 0x530   :  { %v5307_v13 = vpop.f32.mrf.mxu3  ;;  %v5399_v5 = vpop.f32.mrf.mxu0  ;;  %v5224_v60 = vadd.f32 %v5223_v14, %v5135_v32 }
 0x531   :  { %v5308_v38 = vadd.f32 %v5307_v13, %v5219_v39  ;;  %v11608_v0 = vpop.f32.mrf.mxu1 }
 0x533   :  { %v5397_v10 = vadd.f32 %v5396_v11, %v5308_v38  ;;  %7556 = vmatmul.msk.bf16.gmra.mxu0 %vm3541_vm0, %v6643_v3  ;;  %v7853_v11 = vld [vmem:[%s11735_s1 + $0x928] sm:$0xf0] }
 0x534   :  { %5186 = vmatmul.bf16.gmra.mxu1 %v6883_v33  ;;  %5265 = vmatmul.bf16.gmra.mxu2 %v6719_v36  ;;  %v6727_v62 = vor.u32 %v7853_v11, %v6726_v4 }
 0x535   :  { %v5466_v61 = vmax.f32 %v5397_v10, 0.0  ;;  %5349 = vmatmul.bf16.gmra.mxu3 %v6639_v41  ;;  %v5138_v41 = vadd.f32 %v11540_v16, %v11070_v27  ;;  %v7874_v27 = vld [vmem:[%s11735_s1 + $0x9d0] sm:$0xf0]  ;;  %v6804_v16 = vld [vmem:[%s11735_s1 + $0x9cc] sm:$0xf0] }
 0x537   :  { %v11611_v1 = vpack.c.bf16 %v5466_v61, %v5465_v28  ;;  %v5226_v40 = vpop.f32.mrf.mxu2 }
 0x538   :  { %v5310_v46 = vpop.f32.mrf.mxu3  ;;  %v5401_v39 = vpop.f32.mrf.mxu0 }
 0x539   :  { %v5311_v18 = vadd.f32 %v5310_v46, %v5222_v30  ;;  %v11613_v15 = vpop.f32.mrf.mxu1  ;;  %v7873_v30 = vld [vmem:[%s11735_s1 + $0x9c8] sm:$0xf0]  ;;  %v5140_v46 = vadd.f32 %v11546_v51, %v11106_v63  ;;  %v7863_v63 = vld [vmem:[%s11735_s1 + $0x97c] sm:$0xf] }
 0x53a   :  { %v6803_v6 = vor.u32 %v7873_v30, %v6802_v55 }
 0x53b   :  { %v5400_v57 = vadd.f32 %v5399_v5, %v5311_v18 }
 0x53d   :  { %v5467_v3 = vmax.f32 %v5400_v57, 0.0  ;;  %v6810_v57 = vld [vmem:[%s11735_s1 + $0x980] sm:$0xf] }
 0x53e   :  { %v6811_v55 = vor.u32 %v7874_v27, %v6810_v57 }
 0x53f   :  { %v5228_v37 = vpop.f32.mrf.mxu2 }
 0x540   :  { %v5312_v56 = vpop.f32.mrf.mxu3  ;;  %v5404_v17 = vpop.f32.mrf.mxu0  ;;  %v5229_v51 = vadd.f32 %v5228_v37, %v5140_v46 }
 0x541   :  { %v5313_v20 = vadd.f32 %v5312_v56, %v5224_v60  ;;  %v5152_v34 = vpop.f32.mrf.mxu1  ;;  %v6807_v60 = vor.u32 %v7863_v63, %v6804_v16 }
 0x542   :  { %v11636_v13 = vadd.f32 %v5152_v34, %v11185_v24  ;;  %v5227_v24 = vadd.f32 %v5226_v40, %v5138_v41 }
 0x543   :  { %v5402_v33 = vadd.f32 %v5401_v39, %v5313_v20  ;;  %7557 = vmatmul.msk.bf16.gmra.mxu0 %vm3541_vm0, %v6727_v62  ;;  %v6886_v39 = vld [vmem:[%s11735_s1 + $0xa20] sm:$0xf] }
 0x544   :  { %5270 = vmatmul.bf16.gmra.mxu2 %v6803_v6 }
 0x545   :  { %v5468_v38 = vmax.f32 %v5402_v33, 0.0  ;;  %5354 = vmatmul.bf16.gmra.mxu3 %v6723_v21 }
 0x547   :  { %v11639_v5 = vpack.c.bf16 %v5468_v38, %v5467_v3  ;;  %v5231_v14 = vpop.f32.mrf.mxu2 }
 0x548   :  { %v5315_v36 = vpop.f32.mrf.mxu3  ;;  %v5406_v28 = vpop.f32.mrf.mxu0 }
 0x549   :  { %v5154_v10 = vpop.f32.mrf.mxu1  ;;  %v5316_v18 = vadd.f32 %v5315_v36, %v5227_v24  ;;  %v5145_v36 = vadd.f32 %v11582_v50, %v11142_v25 }
 0x54a   :  { %v11644_v61 = vadd.f32 %v5154_v10, %v11215_v43  ;;  %v7894_v43 = vld [vmem:[%s11735_s1 + $0xa70] sm:$0xf0]  ;;  %v6894_v10 = vld [vmem:[%s11735_s1 + $0xa28] sm:$0xf] }
 0x54b   :  { %v5405_v4 = vadd.f32 %v5404_v17, %v5316_v18  ;;  %v6887_v22 = vor.u32 %v7894_v43, %v6886_v39  ;;  %v5143_v17 = vadd.f32 %v11573_v26, %v11112_v19  ;;  %v7884_v19 = vld [vmem:[%s11735_s1 + $0xa24] sm:$0xf] }
 0x54d   :  { %v5469_v20 = vmax.f32 %v5405_v4, 0.0 }
 0x54f   :  { %v5233_v40 = vpop.f32.mrf.mxu2 }
 0x550   :  { %v5317_v32 = vpop.f32.mrf.mxu3  ;;  %v5409_v31 = vpop.f32.mrf.mxu0  ;;  %v5234_v26 = vadd.f32 %v5233_v40, %v5145_v36  ;;  %v5148_v40 = vadd.f32 %v11608_v0, %v11148_v48 }
 0x551   :  { %v5318_v11 = vadd.f32 %v5317_v32, %v5229_v51  ;;  %v5157_v30 = vpop.f32.mrf.mxu1 }
 0x552   :  { %v11667_v56 = vadd.f32 %v5157_v30, %v11222_v59  ;;  %v5232_v59 = vadd.f32 %v5231_v14, %v5143_v17 }
 0x553   :  { %v5407_v62 = vadd.f32 %v5406_v28, %v5318_v11  ;;  %7558 = vmatmul.msk.bf16.gmra.mxu0 %vm3541_vm0, %v6811_v55  ;;  %v7895_v28 = vld [vmem:[%s11735_s1 + $0xa78] sm:$0xf0] }
 0x554   :  { %5275 = vmatmul.bf16.gmra.mxu2 %v6887_v22  ;;  %v6895_v50 = vor.u32 %v7895_v28, %v6894_v10 }
 0x555   :  { %v5470_v34 = vmax.f32 %v5407_v62, 0.0  ;;  %5359 = vmatmul.bf16.gmra.mxu3 %v6807_v60 }
 0x557   :  { %v11670_v37 = vpack.c.bf16 %v5470_v34, %v5469_v20  ;;  %v5236_v6 = vpop.f32.mrf.mxu2  ;;  %v5491_v20 = vld [vmem:[%s11737_s3] sm:$0xf] }
 0x558   :  { %v5320_v21 = vpop.f32.mrf.mxu3  ;;  %v5411_v3 = vpop.f32.mrf.mxu0  ;;  %v5237_v22 = vadd.f32 %v5236_v6, %v5148_v40  ;;  %5515 = vst [vmem:[#allocation1] ss:$4 sm:$0xff] %v5491_v20 }
 0x559   :  { %v5159_v33 = vpop.f32.mrf.mxu1  ;;  %v5321_v41 = vadd.f32 %v5320_v21, %v5232_v59 }
 0x55a   :  { %v5160_v38 = vadd.f32 %v5159_v33, %v11252_v29  ;;  %v6888_v29 = vld [vmem:[%s11735_s1 + $0xa74] sm:$0xf0] }
 0x55b   :  { %v5410_v24 = vadd.f32 %v5409_v31, %v5321_v41  ;;  %v6891_v57 = vor.u32 %v7884_v19, %v6888_v29 }
 0x55d   :  { %v5471_v63 = vmax.f32 %v5410_v24, 0.0 }
 0x55f   :  { %v5238_v14 = vpop.f32.mrf.mxu2 }
 0x560   :  { %v5322_v25 = vpop.f32.mrf.mxu3  ;;  %v5414_v39 = vpop.f32.mrf.mxu0 }
 0x561   :  { %v5323_v46 = vadd.f32 %v5322_v25, %v5234_v26  ;;  %v5162_v18 = vpop.f32.mrf.mxu1 }
 0x562   :  { %v5163_v27 = vadd.f32 %v5162_v18, %v11259_v23  ;;  %v5150_v23 = vadd.f32 %v11613_v15, %v11178_v7 }
 0x563   :  { %v5412_v43 = vadd.f32 %v5411_v3, %v5323_v46  ;;  %7559 = vmatmul.msk.bf16.gmra.mxu0 %vm3541_vm0, %v6895_v50 }
 0x564   :  { %v5239_v62 = vadd.f32 %v5238_v14, %v5150_v23 }
 0x565   :  { %v5472_v16 = vmax.f32 %v5412_v43, 0.0  ;;  %5364 = vmatmul.bf16.gmra.mxu3 %v6891_v57 }
 0x567   :  { %v5498_v51 = vpack.c.bf16 %v5472_v16, %v5471_v63  ;;  %v5241_v32 = vpop.f32.mrf.mxu2 }
 0x568   :  { %v5325_v55 = vpop.f32.mrf.mxu3  ;;  %v5242_v4 = vadd.f32 %v5241_v32, %v11636_v13  ;;  %v5416_v30 = vpop.f32.mrf.mxu0 }
 0x569   :  { %v5164_v11 = vpop.f32.mrf.mxu1  ;;  %v5326_v60 = vadd.f32 %v5325_v55, %v5237_v22 }
 0x56a   :  { %v5165_v31 = vadd.f32 %v5164_v11, %v11289_v54 }
 0x56b   :  { %v5415_v48 = vadd.f32 %v5414_v39, %v5326_v60 }
 0x56d   :  { %v5473_v3 = vmax.f32 %v5415_v48, 0.0 }
 0x56f   :  { %v5243_v34 = vpop.f32.mrf.mxu2 }
 0x570   :  { %v5327_v21 = vpop.f32.mrf.mxu3  ;;  %v5244_v0 = vadd.f32 %v5243_v34, %v11644_v61  ;;  %v5419_v33 = vpop.f32.mrf.mxu0 }
 0x571   :  { %v5328_v13 = vadd.f32 %v5327_v21, %v5239_v62  ;;  %v5167_v17 = vpop.f32.mrf.mxu1 }
 0x572   :  { %v5168_v54 = vadd.f32 %v5167_v17, %v11296_v49 }
 0x573   :  { %v5417_v6 = vadd.f32 %v5416_v30, %v5328_v13 }
 0x575   :  { %v5474_v7 = vmax.f32 %v5417_v6, 0.0 }
 0x577   :  { %v5499_v15 = vpack.c.bf16 %v5474_v7, %v5473_v3  ;;  %v5246_v59 = vpop.f32.mrf.mxu2 }
 0x578   :  { %v5330_v36 = vpop.f32.mrf.mxu3  ;;  %v5247_v41 = vadd.f32 %v5246_v59, %v11667_v56  ;;  %v5421_v19 = vpop.f32.mrf.mxu0 }
 0x579   :  { %v5331_v10 = vadd.f32 %v5330_v36, %v5242_v4  ;;  %5520 = vmatpush.bf16.msra.mxu1 %v5499_v15  ;;  %v5169_v28 = vpop.f32.mrf.mxu1 }
 0x57a   :  { %v5170_v29 = vadd.f32 %v5169_v28, %v11326_v2 }
 0x57b   :  { %v5420_v61 = vadd.f32 %v5419_v33, %v5331_v10 }
 0x57d   :  { %5521 = vmatpush.bf16.msra.mxu1 %v5498_v51  ;;  %v5475_v56 = vmax.f32 %v5420_v61, 0.0 }
 0x57f   :  { %v5248_v26 = vpop.f32.mrf.mxu2 }
 0x580   :  { %v5332_v14 = vpop.f32.mrf.mxu3  ;;  %v5249_v25 = vadd.f32 %v5248_v26, %v5160_v38  ;;  %v5424_v24 = vpop.f32.mrf.mxu0 }
 0x581   :  { %v5333_v49 = vadd.f32 %v5332_v14, %v5244_v0  ;;  %5522 = vmatpush.bf16.msra.mxu1 %v11670_v37  ;;  %v5172_v50 = vpop.f32.mrf.mxu1 }
 0x582   :  { %v5173_v46 = vadd.f32 %v5172_v50, %v11333_v52 }
 0x583   :  { %v5422_v18 = vadd.f32 %v5421_v19, %v5333_v49 }
 0x585   :  { %v5476_v39 = vmax.f32 %v5422_v18, 0.0  ;;  %5523 = vmatpush.bf16.msra.mxu1 %v11639_v5 }
 0x587   :  { %v11707_v57 = vpack.c.bf16 %v5476_v39, %v5475_v56  ;;  %v5251_v2 = vpop.f32.mrf.mxu2 }
 0x588   :  { %v5335_v43 = vpop.f32.mrf.mxu3  ;;  %v5252_v63 = vadd.f32 %v5251_v2, %v5163_v27  ;;  %v5426_v38 = vpop.f32.mrf.mxu0  ;;  %v5516_v27 = vld.sshfl [vmem:[#allocation1] sm:$0xff pattern:$0x73625140] }
 0x589   :  { %v5336_v16 = vadd.f32 %v5335_v43, %v5247_v41  ;;  %5524 = vmatpush.bf16.msra.mxu1 %v11611_v1 }
 0x58b   :  { %v5425_v51 = vadd.f32 %v5424_v24, %v5336_v16 }
 0x58d   :  { %5525 = vmatpush.bf16.msra.mxu1 %v11579_v8  ;;  %v5477_v4 = vmax.f32 %v5425_v51, 0.0 }
 0x58f   :  { %v5253_v37 = vpop.f32.mrf.mxu2 }
 0x590   :  { %v5337_v32 = vpop.f32.mrf.mxu3  ;;  %v5254_v52 = vadd.f32 %v5253_v37, %v5165_v31  ;;  %v5429_v40 = vpop.f32.mrf.mxu0 }
 0x591   :  { %v5338_v55 = vadd.f32 %v5337_v32, %v5249_v25  ;;  %5526 = vmatpush.bf16.msra.mxu1 %v11543_v58 }
 0x593   :  { %v5427_v5 = vadd.f32 %v5426_v38, %v5338_v55 }
 0x595   :  { %v5478_v11 = vmax.f32 %v5427_v5, 0.0  ;;  %5527 = vmatpush.bf16.msra.mxu1 %v11510_v35 }
 0x597   :  { %v11713_v30 = vpack.c.bf16 %v5478_v11, %v5477_v4  ;;  %v5256_v1 = vpop.f32.mrf.mxu2 }
 0x598   :  { %v5340_v22 = vpop.f32.mrf.mxu3  ;;  %5528 = vmatmul.bf16.vlgmr.msra.gmra.mxu1 %v5516_v27  ;;  %v5257_v23 = vadd.f32 %v5256_v1, %v5168_v54  ;;  %v5431_v60 = vpop.f32.mrf.mxu0 }
 0x599   :  { %v5341_v8 = vadd.f32 %v5340_v22, %v5252_v63  ;;  %v5174_v54 = vpop.f32.mrf.mxu1 }
 0x59b   :  { %v5430_v62 = vadd.f32 %v5429_v40, %v5341_v8 }
 0x59d   :  { %v5479_v0 = vmax.f32 %v5430_v62, 0.0 }
 0x59f   :  { %v5258_v31 = vpop.f32.mrf.mxu2 }
 0x5a0   :  { %v5342_v20 = vpop.f32.mrf.mxu3  ;;  %v5259_v34 = vadd.f32 %v5258_v31, %v5170_v29  ;;  %v5434_v21 = vpop.f32.mrf.mxu0 }
 0x5a1   :  { %v5343_v58 = vadd.f32 %v5342_v20, %v5254_v52  ;;  %v5177_v26 = vpop.f32.mrf.mxu1 }
 0x5a2   :  { %v5178_v52 = vadd.f32 %v5177_v26, %v11370_v53 }
 0x5a3   :  { %v5432_v48 = vadd.f32 %v5431_v60, %v5343_v58 }
 0x5a5   :  { %v5480_v13 = vmax.f32 %v5432_v48, 0.0 }
 0x5a7   :  { %v11715_v17 = vpack.c.bf16 %v5480_v13, %v5479_v0  ;;  %v5261_v35 = vpop.f32.mrf.mxu2 }
 0x5a8   :  { %v5345_v33 = vpop.f32.mrf.mxu3  ;;  %v5262_v6 = vadd.f32 %v5261_v35, %v5173_v46  ;;  %v5436_v7 = vpop.f32.mrf.mxu0  ;;  %v5175_v46 = vadd.f32 %v5174_v54, %v11363_v42 }
 0x5a9   :  { %v5346_v3 = vadd.f32 %v5345_v33, %v5257_v23  ;;  %v5179_v43 = vpop.f32.mrf.mxu1 }
 0x5aa   :  { %v5180_v4 = vadd.f32 %v5179_v43, %v11400_v47 }
 0x5ab   :  { %v5435_v15 = vadd.f32 %v5434_v21, %v5346_v3 }
 0x5ad   :  { %v5481_v19 = vmax.f32 %v5435_v15, 0.0 }
 0x5af   :  { %v5263_v59 = vpop.f32.mrf.mxu2 }
 0x5b0   :  { %v5347_v36 = vpop.f32.mrf.mxu3  ;;  %v5439_v10 = vpop.f32.mrf.mxu0  ;;  %v5264_v18 = vadd.f32 %v5263_v59, %v5175_v46 }
 0x5b1   :  { %v5348_v41 = vadd.f32 %v5347_v36, %v5259_v34  ;;  %v5182_v5 = vpop.f32.mrf.mxu1 }
 0x5b2   :  { %v5183_v53 = vadd.f32 %v5182_v5, %v11407_v9 }
 0x5b3   :  { %v5437_v28 = vadd.f32 %v5436_v7, %v5348_v41 }
 0x5b5   :  { %v5482_v29 = vmax.f32 %v5437_v28, 0.0 }
 0x5b7   :  { %v11717_v61 = vpack.c.bf16 %v5482_v29, %v5481_v19  ;;  %v5266_v50 = vpop.f32.mrf.mxu2 }
 0x5b8   :  { %v5350_v14 = vpop.f32.mrf.mxu3  ;;  %v5441_v49 = vpop.f32.mrf.mxu0  ;;  %v5267_v40 = vadd.f32 %v5266_v50, %v5178_v52 }
 0x5b9   :  { %v5351_v25 = vadd.f32 %v5350_v14, %v5262_v6  ;;  %v5184_v20 = vpop.f32.mrf.mxu1 }
 0x5ba   :  { %v5185_v0 = vadd.f32 %v5184_v20, %v11437_v45 }
 0x5bb   :  { %v5440_v24 = vadd.f32 %v5439_v10, %v5351_v25 }
 0x5bd   :  { %v5483_v38 = vmax.f32 %v5440_v24, 0.0 }
 0x5bf   :  { %v5268_v16 = vpop.f32.mrf.mxu2 }
 0x5c0   :  { %v5352_v56 = vpop.f32.mrf.mxu3  ;;  %v5444_v2 = vpop.f32.mrf.mxu0  ;;  %v5269_v27 = vadd.f32 %v5268_v16, %v5180_v4 }
 0x5c1   :  { %v5353_v39 = vadd.f32 %v5352_v56, %v5264_v18  ;;  %v5187_v33 = vpop.f32.mrf.mxu1 }
 0x5c2   :  { %v5188_v19 = vadd.f32 %v5187_v33, %v11444_v12 }
 0x5c3   :  { %v5442_v63 = vadd.f32 %v5441_v49, %v5353_v39 }
 0x5c5   :  { %v5484_v51 = vmax.f32 %v5442_v63, 0.0  ;;  %v5512_v63 = vpop.permute.xlu2 %5511 }
 0x5c7   :  { %v5504_v37 = vpack.c.bf16 %v5484_v51, %v5483_v38  ;;  %v5271_v42 = vpop.f32.mrf.mxu2 }
 0x5c8   :  { %v5355_v32 = vpop.f32.mrf.mxu3  ;;  %v5446_v55 = vpop.f32.mrf.mxu0  ;;  %v5272_v48 = vadd.f32 %v5271_v42, %v5183_v53 }
 0x5c9   :  { %v5356_v11 = vadd.f32 %v5355_v32, %v5267_v40  ;;  %v5189_v9 = vpop.f32.mrf.mxu1 }
 0x5ca   :  { %v5190_v45 = vadd.f32 %v5189_v9, %v11474_v44  ;;  %v5517_v44 = vld.sshfl [vmem:[#allocation1 + $0x8] sm:$0xff pattern:$0x73625140] }
 0x5cb   :  { %v5445_v22 = vadd.f32 %v5444_v2, %v5356_v11 }
 0x5cd   :  { %v5485_v62 = vmax.f32 %v5445_v22, 0.0 }
 0x5cf   :  { %v5273_v58 = vpop.f32.mrf.mxu2 }
 0x5d0   :  { %v5357_v1 = vpop.f32.mrf.mxu3  ;;  %v5449_v60 = vpop.f32.mrf.mxu0  ;;  %v5274_v35 = vadd.f32 %v5273_v58, %v5185_v0 }
 0x5d1   :  { %v5358_v23 = vadd.f32 %v5357_v1, %v5269_v27 }
 0x5d3   :  { %v5447_v8 = vadd.f32 %v5446_v55, %v5358_v23 }
 0x5d5   :  { %v5486_v31 = vmax.f32 %v5447_v8, 0.0 }
 0x5d7   :  { %v5505_v34 = vpack.c.bf16 %v5486_v31, %v5485_v62  ;;  %v5276_v15 = vpop.f32.mrf.mxu2 }
 0x5d8   :  { %v5360_v21 = vpop.f32.mrf.mxu3  ;;  %v5451_v13 = vpop.f32.mrf.mxu0  ;;  %v5277_v29 = vadd.f32 %v5276_v15, %v5188_v19 }
 0x5d9   :  { %v5361_v47 = vadd.f32 %v5360_v21, %v5272_v48 }
 0x5db   :  { %v5450_v3 = vadd.f32 %v5449_v60, %v5361_v47 }
 0x5dd   :  { %v5487_v59 = vmax.f32 %v5450_v3, 0.0 }
 0x5df   :  { %v5278_v26 = vpop.f32.mrf.mxu2 }
 0x5e0   :  { %v5362_v6 = vpop.f32.mrf.mxu3  ;;  %v5454_v10 = vpop.f32.mrf.mxu0  ;;  %v5279_v25 = vadd.f32 %v5278_v26, %v5190_v45 }
 0x5e1   :  { %v5363_v7 = vadd.f32 %v5362_v6, %v5274_v35 }
 0x5e3   :  { %v5452_v54 = vadd.f32 %v5451_v13, %v5363_v7 }
 0x5e5   :  { %v5488_v36 = vmax.f32 %v5452_v54, 0.0 }
 0x5e7   :  { %v5506_v41 = vpack.c.bf16 %v5488_v36, %v5487_v59 }
 0x5e8   :  { %v5365_v28 = vpop.f32.mrf.mxu3  ;;  %v5456_v46 = vpop.f32.mrf.mxu0 }
 0x5e9   :  { %v5366_v14 = vadd.f32 %v5365_v28, %v5277_v29 }
 0x5eb   :  { %v5455_v50 = vadd.f32 %v5454_v10, %v5366_v14 }
 0x5ed   :  { %v5489_v56 = vmax.f32 %v5455_v50, 0.0 }
 0x5f0   :  { %v5367_v49 = vpop.f32.mrf.mxu3 }
 0x5f1   :  { %v5368_v24 = vadd.f32 %v5367_v49, %v5279_v25 }
 0x5f3   :  { %v5457_v18 = vadd.f32 %v5456_v46, %v5368_v24 }
 0x5f5   :  { %v5490_v39 = vmax.f32 %v5457_v18, 0.0 }
 0x5f7   :  { %v5507_v2 = vpack.c.bf16 %v5490_v39, %v5489_v56 }
 0x5f9   :  { %5533 = vmatpush.bf16.msra.mxu2 %v5507_v2 }
 0x5fd   :  { %5534 = vmatpush.bf16.msra.mxu2 %v5506_v41 }
 0x601   :  { %5535 = vmatpush.bf16.msra.mxu2 %v5505_v34 }
 0x605   :  { %5536 = vmatpush.bf16.msra.mxu2 %v5504_v37 }
 0x609   :  { %5537 = vmatpush.bf16.msra.mxu2 %v11717_v61 }
 0x60d   :  { %5538 = vmatpush.bf16.msra.mxu2 %v11715_v17 }
 0x611   :  { %5539 = vmatpush.bf16.msra.mxu2 %v11713_v30 }
 0x615   :  { %v5529_v12 = vpop.f32.mrf.mxu1  ;;  %5540 = vmatpush.bf16.msra.mxu2 %v11707_v57 }
 0x616   :  { %v5530_v16 = vadd.f32 %v5529_v12, %v5512_v63 }
 0x618   :  { %5541 = vmatmul.bf16.vlgmr.msra.gmra.mxu2 %v5517_v44 }
 0x61d   :  { %v5531_v43 = vpop.f32.mrf.mxu1 }
 0x69b   :  { %v5542_v38 = vpop.f32.mrf.mxu2 }
 0x69c   :  { %v5543_v51 = vadd.f32 %v5542_v38, %v5530_v16 }
 0x69e   :  { %5547 = vst.msk [vmem:[%s11738_s5] sm:$0xf] %vm5546_vm1, %v5543_v51 }
 0x6a3   :  { %v5544_v61 = vpop.f32.mrf.mxu2 }

</bundles_post_ra>
